<compile_context>
chip_gen: v7x
topology: tpu7x:2x2x1
jax: 0.10.0
libtpu: 0.0.40
codegen_flags: <defaults>
</compile_context>

<pallas_src>
import functools

import jax
import jax.numpy as jnp
from jax.experimental import pallas as pl
from jax.experimental.pallas import tpu as pltpu

KS = 7                       # MinkowskiChannelwiseConvolution kernel size (D=1)
PAD = KS // 2
EPS_LN = 1e-6
EPS_GRN = 1e-6
_INV_SQRT2 = 0.7071067811865475244


def _gelu_exact(x):
    # torch nn.GELU() default (erf-based).  Kept exact for reference fidelity, but it
    # is now evaluated only once per element (pass 1); pass 2 consumes the bf16 spill.
    return 0.5 * x * (1.0 + jax.lax.erf(x * _INV_SQRT2))


def _vmem_limit_bytes():
    """Generation-aware scoped-VMEM limit: ~3/4 of physical VMEM (128 MiB on v5e/v6e,
    64 MiB on v7x), with a conservative fallback if the hardware query is unavailable."""
    try:
        cap = pltpu.get_tpu_info().vmem_capacity_bytes
    except Exception:  # query can fail off-TPU / on older runtimes
        cap = 64 * 1024 * 1024
    return int(min(cap * 3 // 4, 96 * 1024 * 1024))


# -----------------------------------------------------------------------------
# Pass 1: depthwise conv + LayerNorm + pwconv1 + GELU -> h (bf16 spill), plus the
#         per-core partial GRN statistic sum(h^2) over this core's rows.
# -----------------------------------------------------------------------------
def _pass1_kernel(xprev_ref, xcur_ref, xnext_ref, dww_ref, dwb_ref,
                  lng_ref, lnb_ref, w1_ref, b1_ref,
                  h_ref, ssq_ref, win_ref, *, tiles_per_core, tiles_per_batch):
    c = pl.program_id(0)            # megacore-parallel axis (per-core ssq partial row)
    t = pl.program_id(1)            # sequential ("arbitrary") tile axis within the core
    tg = c * tiles_per_core + t     # global row-tile index
    tn = xcur_ref.shape[0]

    @pl.when(t == 0)
    def _():
        ssq_ref[...] = jnp.zeros_like(ssq_ref)

    # Row tiles never straddle a batch boundary (tile_rows divides L), so an
    # out-of-batch conv neighbour is exactly "previous/next tile missing" -> zeros.
    has_prev = (tg % tiles_per_batch) != 0
    has_next = ((tg + 1) % tiles_per_batch) != 0

    xc = xcur_ref[...]                                  # (TN, C) f32
    dww = dww_ref[...]                                  # (KS, C) f32, loaded once

    # Halo'd window in VMEM scratch (all stores sublane-aligned):
    #   rows [0, 8)          = previous 8 rows of this batch element (or zeros)
    #   rows [8, 8+TN)       = current tile
    #   rows [8+TN, 16+TN)   = next 8 rows of this batch element (or zeros)
    win_ref[0:8, :] = jnp.where(has_prev, xprev_ref[...], 0.0)
    win_ref[8:8 + tn, :] = xc
    win_ref[8 + tn:16 + tn, :] = jnp.where(has_next, xnext_ref[...], 0.0)

    # --- MinkowskiChannelwiseConvolution: depthwise 1-D conv, zero outside the batch.
    #     Centre tap initialises y with the bias folded in (no zeros + add).
    # TODO(synk): on v5e, compute interior taps from the in-register xc (static slices /
    # pltpu.roll) and only read the <=3 boundary rows from the halo scratch, to cut the
    # full-tile store + 6 sublane-unaligned reloads (store/XLU slots are scarcer there).
    y = xc * dww[PAD:PAD + 1, :] + dwb_ref[...]
    for k in range(KS):                                 # static unroll, 6 shifted taps
        d = k - PAD
        if d == 0:
            continue
        y = y + win_ref[8 + d:8 + d + tn, :] * dww[k:k + 1, :]

    # --- MinkowskiLayerNorm: per-point LayerNorm over channels (f32 statistics).
    mu = jnp.mean(y, axis=-1, keepdims=True)
    var = jnp.mean(jnp.square(y - mu), axis=-1, keepdims=True)
    yn = (y - mu) * jax.lax.rsqrt(var + EPS_LN)
    yn = yn * lng_ref[...] + lnb_ref[...]

    # --- pwconv1 + GELU (f32 accumulation); accumulate the per-core GRN sum-of-squares
    #     from the f32 activation, then spill h to HBM in bf16 for pass 2.
    h = jnp.dot(yn.astype(jnp.bfloat16), w1_ref[...],
                preferred_element_type=jnp.float32) + b1_ref[...]
    h = _gelu_exact(h)
    ssq_ref[...] += jnp.sum(h * h, axis=0, keepdims=True)   # broadcast over 8 sublanes
    h_ref[...] = h.astype(jnp.bfloat16)


# -----------------------------------------------------------------------------
# Pass 2: GRN (precomputed global scale), pwconv2, residual.
# -----------------------------------------------------------------------------
def _pass2_kernel(h_ref, x_ref, scale_ref, beta_ref, w2_ref, b2_ref, o_ref):
    # GRN: gamma*(h*nx) + beta + h == h*(gamma*nx + 1) + beta; scale/beta precomputed
    # in the wrapper from the global sum(h^2), so only one fma per element remains here.
    hg = h_ref[...].astype(jnp.float32) * scale_ref[...] + beta_ref[...]

    # pwconv2 (bf16 MXU operands, f32 accumulate) + residual;
    # MinkowskiDropPath with drop_prob=0.0 (and eval mode) is the identity.
    o = jnp.dot(hg.astype(jnp.bfloat16), w2_ref[...],
                preferred_element_type=jnp.float32) + b2_ref[...]
    o_ref[...] = x_ref[...] + o


def _pick_tile_rows(L, hid):
    """Largest power-of-two row tile dividing L, targeting 256-1024 rows so the MXU M
    dimension is filled and the ~0.35 us per-grid-step overhead is amortized, while the
    f32 (tile, 4*dim) activation stays around <= 8 MiB (well inside v7x's 64 MiB VMEM)."""
    budget = max(256, (8 * 1024 * 1024) // (4 * hid))
    budget = min(budget, 1024)
    assert L % 8 == 0, "L must be a multiple of 8"  # TODO(synk): mask ragged row tiles
    tn = 8
    while tn * 2 <= min(budget, L) and L % (tn * 2) == 0:
        tn *= 2
    return tn


def sparse_block(x, params, *, tile_rows=None):
    """SparseBlock forward on a dense (B, L, C) view of the sparse features."""
    B, L, C = x.shape
    hid = params["w1"].shape[1]
    if tile_rows is None:
        tile_rows = _pick_tile_rows(L, hid)
    assert tile_rows % 8 == 0 and L % tile_rows == 0, (tile_rows, L)

    n = B * L
    nt = n // tile_rows
    tiles_per_batch = L // tile_rows
    rpb = tile_rows // 8            # 8-row blocks per tile (for the halo fetches)
    n_blk8 = n // 8

    # Pass 1 splits its grid over a leading "parallel" core axis so v7x's two
    # TensorCores each accumulate their own ssq partial row (summed below).
    ncores = 2 if nt % 2 == 0 else 1
    tpc = nt // ncores

    vmem_limit = _vmem_limit_bytes()
    # Each pass keeps exactly one bf16 (dim, 4*dim) weight resident in VMEM.
    # TODO(synk): stream W1/W2 over an extra K/N grid axis when the resident weights
    # approach the per-generation VMEM limit (dim >~ 2048 on v7x).
    assert 2 * C * hid < vmem_limit // 2, "dim too large for the resident-weight scheme"

    xf = x.reshape(n, C)                          # ME feature matrix F: (N, C), N = B*L
    w1_bf = params["w1"].astype(jnp.bfloat16)     # bf16 MXU operands, f32 accumulation
    w2_bf = params["w2"].astype(jnp.bfloat16)

    # ---- pass 1: dwconv + LN + pwconv1 + GELU -> h (bf16), per-core sum(h^2) ----
    def const1(shape):                            # resident params: constant index_map
        return pl.BlockSpec(shape, lambda c, t: (0,) * len(shape))

    row_tile_c1 = pl.BlockSpec((tile_rows, C), lambda c, t: (c * tpc + t, 0))
    row_tile_h1 = pl.BlockSpec((tile_rows, hid), lambda c, t: (c * tpc + t, 0))

    h_bf, ssq_part = pl.pallas_call(
        functools.partial(_pass1_kernel, tiles_per_core=tpc,
                          tiles_per_batch=tiles_per_batch),
        out_shape=(jax.ShapeDtypeStruct((n, hid), jnp.bfloat16),
                   jax.ShapeDtypeStruct((ncores * 8, hid), jnp.float32)),
        grid=(ncores, tpc),
        in_specs=[
            # previous / next 8 rows for the conv halo (clamped at the global edges,
            # masked in-kernel at batch boundaries) -- only 2*8*C extra bytes per tile.
            pl.BlockSpec((8, C),
                         lambda c, t: (jnp.maximum((c * tpc + t) * rpb - 1, 0), 0)),
            row_tile_c1,
            pl.BlockSpec((8, C),
                         lambda c, t: (jnp.minimum((c * tpc + t + 1) * rpb, n_blk8 - 1), 0)),
            const1((KS, C)),     # dw_w   (VMEM-resident across the grid)
            const1((1, C)),      # dw_b
            const1((1, C)),      # ln_g
            const1((1, C)),      # ln_b
            const1((C, hid)),    # w1 (bf16)
            const1((1, hid)),    # b1
        ],
        out_specs=(row_tile_h1,                               # h spill (bf16)
                   pl.BlockSpec((8, hid), lambda c, t: (c, 0))),  # per-core ssq partial
        scratch_shapes=[pltpu.VMEM((tile_rows + 16, C), jnp.float32)],
        compiler_params=pltpu.CompilerParams(
            dimension_semantics=("parallel", "arbitrary"),
            vmem_limit_bytes=vmem_limit),
    )(xf, xf, xf, params["dw_w"], params["dw_b"], params["ln_g"], params["ln_b"],
      w1_bf, params["b1"])

    # ---- GRN global statistics: tiny (1, 4*dim) math stays in plain JAX ----
    ssq = ssq_part.reshape(ncores, 8, hid)[:, 0, :].sum(axis=0, keepdims=True)
    gx = jnp.sqrt(ssq)
    nx = gx / (jnp.mean(gx, axis=-1, keepdims=True) + EPS_GRN)
    grn_scale = params["grn_g"] * nx + 1.0        # fused: gamma*nx + 1
    grn_beta = params["grn_b"]

    # ---- pass 2: GRN scale, pwconv2, residual ----
    def const2(shape):
        return pl.BlockSpec(shape, lambda t: (0,) * len(shape))

    row_c = pl.BlockSpec((tile_rows, C), lambda t: (t, 0))
    row_h = pl.BlockSpec((tile_rows, hid), lambda t: (t, 0))

    out = pl.pallas_call(
        _pass2_kernel,
        out_shape=jax.ShapeDtypeStruct((n, C), jnp.float32),
        grid=(nt,),
        in_specs=[
            row_h,               # h (bf16 spill from pass 1)
            row_c,               # x (residual)
            const2((1, hid)),    # grn scale (gamma*nx + 1)
            const2((1, hid)),    # grn beta
            const2((hid, C)),    # w2 (bf16)
            const2((1, C)),      # b2
        ],
        out_specs=row_c,
        compiler_params=pltpu.CompilerParams(
            dimension_semantics=("parallel",),    # independent row tiles -> megacore
            vmem_limit_bytes=vmem_limit),
    )(h_bf, xf, grn_scale, grn_beta, w2_bf, params["b2"])

    return out.reshape(B, L, C)


def sparse_block_ref(x, params, *, mxu_bf16=False):
    """Pure-JAX reference.  mxu_bf16=False reproduces the torch f32 semantics;
    mxu_bf16=True mirrors the kernel's bf16-operand matmuls and bf16 h spill."""
    B, L, C = x.shape
    mm = jnp.bfloat16 if mxu_bf16 else jnp.float32
    xp = jnp.pad(x, ((0, 0), (PAD, PAD), (0, 0)))
    y = jnp.zeros_like(x)
    for k in range(KS):
        y = y + xp[:, k:k + L, :] * params["dw_w"][k][None, None, :]
    y = y + params["dw_b"][None, :, :]
    yf = y.reshape(B * L, C)
    xfl = x.reshape(B * L, C)
    mu = jnp.mean(yf, axis=-1, keepdims=True)
    var = jnp.mean((yf - mu) ** 2, axis=-1, keepdims=True)
    yn = (yf - mu) * jax.lax.rsqrt(var + EPS_LN)
    yn = yn * params["ln_g"] + params["ln_b"]
    h = jnp.dot(yn.astype(mm), params["w1"].astype(mm),
                preferred_element_type=jnp.float32) + params["b1"]
    h = _gelu_exact(h)
    gx = jnp.sqrt(jnp.sum(h * h, axis=0, keepdims=True))
    nx = gx / (jnp.mean(gx, axis=-1, keepdims=True) + EPS_GRN)
    if mxu_bf16:
        h = h.astype(jnp.bfloat16).astype(jnp.float32)   # mirror the kernel's h spill
    h = params["grn_g"] * (h * nx) + params["grn_b"] + h
    o = jnp.dot(h.astype(mm), params["w2"].astype(mm),
                preferred_element_type=jnp.float32) + params["b2"]
    return (xfl + o).reshape(B, L, C)


def init_params(key, dim):
    hid = 4 * dim
    ks = jax.random.split(key, 10)
    s = 0.1
    return {
        # MinkowskiChannelwiseConvolution: kernel (kernel_volume, dim) + bias (dim,)
        "dw_w": s * jax.random.normal(ks[0], (KS, dim), jnp.float32),
        "dw_b": s * jax.random.normal(ks[1], (1, dim), jnp.float32),
        # nn.LayerNorm(dim) affine params
        "ln_g": 1.0 + s * jax.random.normal(ks[2], (1, dim), jnp.float32),
        "ln_b": s * jax.random.normal(ks[3], (1, dim), jnp.float32),
        # pwconv1: Linear(dim, 4*dim)
        "w1": s * jax.random.normal(ks[4], (dim, hid), jnp.float32),
        "b1": s * jax.random.normal(ks[5], (1, hid), jnp.float32),
        # GRN(4*dim): gamma/beta are zeros in the module; randomized deterministically
        # here to exercise the compute path.
        "grn_g": s * jax.random.normal(ks[6], (1, hid), jnp.float32),
        "grn_b": s * jax.random.normal(ks[7], (1, hid), jnp.float32),
        # pwconv2: Linear(4*dim, dim)
        "w2": s * jax.random.normal(ks[8], (hid, dim), jnp.float32),
        "b2": s * jax.random.normal(ks[9], (1, dim), jnp.float32),
    }


if __name__ == "__main__":
    # batch, 1-D coordinates per sample, channels (dim); lane-dense C / 4C.
    B, L, C = 2, 256, 128
    key = jax.random.PRNGKey(0)
    kx, kp = jax.random.split(key)
    x = jax.random.normal(kx, (B, L, C), jnp.float32)
    params = init_params(kp, C)

    # Primary run: default heuristic tile (256 rows here) -> full MXU M dim per step.
    fn = jax.jit(sparse_block)
    out = jax.block_until_ready(fn(x, params))

    ref_bf = sparse_block_ref(x, params, mxu_bf16=True)    # mirrors the kernel bf16 path
    ref_f32 = sparse_block_ref(x, params, mxu_bf16=False)  # torch-semantics f32 reference

    assert out.shape == (B, L, C)
    assert bool(jnp.all(jnp.isfinite(out)))
    err_bf = float(jnp.max(jnp.abs(out - ref_bf)))
    assert jnp.allclose(out, ref_bf, rtol=1e-2, atol=1e-2), err_bf
    # Looser tolerance vs. the f32 reference accounts for the intentional bf16 MXU
    # operands and the bf16 activation spill between the two passes.
    err_32 = float(jnp.max(jnp.abs(out - ref_f32)))
    assert jnp.allclose(out, ref_f32, rtol=5e-2, atol=6e-2), err_32

    # Secondary correctness check with 2 row tiles per batch element so the in-batch
    # conv halo exchange, batch-boundary masking and cross-tile / cross-core GRN
    # accumulation paths are all exercised at this small demo size.
    out_halo = jax.block_until_ready(
        jax.jit(functools.partial(sparse_block, tile_rows=128))(x, params))
    err_halo = float(jnp.max(jnp.abs(out_halo - ref_bf)))
    assert jnp.allclose(out_halo, ref_bf, rtol=1e-2, atol=1e-2), err_halo

    print("KERNEL_OK")
</pallas_src>

<mosaic_0001>
module attributes {stable_mosaic.version = 11 : i64} {
  func.func @_pass1_kernel(%arg0: i32, %arg1: i32, %arg2: memref<8x128xf32, #tpu.memory_space<vmem>>, %arg3: memref<256x128xf32, #tpu.memory_space<vmem>>, %arg4: memref<8x128xf32, #tpu.memory_space<vmem>>, %arg5: memref<7x128xf32, #tpu.memory_space<vmem>>, %arg6: memref<1x128xf32, #tpu.memory_space<vmem>>, %arg7: memref<1x128xf32, #tpu.memory_space<vmem>>, %arg8: memref<1x128xf32, #tpu.memory_space<vmem>>, %arg9: memref<128x512xbf16, #tpu.memory_space<vmem>>, %arg10: memref<1x512xf32, #tpu.memory_space<vmem>>, %arg11: memref<256x512xbf16, #tpu.memory_space<vmem>>, %arg12: memref<8x512xf32, #tpu.memory_space<vmem>>, %arg13: memref<272x128xf32, #tpu.memory_space<vmem>>) attributes {dimension_semantics = [#tpu.dimension_semantics<parallel>, #tpu.dimension_semantics<arbitrary>], iteration_bounds = array<i64: 2, 1>, scalar_prefetch = 0 : i64, scratch_operands = 1 : i64, tpu.core_type = #tpu.core_type<tc>, window_params = [{transform_indices = @transform_0, window_bounds = array<i64: 8, 128>}, {transform_indices = @transform_1, window_bounds = array<i64: 256, 128>}, {transform_indices = @transform_2, window_bounds = array<i64: 8, 128>}, {pipeline_mode = #tpu.pipeline_mode<synchronous>, transform_indices = @transform_3, window_bounds = array<i64: 7, 128>}, {pipeline_mode = #tpu.pipeline_mode<synchronous>, transform_indices = @transform_4, window_bounds = array<i64: 1, 128>}, {pipeline_mode = #tpu.pipeline_mode<synchronous>, transform_indices = @transform_5, window_bounds = array<i64: 1, 128>}, {pipeline_mode = #tpu.pipeline_mode<synchronous>, transform_indices = @transform_6, window_bounds = array<i64: 1, 128>}, {pipeline_mode = #tpu.pipeline_mode<synchronous>, transform_indices = @transform_7, window_bounds = array<i64: 128, 512>}, {pipeline_mode = #tpu.pipeline_mode<synchronous>, transform_indices = @transform_8, window_bounds = array<i64: 1, 512>}, {transform_indices = @transform_9, window_bounds = array<i64: 256, 512>}, {transform_indices = @transform_10, window_bounds = array<i64: 8, 512>}]} {
    %c1_i32 = arith.constant 1 : i32
    %0 = arith.muli %arg0, %c1_i32 : i32
    %1 = arith.addi %0, %arg1 : i32
    %c0_i32 = arith.constant 0 : i32
    %2 = arith.cmpi eq, %arg1, %c0_i32 : i32
    %3 = arith.extui %2 : i1 to i32
    %c0_i32_0 = arith.constant 0 : i32
    %4 = arith.cmpi ne, %3, %c0_i32_0 : i32
    scf.if %4 {
      %cst_60 = arith.constant 0.000000e+00 : f32
      %122 = vector.broadcast %cst_60 : f32 to vector<8x512xf32>
      %c0_61 = arith.constant 0 : index
      %c0_62 = arith.constant 0 : index
      %123 = vector.load %arg12[%c0_61, %c0_62] : memref<8x512xf32, #tpu.memory_space<vmem>>, vector<8x512xf32>
      tpu.vector_store %arg12[%c0_61, %c0_62], %122 {strides = array<i32>} : memref<8x512xf32, #tpu.memory_space<vmem>>, vector<8x512xf32>,
    } else {
    }
    %c1_i32_1 = arith.constant 1 : i32
    %c0_i32_2 = arith.constant 0 : i32
    %5 = arith.cmpi eq, %c1_i32_1, %c0_i32_2 : i32
    %c1_i32_3 = arith.constant 1 : i32
    %6 = arith.select %5, %c1_i32_3, %c1_i32_1 : i32
    %7 = arith.remsi %1, %6 : i32
    %c0_i32_4 = arith.constant 0 : i32
    %8 = arith.cmpi ne, %7, %c0_i32_4 : i32
    %c0_i32_5 = arith.constant 0 : i32
    %9 = arith.cmpi slt, %7, %c0_i32_5 : i32
    %c0_i32_6 = arith.constant 0 : i32
    %10 = arith.cmpi slt, %6, %c0_i32_6 : i32
    %11 = arith.xori %9, %10 : i1
    %12 = arith.andi %11, %8 : i1
    %13 = arith.addi %7, %6 : i32
    %14 = arith.select %12, %13, %7 : i32
    %c0_i32_7 = arith.constant 0 : i32
    %15 = arith.cmpi ne, %14, %c0_i32_7 : i32
    %c1_i32_8 = arith.constant 1 : i32
    %16 = arith.addi %1, %c1_i32_8 : i32
    %c1_i32_9 = arith.constant 1 : i32
    %c0_i32_10 = arith.constant 0 : i32
    %17 = arith.cmpi eq, %c1_i32_9, %c0_i32_10 : i32
    %c1_i32_11 = arith.constant 1 : i32
    %18 = arith.select %17, %c1_i32_11, %c1_i32_9 : i32
    %19 = arith.remsi %16, %18 : i32
    %c0_i32_12 = arith.constant 0 : i32
    %20 = arith.cmpi ne, %19, %c0_i32_12 : i32
    %c0_i32_13 = arith.constant 0 : i32
    %21 = arith.cmpi slt, %19, %c0_i32_13 : i32
    %c0_i32_14 = arith.constant 0 : i32
    %22 = arith.cmpi slt, %18, %c0_i32_14 : i32
    %23 = arith.xori %21, %22 : i1
    %24 = arith.andi %23, %20 : i1
    %25 = arith.addi %19, %18 : i32
    %26 = arith.select %24, %25, %19 : i32
    %c0_i32_15 = arith.constant 0 : i32
    %27 = arith.cmpi ne, %26, %c0_i32_15 : i32
    %c0 = arith.constant 0 : index
    %c0_16 = arith.constant 0 : index
    %28 = vector.load %arg3[%c0, %c0_16] : memref<256x128xf32, #tpu.memory_space<vmem>>, vector<256x128xf32>
    %c0_17 = arith.constant 0 : index
    %c0_18 = arith.constant 0 : index
    %29 = vector.load %arg5[%c0_17, %c0_18] : memref<7x128xf32, #tpu.memory_space<vmem>>, vector<7x128xf32>
    %c0_19 = arith.constant 0 : index
    %c0_20 = arith.constant 0 : index
    %30 = vector.load %arg2[%c0_19, %c0_20] : memref<8x128xf32, #tpu.memory_space<vmem>>, vector<8x128xf32>
    %cst = arith.constant 0.000000e+00 : f32
    %31 = vector.broadcast %cst : f32 to vector<8x128xf32>
    %32 = arith.select %15, %30, %31 : vector<8x128xf32>
    %c0_21 = arith.constant 0 : index
    %c0_22 = arith.constant 0 : index
    %33 = vector.load %arg13[%c0_21, %c0_22] : memref<272x128xf32, #tpu.memory_space<vmem>>, vector<8x128xf32>
    tpu.vector_store %arg13[%c0_21, %c0_22], %32 {strides = array<i32>} : memref<272x128xf32, #tpu.memory_space<vmem>>, vector<8x128xf32>,
    %c8 = arith.constant 8 : index
    %c0_23 = arith.constant 0 : index
    %34 = vector.load %arg13[%c8, %c0_23] : memref<272x128xf32, #tpu.memory_space<vmem>>, vector<256x128xf32>
    tpu.vector_store %arg13[%c8, %c0_23], %28 {strides = array<i32>} : memref<272x128xf32, #tpu.memory_space<vmem>>, vector<256x128xf32>,
    %c0_24 = arith.constant 0 : index
    %c0_25 = arith.constant 0 : index
    %35 = vector.load %arg4[%c0_24, %c0_25] : memref<8x128xf32, #tpu.memory_space<vmem>>, vector<8x128xf32>
    %cst_26 = arith.constant 0.000000e+00 : f32
    %36 = vector.broadcast %cst_26 : f32 to vector<8x128xf32>
    %37 = arith.select %27, %35, %36 : vector<8x128xf32>
    %c264 = arith.constant 264 : index
    %c0_27 = arith.constant 0 : index
    %38 = vector.load %arg13[%c264, %c0_27] : memref<272x128xf32, #tpu.memory_space<vmem>>, vector<8x128xf32>
    tpu.vector_store %arg13[%c264, %c0_27], %37 {strides = array<i32>} : memref<272x128xf32, #tpu.memory_space<vmem>>, vector<8x128xf32>,
    %39 = vector.extract_strided_slice %29 {offsets = [3, 0], sizes = [1, 128], strides = [1, 1]} : vector<7x128xf32> to vector<1x128xf32>
    %40 = vector.broadcast %39 : vector<1x128xf32> to vector<256x128xf32>
    %41 = arith.mulf %28, %40 : vector<256x128xf32>
    %c0_28 = arith.constant 0 : index
    %c0_29 = arith.constant 0 : index
    %42 = vector.load %arg6[%c0_28, %c0_29] : memref<1x128xf32, #tpu.memory_space<vmem>>, vector<1x128xf32>
    %43 = vector.broadcast %42 : vector<1x128xf32> to vector<256x128xf32>
    %44 = arith.addf %41, %43 : vector<256x128xf32>
    %c5 = arith.constant 5 : index
    %c0_30 = arith.constant 0 : index
    %45 = vector.load %arg13[%c5, %c0_30] : memref<272x128xf32, #tpu.memory_space<vmem>>, vector<256x128xf32>
    %46 = vector.extract_strided_slice %29 {offsets = [0, 0], sizes = [1, 128], strides = [1, 1]} : vector<7x128xf32> to vector<1x128xf32>
    %47 = vector.broadcast %46 : vector<1x128xf32> to vector<256x128xf32>
    %48 = arith.mulf %45, %47 : vector<256x128xf32>
    %49 = arith.addf %44, %48 : vector<256x128xf32>
    %c6 = arith.constant 6 : index
    %c0_31 = arith.constant 0 : index
    %50 = vector.load %arg13[%c6, %c0_31] : memref<272x128xf32, #tpu.memory_space<vmem>>, vector<256x128xf32>
    %51 = vector.extract_strided_slice %29 {offsets = [1, 0], sizes = [1, 128], strides = [1, 1]} : vector<7x128xf32> to vector<1x128xf32>
    %52 = vector.broadcast %51 : vector<1x128xf32> to vector<256x128xf32>
    %53 = arith.mulf %50, %52 : vector<256x128xf32>
    %54 = arith.addf %49, %53 : vector<256x128xf32>
    %c7 = arith.constant 7 : index
    %c0_32 = arith.constant 0 : index
    %55 = vector.load %arg13[%c7, %c0_32] : memref<272x128xf32, #tpu.memory_space<vmem>>, vector<256x128xf32>
    %56 = vector.extract_strided_slice %29 {offsets = [2, 0], sizes = [1, 128], strides = [1, 1]} : vector<7x128xf32> to vector<1x128xf32>
    %57 = vector.broadcast %56 : vector<1x128xf32> to vector<256x128xf32>
    %58 = arith.mulf %55, %57 : vector<256x128xf32>
    %59 = arith.addf %54, %58 : vector<256x128xf32>
    %c9 = arith.constant 9 : index
    %c0_33 = arith.constant 0 : index
    %60 = vector.load %arg13[%c9, %c0_33] : memref<272x128xf32, #tpu.memory_space<vmem>>, vector<256x128xf32>
    %61 = vector.extract_strided_slice %29 {offsets = [4, 0], sizes = [1, 128], strides = [1, 1]} : vector<7x128xf32> to vector<1x128xf32>
    %62 = vector.broadcast %61 : vector<1x128xf32> to vector<256x128xf32>
    %63 = arith.mulf %60, %62 : vector<256x128xf32>
    %64 = arith.addf %59, %63 : vector<256x128xf32>
    %c10 = arith.constant 10 : index
    %c0_34 = arith.constant 0 : index
    %65 = vector.load %arg13[%c10, %c0_34] : memref<272x128xf32, #tpu.memory_space<vmem>>, vector<256x128xf32>
    %66 = vector.extract_strided_slice %29 {offsets = [5, 0], sizes = [1, 128], strides = [1, 1]} : vector<7x128xf32> to vector<1x128xf32>
    %67 = vector.broadcast %66 : vector<1x128xf32> to vector<256x128xf32>
    %68 = arith.mulf %65, %67 : vector<256x128xf32>
    %69 = arith.addf %64, %68 : vector<256x128xf32>
    %c11 = arith.constant 11 : index
    %c0_35 = arith.constant 0 : index
    %70 = vector.load %arg13[%c11, %c0_35] : memref<272x128xf32, #tpu.memory_space<vmem>>, vector<256x128xf32>
    %71 = vector.extract_strided_slice %29 {offsets = [6, 0], sizes = [1, 128], strides = [1, 1]} : vector<7x128xf32> to vector<1x128xf32>
    %72 = vector.broadcast %71 : vector<1x128xf32> to vector<256x128xf32>
    %73 = arith.mulf %70, %72 : vector<256x128xf32>
    %74 = arith.addf %69, %73 : vector<256x128xf32>
    %cst_36 = arith.constant dense<0.000000e+00> : vector<256xf32>
    %75 = vector.multi_reduction <add>, %74, %cst_36 [1] : vector<256x128xf32> to vector<256xf32>
    %76 = vector.shape_cast %75 : vector<256xf32> to vector<256x1xf32>
    %cst_37 = arith.constant 1.280000e+02 : f32
    %77 = vector.broadcast %cst_37 : f32 to vector<256x1xf32>
    %78 = arith.divf %76, %77 : vector<256x1xf32>
    %79 = vector.broadcast %78 : vector<256x1xf32> to vector<256x128xf32>
    %80 = arith.subf %74, %79 : vector<256x128xf32>
    %81 = arith.mulf %80, %80 : vector<256x128xf32>
    %cst_38 = arith.constant dense<0.000000e+00> : vector<256xf32>
    %82 = vector.multi_reduction <add>, %81, %cst_38 [1] : vector<256x128xf32> to vector<256xf32>
    %83 = vector.shape_cast %82 : vector<256xf32> to vector<256x1xf32>
    %cst_39 = arith.constant 1.280000e+02 : f32
    %84 = vector.broadcast %cst_39 : f32 to vector<256x1xf32>
    %85 = arith.divf %83, %84 : vector<256x1xf32>
    %86 = vector.broadcast %78 : vector<256x1xf32> to vector<256x128xf32>
    %87 = arith.subf %74, %86 : vector<256x128xf32>
    %cst_40 = arith.constant 9.99999997E-7 : f32
    %88 = vector.broadcast %cst_40 : f32 to vector<256x1xf32>
    %89 = arith.addf %85, %88 : vector<256x1xf32>
    %90 = math.rsqrt %89 : vector<256x1xf32>
    %91 = vector.broadcast %90 : vector<256x1xf32> to vector<256x128xf32>
    %92 = arith.mulf %87, %91 : vector<256x128xf32>
    %c0_41 = arith.constant 0 : index
    %c0_42 = arith.constant 0 : index
    %93 = vector.load %arg7[%c0_41, %c0_42] : memref<1x128xf32, #tpu.memory_space<vmem>>, vector<1x128xf32>
    %94 = vector.broadcast %93 : vector<1x128xf32> to vector<256x128xf32>
    %95 = arith.mulf %92, %94 : vector<256x128xf32>
    %c0_43 = arith.constant 0 : index
    %c0_44 = arith.constant 0 : index
    %96 = vector.load %arg8[%c0_43, %c0_44] : memref<1x128xf32, #tpu.memory_space<vmem>>, vector<1x128xf32>
    %97 = vector.broadcast %96 : vector<1x128xf32> to vector<256x128xf32>
    %98 = arith.addf %95, %97 : vector<256x128xf32>
    %99 = arith.truncf %98 : vector<256x128xf32> to vector<256x128xbf16>
    %c0_45 = arith.constant 0 : index
    %c0_46 = arith.constant 0 : index
    %100 = vector.load %arg9[%c0_45, %c0_46] : memref<128x512xbf16, #tpu.memory_space<vmem>>, vector<128x512xbf16>
    %cst_47 = arith.constant dense<0.000000e+00> : vector<256x512xf32>
    %101 = tpu.matmul %99, %100, %cst_47 {dimension_numbers = #tpu.dot_dimension_numbers<[1], [0], [0], [1], [0, 0, 1, 1], [], []>} : vector<256x128xbf16>, vector<128x512xbf16>, vector<256x512xf32> -> vector<256x512xf32>
    %c0_48 = arith.constant 0 : index
    %c0_49 = arith.constant 0 : index
    %102 = vector.load %arg10[%c0_48, %c0_49] : memref<1x512xf32, #tpu.memory_space<vmem>>, vector<1x512xf32>
    %103 = vector.broadcast %102 : vector<1x512xf32> to vector<256x512xf32>
    %104 = arith.addf %101, %103 : vector<256x512xf32>
    %cst_50 = arith.constant 5.000000e-01 : f32
    %105 = vector.broadcast %cst_50 : f32 to vector<256x512xf32>
    %106 = arith.mulf %105, %104 : vector<256x512xf32>
    %cst_51 = arith.constant 0.707106769 : f32
    %107 = vector.broadcast %cst_51 : f32 to vector<256x512xf32>
    %108 = arith.mulf %104, %107 : vector<256x512xf32>
    %109 = math.erf %108 : vector<256x512xf32>
    %cst_52 = arith.constant 1.000000e+00 : f32
    %110 = vector.broadcast %cst_52 : f32 to vector<256x512xf32>
    %111 = arith.addf %110, %109 : vector<256x512xf32>
    %112 = arith.mulf %106, %111 : vector<256x512xf32>
    %c0_53 = arith.constant 0 : index
    %c0_54 = arith.constant 0 : index
    %113 = vector.load %arg12[%c0_53, %c0_54] : memref<8x512xf32, #tpu.memory_space<vmem>>, vector<8x512xf32>
    %114 = arith.mulf %112, %112 : vector<256x512xf32>
    %cst_55 = arith.constant dense<0.000000e+00> : vector<512xf32>
    %115 = vector.multi_reduction <add>, %114, %cst_55 [0] : vector<256x512xf32> to vector<512xf32>
    %116 = vector.shape_cast %115 : vector<512xf32> to vector<1x512xf32>
    %117 = vector.broadcast %116 : vector<1x512xf32> to vector<8x512xf32>
    %118 = arith.addf %113, %117 : vector<8x512xf32>
    %c0_56 = arith.constant 0 : index
    %c0_57 = arith.constant 0 : index
    %119 = vector.load %arg12[%c0_56, %c0_57] : memref<8x512xf32, #tpu.memory_space<vmem>>, vector<8x512xf32>
    tpu.vector_store %arg12[%c0_56, %c0_57], %118 {strides = array<i32>} : memref<8x512xf32, #tpu.memory_space<vmem>>, vector<8x512xf32>,
    %120 = arith.truncf %112 : vector<256x512xf32> to vector<256x512xbf16>
    %c0_58 = arith.constant 0 : index
    %c0_59 = arith.constant 0 : index
    %121 = vector.load %arg11[%c0_58, %c0_59] : memref<256x512xbf16, #tpu.memory_space<vmem>>, vector<256x512xbf16>
    tpu.vector_store %arg11[%c0_58, %c0_59], %120 {strides = array<i32>} : memref<256x512xbf16, #tpu.memory_space<vmem>>, vector<256x512xbf16>,
    return
  }
  func.func @transform_0(%arg0: i32, %arg1: i32) -> (i32, i32) {
    %c1_i32 = arith.constant 1 : i32
    %0 = arith.muli %arg0, %c1_i32 : i32
    %1 = arith.addi %0, %arg1 : i32
    %c32_i32 = arith.constant 32 : i32
    %2 = arith.muli %1, %c32_i32 : i32
    %c1_i32_0 = arith.constant 1 : i32
    %3 = arith.subi %2, %c1_i32_0 : i32
    %c0_i32 = arith.constant 0 : i32
    %4 = arith.maxsi %3, %c0_i32 : i32
    %c0_i32_1 = arith.constant 0 : i32
    %c0_i32_2 = arith.constant 0 : i32
    return %4, %c0_i32_1 : i32, i32
  }
  func.func @transform_1(%arg0: i32, %arg1: i32) -> (i32, i32) {
    %c1_i32 = arith.constant 1 : i32
    %0 = arith.muli %arg0, %c1_i32 : i32
    %1 = arith.addi %0, %arg1 : i32
    %c0_i32 = arith.constant 0 : i32
    %c0_i32_0 = arith.constant 0 : i32
    return %1, %c0_i32 : i32, i32
  }
  func.func @transform_2(%arg0: i32, %arg1: i32) -> (i32, i32) {
    %c1_i32 = arith.constant 1 : i32
    %0 = arith.muli %arg0, %c1_i32 : i32
    %1 = arith.addi %0, %arg1 : i32
    %c1_i32_0 = arith.constant 1 : i32
    %2 = arith.addi %1, %c1_i32_0 : i32
    %c32_i32 = arith.constant 32 : i32
    %3 = arith.muli %2, %c32_i32 : i32
    %c63_i32 = arith.constant 63 : i32
    %4 = arith.minsi %3, %c63_i32 : i32
    %c0_i32 = arith.constant 0 : i32
    %c0_i32_1 = arith.constant 0 : i32
    return %4, %c0_i32 : i32, i32
  }
  func.func @transform_3(%arg0: i32, %arg1: i32) -> (i32, i32) {
    %c0_i32 = arith.constant 0 : i32
    %c0_i32_0 = arith.constant 0 : i32
    %c0_i32_1 = arith.constant 0 : i32
    return %c0_i32, %c0_i32_0 : i32, i32
  }
  func.func @transform_4(%arg0: i32, %arg1: i32) -> (i32, i32) {
    %c0_i32 = arith.constant 0 : i32
    %c0_i32_0 = arith.constant 0 : i32
    %c0_i32_1 = arith.constant 0 : i32
    return %c0_i32, %c0_i32_0 : i32, i32
  }
  func.func @transform_5(%arg0: i32, %arg1: i32) -> (i32, i32) {
    %c0_i32 = arith.constant 0 : i32
    %c0_i32_0 = arith.constant 0 : i32
    %c0_i32_1 = arith.constant 0 : i32
    return %c0_i32, %c0_i32_0 : i32, i32
  }
  func.func @transform_6(%arg0: i32, %arg1: i32) -> (i32, i32) {
    %c0_i32 = arith.constant 0 : i32
    %c0_i32_0 = arith.constant 0 : i32
    %c0_i32_1 = arith.constant 0 : i32
    return %c0_i32, %c0_i32_0 : i32, i32
  }
  func.func @transform_7(%arg0: i32, %arg1: i32) -> (i32, i32) {
    %c0_i32 = arith.constant 0 : i32
    %c0_i32_0 = arith.constant 0 : i32
    %c0_i32_1 = arith.constant 0 : i32
    return %c0_i32, %c0_i32_0 : i32, i32
  }
  func.func @transform_8(%arg0: i32, %arg1: i32) -> (i32, i32) {
    %c0_i32 = arith.constant 0 : i32
    %c0_i32_0 = arith.constant 0 : i32
    %c0_i32_1 = arith.constant 0 : i32
    return %c0_i32, %c0_i32_0 : i32, i32
  }
  func.func @transform_9(%arg0: i32, %arg1: i32) -> (i32, i32) {
    %c1_i32 = arith.constant 1 : i32
    %0 = arith.muli %arg0, %c1_i32 : i32
    %1 = arith.addi %0, %arg1 : i32
    %c0_i32 = arith.constant 0 : i32
    %c0_i32_0 = arith.constant 0 : i32
    return %1, %c0_i32 : i32, i32
  }
  func.func @transform_10(%arg0: i32, %arg1: i32) -> (i32, i32) {
    %c0_i32 = arith.constant 0 : i32
    %c0_i32_0 = arith.constant 0 : i32
    return %arg0, %c0_i32 : i32, i32
  }
}

module attributes {stable_mosaic.version = 11 : i64} {
  func.func @_pass2_kernel(%arg0: i32, %arg1: memref<256x512xbf16, #tpu.memory_space<vmem>>, %arg2: memref<256x128xf32, #tpu.memory_space<vmem>>, %arg3: memref<1x512xf32, #tpu.memory_space<vmem>>, %arg4: memref<1x512xf32, #tpu.memory_space<vmem>>, %arg5: memref<512x128xbf16, #tpu.memory_space<vmem>>, %arg6: memref<1x128xf32, #tpu.memory_space<vmem>>, %arg7: memref<256x128xf32, #tpu.memory_space<vmem>>) attributes {dimension_semantics = [#tpu.dimension_semantics<parallel>], iteration_bounds = array<i64: 2>, scalar_prefetch = 0 : i64, scratch_operands = 0 : i64, tpu.core_type = #tpu.core_type<tc>, window_params = [{transform_indices = @transform_0, window_bounds = array<i64: 256, 512>}, {transform_indices = @transform_1, window_bounds = array<i64: 256, 128>}, {pipeline_mode = #tpu.pipeline_mode<synchronous>, transform_indices = @transform_2, window_bounds = array<i64: 1, 512>}, {pipeline_mode = #tpu.pipeline_mode<synchronous>, transform_indices = @transform_3, window_bounds = array<i64: 1, 512>}, {pipeline_mode = #tpu.pipeline_mode<synchronous>, transform_indices = @transform_4, window_bounds = array<i64: 512, 128>}, {pipeline_mode = #tpu.pipeline_mode<synchronous>, transform_indices = @transform_5, window_bounds = array<i64: 1, 128>}, {transform_indices = @transform_6, window_bounds = array<i64: 256, 128>}]} {
    %c0 = arith.constant 0 : index
    %c0_0 = arith.constant 0 : index
    %0 = vector.load %arg1[%c0, %c0_0] : memref<256x512xbf16, #tpu.memory_space<vmem>>, vector<256x512xbf16>
    %1 = arith.extf %0 : vector<256x512xbf16> to vector<256x512xf32>
    %c0_1 = arith.constant 0 : index
    %c0_2 = arith.constant 0 : index
    %2 = vector.load %arg3[%c0_1, %c0_2] : memref<1x512xf32, #tpu.memory_space<vmem>>, vector<1x512xf32>
    %3 = vector.broadcast %2 : vector<1x512xf32> to vector<256x512xf32>
    %4 = arith.mulf %1, %3 : vector<256x512xf32>
    %c0_3 = arith.constant 0 : index
    %c0_4 = arith.constant 0 : index
    %5 = vector.load %arg4[%c0_3, %c0_4] : memref<1x512xf32, #tpu.memory_space<vmem>>, vector<1x512xf32>
    %6 = vector.broadcast %5 : vector<1x512xf32> to vector<256x512xf32>
    %7 = arith.addf %4, %6 : vector<256x512xf32>
    %8 = arith.truncf %7 : vector<256x512xf32> to vector<256x512xbf16>
    %c0_5 = arith.constant 0 : index
    %c0_6 = arith.constant 0 : index
    %9 = vector.load %arg5[%c0_5, %c0_6] : memref<512x128xbf16, #tpu.memory_space<vmem>>, vector<512x128xbf16>
    %cst = arith.constant dense<0.000000e+00> : vector<256x128xf32>
    %10 = tpu.matmul %8, %9, %cst {dimension_numbers = #tpu.dot_dimension_numbers<[1], [0], [0], [1], [0, 0, 1, 1], [], []>} : vector<256x512xbf16>, vector<512x128xbf16>, vector<256x128xf32> -> vector<256x128xf32>
    %c0_7 = arith.constant 0 : index
    %c0_8 = arith.constant 0 : index
    %11 = vector.load %arg6[%c0_7, %c0_8] : memref<1x128xf32, #tpu.memory_space<vmem>>, vector<1x128xf32>
    %12 = vector.broadcast %11 : vector<1x128xf32> to vector<256x128xf32>
    %13 = arith.addf %10, %12 : vector<256x128xf32>
    %c0_9 = arith.constant 0 : index
    %c0_10 = arith.constant 0 : index
    %14 = vector.load %arg2[%c0_9, %c0_10] : memref<256x128xf32, #tpu.memory_space<vmem>>, vector<256x128xf32>
    %15 = arith.addf %14, %13 : vector<256x128xf32>
    %c0_11 = arith.constant 0 : index
    %c0_12 = arith.constant 0 : index
    %16 = vector.load %arg7[%c0_11, %c0_12] : memref<256x128xf32, #tpu.memory_space<vmem>>, vector<256x128xf32>
    tpu.vector_store %arg7[%c0_11, %c0_12], %15 {strides = array<i32>} : memref<256x128xf32, #tpu.memory_space<vmem>>, vector<256x128xf32>,
    return
  }
  func.func @transform_0(%arg0: i32) -> (i32, i32) {
    %c0_i32 = arith.constant 0 : i32
    %c0_i32_0 = arith.constant 0 : i32
    return %arg0, %c0_i32 : i32, i32
  }
  func.func @transform_1(%arg0: i32) -> (i32, i32) {
    %c0_i32 = arith.constant 0 : i32
    %c0_i32_0 = arith.constant 0 : i32
    return %arg0, %c0_i32 : i32, i32
  }
  func.func @transform_2(%arg0: i32) -> (i32, i32) {
    %c0_i32 = arith.constant 0 : i32
    %c0_i32_0 = arith.constant 0 : i32
    %c0_i32_1 = arith.constant 0 : i32
    return %c0_i32, %c0_i32_0 : i32, i32
  }
  func.func @transform_3(%arg0: i32) -> (i32, i32) {
    %c0_i32 = arith.constant 0 : i32
    %c0_i32_0 = arith.constant 0 : i32
    %c0_i32_1 = arith.constant 0 : i32
    return %c0_i32, %c0_i32_0 : i32, i32
  }
  func.func @transform_4(%arg0: i32) -> (i32, i32) {
    %c0_i32 = arith.constant 0 : i32
    %c0_i32_0 = arith.constant 0 : i32
    %c0_i32_1 = arith.constant 0 : i32
    return %c0_i32, %c0_i32_0 : i32, i32
  }
  func.func @transform_5(%arg0: i32) -> (i32, i32) {
    %c0_i32 = arith.constant 0 : i32
    %c0_i32_0 = arith.constant 0 : i32
    %c0_i32_1 = arith.constant 0 : i32
    return %c0_i32, %c0_i32_0 : i32, i32
  }
  func.func @transform_6(%arg0: i32) -> (i32, i32) {
    %c0_i32 = arith.constant 0 : i32
    %c0_i32_0 = arith.constant 0 : i32
    return %arg0, %c0_i32 : i32, i32
  }
}

</mosaic_0001>

<bundles_post_ra>
// kernel: sparse_block.3
= control target key start
LH: loop header
LB: loop body
LE: loop exit
PB: predicated region body
PF: predicated region fallthrough
CT: control target
= control target key end

     0   :  { %11 = vsyncpa [#allocation3], 0  ;;  %s2712_s0 = inlined_call_operand.vmem [shape: bf16[512,512], index: 0, kind: input, shape index: {}]   ;;  %s2713_s1 = inlined_call_operand.vmem [shape: f32[512,128], index: 1, kind: input, shape index: {}]   ;;  %s2714_s2 = inlined_call_operand.vmem [shape: f32[1,512], index: 2, kind: input, shape index: {}]   ;;  %s2715_s3 = inlined_call_operand.vmem [shape: f32[1,512], index: 3, kind: input, shape index: {}]   ;;  %s2716_s4 = inlined_call_operand.vmem [shape: bf16[512,128], index: 4, kind: input, shape index: {}]   ;;  %s2717_s5 = inlined_call_operand.vmem [shape: f32[1,128], index: 5, kind: input, shape index: {}]   ;;  %s2718_s6 = inlined_call_operand.hbm [shape: f32[512,128], index: 6, kind: output, shape index: {}]  }
   0x1   :  { %13 = vsyncpa [#allocation3 + $0x1], 0  ;;  %s2053_s21 = smov 0   ;;  %s2055_s22 = smov 0  }
   0x2   :  { %s2057_s23 = smov 0   ;;  %s2059_s24 = smov 0  }
   0x3 LB: > { %s2074_s25 = sadd.s32 4294967295, %s2013_s24   ;;  %s1604_s26 = sadd.s32 4294967294, %s2013_s24   ;;  %s2013_s24 = sphi %s2059_s24, %s2724_s24   ;;  %s2009_s23 = sphi %s2057_s23, %s2723_s23   ;;  %s2005_s22 = sphi %s2055_s22, %s2722_s22   ;;  %s2001_s21 = sphi %s2053_s21, %s2721_s21  }
   0x4   : > { %s2078_s27 = sadd.s32 1, %s2013_s24   ;;  %s162_s28 = sadd.s32 1, %s2009_s23 }
   0x5   : > { %s159_s29 = ssub.s32 %s2013_s24, %s2078_s27  ;;  %p172_p0 = scmp.ne.s32.totalorder %s2009_s23, %s2005_s22 }
   0x6   : > { %p160_p1 = scmp.eq.s32.totalorder %s159_s29, 0  ;;  %p173_p2 = scmp.eq.s32.totalorder %s2074_s25, 1 }
   0x7   : > { %p178_p3 = scmp.ne.s32.totalorder %s2005_s22, %s2001_s21  ;;  %p179_p4 = scmp.eq.s32.totalorder %s1604_s26, 1 }
   0x8   : > { %s2089_s30 = scalar_select %p160_p1, %s2009_s23, %s162_s28  }
   0x9   : > { %p2091_p5 = por %p173_p2, %p172_p0  ;;  %p2095_p6 = por %p179_p4, %p178_p3 }
   0xa   : > { %p1607_p7 = scmp.ge.s32.totalorder %s2013_s24, 1  ;;  %p228_p8 = scmp.lt.s32.totalorder %s2013_s24, 3 }
   0xc   : > { %p229_p9 = pnand %p1607_p7, %p228_p8 }
   0xd   : > { %v1919_v0 = vld [vmem:[%s2716_s4 + $0x40] sm:$0xff] (!%p229_p9)   ;;  %v1923_v4 = vld [vmem:[%s2716_s4 + $0x48] sm:$0xff] (!%p229_p9)   ;;  %v1927_v8 = vld [vmem:[%s2716_s4 + $0x50] sm:$0xff] (!%p229_p9)   ;;  %s1609_s11 = sshll.u32 (!%p229_p9), %s2074_s25, 5  ;;  %v473_v22 = vlaneseq (!%p229_p9)  ;;  %s261_s13 = sand.u32 (!%p229_p9), 1, %s2005_s22  }
   0xe   : > { %232 = sbr.rel (%p229_p9) target bundleno = 405 (0x195), region = 44  ;;  %v1920_v1 = vld [vmem:[%s2716_s4 + $0xc0] sm:$0xff] (!%p229_p9)   ;;  %1654 = vmatprep.subr.bf16.mxu0 (!%p229_p9), %v1919_v0  ;;  %v1924_v5 = vld [vmem:[%s2716_s4 + $0xc8] sm:$0xff] (!%p229_p9)   ;;  %v1928_v9 = vld [vmem:[%s2716_s4 + $0xd0] sm:$0xff] (!%p229_p9)   ;;  %p265_p10 = scmp.lt.s32.totalorder (!%p229_p9), %s1609_s11, 63 }
   0xf   : > { %v1921_v2 = vld [vmem:[%s2716_s4] sm:$0xff] (!%p229_p9)   ;;  %1766 = vmatprep.subr.bf16.mxu1 (!%p229_p9), %v1920_v1  ;;  %v1925_v6 = vld [vmem:[%s2716_s4 + $0x8] sm:$0xff] (!%p229_p9)   ;;  %v1929_v10 = vld [vmem:[%s2716_s4 + $0x10] sm:$0xff] (!%p229_p9)   ;;  %v474_v27 = vshrl.u32 (!%p229_p9), %v473_v22, 7  ;;  %s1653_s18 = sshll.u32 (!%p229_p9), %s2074_s25, 12  ;;  %s2671_s29 = scalar_lea.sflag (!%p229_p9), [#allocation3], %s261_s13 }
  0x10   : > { %v1922_v3 = vld [vmem:[%s2716_s4 + $0x80] sm:$0xff] (!%p229_p9)   ;;  %1655 = vmatpush3.bf16.msra.mxu0 (!%p229_p9), %v1921_v2  ;;  %v1926_v7 = vld [vmem:[%s2716_s4 + $0x88] sm:$0xff] (!%p229_p9)   ;;  %v1930_v11 = vld [vmem:[%s2716_s4 + $0x90] sm:$0xff] (!%p229_p9)   ;;  %s2663_s28 = scalar_lea.hbm (!%p229_p9), %s2718_s6, %s1653_s18 }
  0x11   : > { %1767 = vmatpush3.bf16.msra.mxu1 (!%p229_p9), %v1922_v3  ;;  %1656 = vmatprep.subr.bf16.mxu0 (!%p229_p9), %v1923_v4  ;;  %v1931_v12 = vld [vmem:[%s2716_s4 + $0x58] sm:$0xff] (!%p229_p9)   ;;  %v1935_v16 = vld [vmem:[%s2716_s4 + $0x60] sm:$0xff] (!%p229_p9)   ;;  %v1939_v20 = vld [vmem:[%s2716_s4 + $0x68] sm:$0xff] (!%p229_p9)   ;;  %v479_v33 = vsub.s32 (!%p229_p9), 1, %v474_v27  ;;  %v487_v35 = vsub.s32 (!%p229_p9), 3, %v474_v27  ;;  %v475_v39 = vsub.s32 (!%p229_p9), 0, %v474_v27 }
  0x12   : > { %1768 = vmatprep.subr.bf16.mxu1 (!%p229_p9), %v1924_v5  ;;  %v1932_v13 = vld [vmem:[%s2716_s4 + $0xd8] sm:$0xff] (!%p229_p9)   ;;  %v1936_v17 = vld [vmem:[%s2716_s4 + $0xe0] sm:$0xff] (!%p229_p9)   ;;  %v1940_v21 = vld [vmem:[%s2716_s4 + $0xe8] sm:$0xff] (!%p229_p9)   ;;  %v483_v40 = vsub.s32 (!%p229_p9), 2, %v474_v27 }
  0x13   : > { %v1933_v14 = vld [vmem:[%s2716_s4 + $0x18] sm:$0xff] (!%p229_p9)   ;;  %v1937_v18 = vld [vmem:[%s2716_s4 + $0x20] sm:$0xff] (!%p229_p9)   ;;  %v1941_v23 = vld [vmem:[%s2716_s4 + $0x28] sm:$0xff] (!%p229_p9)  }
  0x14   : > { %1657 = vmatpush3.bf16.msra.mxu0 (!%p229_p9), %v1925_v6  ;;  %v1934_v15 = vld [vmem:[%s2716_s4 + $0x98] sm:$0xff] (!%p229_p9)   ;;  %v1938_v19 = vld [vmem:[%s2716_s4 + $0xa0] sm:$0xff] (!%p229_p9)   ;;  %v1942_v24 = vld [vmem:[%s2716_s4 + $0xa8] sm:$0xff] (!%p229_p9)  }
  0x15   : > { %1769 = vmatpush3.bf16.msra.mxu1 %v1926_v7  ;;  %1658 = vmatprep.subr.bf16.mxu0 %v1927_v8  ;;  %s2726_s11 = smov (!%p265_p10, %s1609_s11), 63  ;;  %v1943_v25 = vld [vmem:[%s2716_s4 + $0x70] sm:$0xff]   ;;  %v1947_v30 = vld [vmem:[%s2716_s4 + $0x78] sm:$0xff]   ;;  %v471_v38 = vld [vmem:[%s2714_s2] sm:$0xf] }
  0x16   : > { %1770 = vmatprep.subr.bf16.mxu1 %v1928_v9  ;;  %v1944_v26 = vld [vmem:[%s2716_s4 + $0xf0] sm:$0xff]   ;;  %s1652_s20 = sshll.u32 %s2726_s11, 4  ;;  %v1948_v31 = vld [vmem:[%s2716_s4 + $0xf8] sm:$0xff]   ;;  %v621_v45 = vld [vmem:[%s2715_s3] sm:$0xf]  ;;  %v2216_v48 = vrot.slane %v471_v38, %v479_v33  ;;  %v2220_v54 = vrot.slane %v471_v38, %v487_v35  ;;  %v2226_v58 = vrot.slane %v471_v38, %v475_v39  ;;  %v2232_v62 = vrot.slane %v471_v38, %v483_v40  ;;  %s1613_s9 = sshll.u32 %s2726_s11, 3 }
  0x17   : > { %v1945_v28 = vld [vmem:[%s2716_s4 + $0x30] sm:$0xff]   ;;  %s2198_s15 = scalar_lea.vmem %s2712_s0, %s1652_s20  ;;  %v1949_v32 = vld [vmem:[%s2716_s4 + $0x38] sm:$0xff]   ;;  %v2218_v49 = vrot.slane %v621_v45, %v479_v33  ;;  %v2222_v55 = vrot.slane %v621_v45, %v487_v35  ;;  %v2228_v59 = vrot.slane %v621_v45, %v475_v39  ;;  %v2234_v63 = vrot.slane %v621_v45, %v483_v40  ;;  %s2558_s16 = scalar_lea.vmem %s2713_s1, %s1613_s9 }
  0x18   : > { %1659 = vmatpush3.bf16.msra.mxu0 %v1929_v10  ;;  %v1946_v29 = vld [vmem:[%s2716_s4 + $0xb0] sm:$0xff]   ;;  %v1950_v34 = vld [vmem:[%s2716_s4 + $0xb8] sm:$0xff]   ;;  %v279_v36 = vld [vmem:[%s2198_s15] sm:$0xff]  ;;  %s1608_s11 = sshll.u32 %s261_s13, 8  ;;  %s2015_s9 = smov [#allocation2]  }
  0x19   : > { %1771 = vmatpush3.bf16.msra.mxu1 %v1930_v11  ;;  %1660 = vmatprep.subr.bf16.mxu0 %v1931_v12  ;;  %v281_v37 = vld [vmem:[%s2198_s15 + $0x10] sm:$0xff]  ;;  %v343_v41 = vunpack.c.l.bf16 %v279_v36  ;;  %v344_v42 = vunpack.c.h.bf16 %v279_v36  ;;  %v280_v46 = vld [vmem:[%s2198_s15 + $0x8] sm:$0xff]  ;;  %v282_v47 = vld [vmem:[%s2198_s15 + $0x18] sm:$0xff]  ;;  %s2566_s17 = scalar_lea.vmem [#allocation2], %s1608_s11  ;;  %s1955_s10 = sshll.u32 %s2015_s9, 4  ;;  %s1956_s10 = int_to_ptr.vmem [resolvable:$false] %s1955_s10 }
  0x1a   : > { %1772 = vmatprep.subr.bf16.mxu1 %v1932_v13  ;;  %v347_v43 = vunpack.c.l.bf16 %v281_v37  ;;  %v348_v44 = vunpack.c.h.bf16 %v281_v37  ;;  %v345_v50 = vunpack.c.l.bf16 %v280_v46  ;;  %v346_v51 = vunpack.c.h.bf16 %v280_v46  ;;  %v283_v0 = vld [vmem:[%s2198_s15 + $0x20] sm:$0xff]  ;;  %v285_v5 = vld [vmem:[%s2198_s15 + $0x30] sm:$0xff]  ;;  %v284_v10 = vld [vmem:[%s2198_s15 + $0x28] sm:$0xff]  ;;  %s1530_s19 = sshll.u32 %s2566_s17, 4  ;;  %s1957_s12 = scalar_lea.vmem %s1956_s10, 8192  ;;  %s2665_s19 = int_to_ptr.vmem [resolvable:$true] %s1530_s19 }
  0x1b   : > { %v349_v52 = vunpack.c.l.bf16 %v282_v47  ;;  %v350_v53 = vunpack.c.h.bf16 %v282_v47  ;;  %v494_v56 = vmul.f32 %v2216_v48, %v344_v42  ;;  %v493_v3 = vmul.f32 %v2226_v58, %v343_v41  ;;  %v286_v11 = vld [vmem:[%s2198_s15 + $0x38] sm:$0xff]  ;;  %v289_v37 = vld [vmem:[%s2198_s15 + $0x50] sm:$0xff]  ;;  %v288_v42 = vld [vmem:[%s2198_s15 + $0x48] sm:$0xff]  ;;  %s1951_s25 = scalar_lea.vmem %s2665_s19, 4096  ;;  %p1958_p0 = scmp.lt.s32.totalorder %s2665_s19, %s1956_s10 }
  0x1c   : > { %1661 = vmatpush3.bf16.msra.mxu0 %v1933_v14  ;;  %v498_v57 = vmul.f32 %v2216_v48, %v348_v44  ;;  %v496_v60 = vmul.f32 %v2220_v54, %v346_v51  ;;  %v497_v4 = vmul.f32 %v2226_v58, %v347_v43  ;;  %v495_v8 = vmul.f32 %v2232_v62, %v345_v50  ;;  %v290_v43 = vld [vmem:[%s2198_s15 + $0x58] sm:$0xff]  ;;  %p1952_p11 = scmp.ne.s32.totalorder %s2665_s19, %s1951_s25  ;;  %p1959_p1 = scmp.lt.s32.totalorder %s1957_s12, %s1951_s25 }
  0x1d   : > { %1773 = vmatpush3.bf16.msra.mxu1 %v1934_v15  ;;  %1662 = vmatprep.subr.bf16.mxu0 %v1935_v16  ;;  %v500_v61 = vmul.f32 %v2220_v54, %v350_v53  ;;  %v644_v1 = vadd.f32 %v2218_v49, %v494_v56  ;;  %v499_v9 = vmul.f32 %v2232_v62, %v349_v52  ;;  %v352_v15 = vunpack.c.h.bf16 %v283_v0 }
  0x1e   : > { %1774 = vmatprep.subr.bf16.mxu1 %v1936_v17  ;;  %v648_v2 = vadd.f32 %v2218_v49, %v498_v57  ;;  %v646_v6 = vadd.f32 %v2222_v55, %v496_v60  ;;  %v643_v13 = vadd.f32 %v2228_v59, %v493_v3  ;;  %v647_v14 = vadd.f32 %v2228_v59, %v497_v4  ;;  %v291_v4 = vld [vmem:[%s2198_s15 + $0x60] sm:$0xff]  ;;  %p1953_p12 = pnand %p1952_p11, %p2091_p5  ;;  %p1960_p2 = por %p1959_p1, %p1958_p0 }
  0x1f   : > { %v650_v7 = vadd.f32 %v2222_v55, %v500_v61  ;;  %v645_v17 = vadd.f32 %v2234_v63, %v495_v8  ;;  %v354_v22 = vunpack.c.h.bf16 %v284_v10  ;;  %v355_v27 = vunpack.c.l.bf16 %v285_v5 }
  0x20   : > { %1663 = vmatpush3.bf16.msra.mxu0 %v1937_v18  ;;  %v772_v12 = vpack.c.bf16 %v648_v2, %v644_v1  ;;  %v649_v18 = vadd.f32 %v2234_v63, %v499_v9  ;;  %v357_v36 = vunpack.c.l.bf16 %v286_v11  ;;  %v364_v52 = vunpack.c.h.bf16 %v289_v37  ;;  %p1954_p13 = pneg %p1953_p12 }
  0x21   : > { %1775 = vmatpush3.bf16.msra.mxu1 %v1938_v19  ;;  %1664 = vmatprep.subr.bf16.mxu0 %v1939_v20  ;;  %v774_v16 = vpack.c.bf16 %v650_v7, %v646_v6  ;;  %v356_v19 = vunpack.c.h.bf16 %v285_v5  ;;  %v771_v20 = vpack.c.bf16 %v647_v14, %v643_v13  ;;  %v505_v35 = vmul.f32 %v2226_v58, %v355_v27  ;;  %v293_v13 = vld [vmem:[%s2198_s15 + $0x70] sm:$0xff] }
  0x22   : > { %1776 = vmatprep.subr.bf16.mxu1 %v1940_v21  ;;  %1130 = vmatprep.mubr.bf16.mxu0 %v772_v12  ;;  %v502_v21 = vmul.f32 %v2216_v48, %v352_v15  ;;  %v507_v47 = vmul.f32 %v2232_v62, %v357_v36  ;;  %v362_v60 = vunpack.c.h.bf16 %v288_v42  ;;  %v366_v61 = vunpack.c.h.bf16 %v290_v43  ;;  %v295_v36 = vld [vmem:[%s2198_s15 + $0x80] sm:$0xff]  ;;  %p1961_p3 = pnand %p1960_p2, %p1954_p13 }
  0x23   : > { %1291 = vmatprep.mubr.bf16.mxu1 %v774_v16  ;;  %v655_v46 = vadd.f32 %v2228_v59, %v505_v35  ;;  %v363_v3 = vunpack.c.l.bf16 %v289_v37  ;;  %v361_v8 = vunpack.c.l.bf16 %v288_v42  ;;  %v365_v12 = vunpack.c.l.bf16 %v290_v43 }
  0x24   : > { %1665 = vmatpush3.bf16.msra.mxu0 %v1941_v23  ;;  %v358_v23 = vunpack.c.h.bf16 %v286_v11  ;;  %v657_v57 = vadd.f32 %v2234_v63, %v507_v47  ;;  %v512_v6 = vmul.f32 %v2220_v54, %v362_v60  ;;  %v516_v7 = vmul.f32 %v2220_v54, %v366_v61 }
  0x25   : > { %1777 = vmatpush3.bf16.msra.mxu1 %v1942_v24  ;;  %1666 = vmatprep.subr.bf16.mxu0 %v1943_v25  ;;  %v773_v24 = vpack.c.bf16 %v649_v18, %v645_v17  ;;  %v506_v25 = vmul.f32 %v2216_v48, %v356_v19  ;;  %v513_v11 = vmul.f32 %v2226_v58, %v363_v3  ;;  %v368_v17 = vunpack.c.h.bf16 %v291_v4  ;;  %v292_v18 = vld [vmem:[%s2198_s15 + $0x68] sm:$0xff]  ;;  %v294_v19 = vld [vmem:[%s2198_s15 + $0x78] sm:$0xff] }
  0x26   : > { %1778 = vmatprep.subr.bf16.mxu1 %v1944_v26  ;;  %v351_v26 = vunpack.c.l.bf16 %v283_v0  ;;  %v514_v0 = vmul.f32 %v2216_v48, %v364_v52  ;;  %v662_v14 = vadd.f32 %v2222_v55, %v512_v6  ;;  %v666_v15 = vadd.f32 %v2222_v55, %v516_v7  ;;  %v296_v52 = vld [vmem:[%s2198_s15 + $0x88] sm:$0xff] }
  0x27   : > { %v656_v33 = vadd.f32 %v2218_v49, %v506_v25  ;;  %v511_v16 = vmul.f32 %v2232_v62, %v361_v8  ;;  %v518_v27 = vmul.f32 %v2216_v48, %v368_v17  ;;  %v371_v35 = vunpack.c.l.bf16 %v293_v13 }
  0x28   : > { %1667 = vmatpush3.bf16.msra.mxu0 %v1945_v28  ;;  %v287_v28 = vld [vmem:[%s2198_s15 + $0x40] sm:$0xff]  ;;  %v664_v9 = vadd.f32 %v2218_v49, %v514_v0  ;;  %v378_v6 = vunpack.c.h.bf16 %v296_v52 }
  0x29   : > { %1779 = vmatpush3.bf16.msra.mxu1 %v1946_v29  ;;  %1668 = vmatprep.subr.bf16.mxu0 %v1947_v30  ;;  %v652_v29 = vadd.f32 %v2218_v49, %v502_v21  ;;  %v504_v30 = vmul.f32 %v2220_v54, %v354_v22  ;;  %v360_v41 = vunpack.c.h.bf16 %v287_v28  ;;  %v359_v2 = vunpack.c.l.bf16 %v287_v28 }
  0x2a   : > { %1780 = vmatprep.subr.bf16.mxu1 %v1948_v31  ;;  %v508_v31 = vmul.f32 %v2220_v54, %v358_v23  ;;  %v663_v22 = vadd.f32 %v2228_v59, %v513_v11  ;;  %v515_v23 = vmul.f32 %v2232_v62, %v365_v12  ;;  %v661_v25 = vadd.f32 %v2234_v63, %v511_v16  ;;  %v299_v12 = vld [vmem:[%s2198_s15 + $0xa0] sm:$0xff] }
  0x2b   : > { %v654_v38 = vadd.f32 %v2222_v55, %v504_v30  ;;  %v776_v44 = vpack.c.bf16 %v656_v33, %v652_v29  ;;  %v510_v53 = vmul.f32 %v2216_v48, %v360_v41  ;;  %v370_v30 = vunpack.c.h.bf16 %v292_v18 }
  0x2c   : > { %1669 = vmatpush3.bf16.msra.mxu0 %v1949_v32  ;;  %v353_v32 = vunpack.c.l.bf16 %v284_v10  ;;  %v658_v39 = vadd.f32 %v2222_v55, %v508_v31  ;;  %v509_v10 = vmul.f32 %v2226_v58, %v359_v2  ;;  %v665_v29 = vadd.f32 %v2234_v63, %v515_v23 }
  0x2d   : > { %1781 = vmatpush3.bf16.msra.mxu1 %v1950_v34  ;;  %v501_v34 = vmul.f32 %v2226_v58, %v351_v26  ;;  %v660_v1 = vadd.f32 %v2218_v49, %v510_v53  ;;  %v372_v26 = vunpack.c.h.bf16 %v293_v13  ;;  %v374_v31 = vunpack.c.h.bf16 %v294_v19  ;;  %v298_v53 = vld [vmem:[%s2198_s15 + $0x98] sm:$0xff] }
  0x2e   : > { %v503_v40 = vmul.f32 %v2232_v62, %v353_v32  ;;  %v778_v50 = vpack.c.bf16 %v658_v39, %v654_v38  ;;  %v659_v21 = vadd.f32 %v2228_v59, %v509_v10  ;;  %v668_v33 = vadd.f32 %v2218_v49, %v518_v27  ;;  %v302_v27 = vld [vmem:[%s2198_s15 + $0xb8] sm:$0xff] }
  0x2f   : > { %1131 = vmatmul.mubr.bf16.vlgmr.msra.gmra.mrb[0].mxu0 %v771_v20  ;;  %v651_v45 = vadd.f32 %v2228_v59, %v501_v34  ;;  %v780_v20 = vpack.c.bf16 %v664_v9, %v660_v1  ;;  %v522_v32 = vmul.f32 %v2216_v48, %v372_v26  ;;  %v367_v34 = vunpack.c.l.bf16 %v291_v4  ;;  %v300_v26 = vld [vmem:[%s2198_s15 + $0xa8] sm:$0xff] }
  0x30   : > { %1292 = vmatmul.mubr.bf16.vlgmr.msra.gmra.mrb[0].mxu1 %v773_v24  ;;  %v653_v51 = vadd.f32 %v2234_v63, %v503_v40  ;;  %1138 = vmatprep.mubr.bf16.mxu0 %v776_v44  ;;  %v782_v24 = vpack.c.bf16 %v666_v15, %v662_v14  ;;  %v779_v28 = vpack.c.bf16 %v663_v22, %v659_v21  ;;  %v369_v40 = vunpack.c.l.bf16 %v292_v18  ;;  %v301_v21 = vld [vmem:[%s2198_s15 + $0xb0] sm:$0xff] }
  0x31   : > { %v775_v56 = vpack.c.bf16 %v655_v46, %v651_v45  ;;  %1299 = vmatprep.mubr.bf16.mxu1 %v778_v50  ;;  %v781_v37 = vpack.c.bf16 %v665_v29, %v661_v25  ;;  %v520_v38 = vmul.f32 %v2220_v54, %v370_v30  ;;  %v524_v39 = vmul.f32 %v2220_v54, %v374_v31  ;;  %v297_v45 = vld [vmem:[%s2198_s15 + $0x90] sm:$0xff] }
  0x32   : > { %v777_v5 = vpack.c.bf16 %v657_v57, %v653_v51  ;;  %v672_v41 = vadd.f32 %v2218_v49, %v522_v32  ;;  %v517_v42 = vmul.f32 %v2226_v58, %v367_v34  ;;  %v521_v43 = vmul.f32 %v2226_v58, %v371_v35 }
  0x33   : > { %v373_v44 = vunpack.c.l.bf16 %v294_v19  ;;  %v670_v46 = vadd.f32 %v2222_v55, %v520_v38  ;;  %v674_v47 = vadd.f32 %v2222_v55, %v524_v39  ;;  %v519_v50 = vmul.f32 %v2232_v62, %v369_v40 }
  0x34   : > { %v376_v51 = vunpack.c.h.bf16 %v295_v36  ;;  %v667_v57 = vadd.f32 %v2228_v59, %v517_v42  ;;  %v671_v60 = vadd.f32 %v2228_v59, %v521_v43  ;;  %v380_v2 = vunpack.c.h.bf16 %v297_v45 }
  0x35   : > { %v523_v61 = vmul.f32 %v2232_v62, %v373_v44  ;;  %v786_v0 = vpack.c.bf16 %v674_v47, %v670_v46  ;;  %v669_v1 = vadd.f32 %v2234_v63, %v519_v50  ;;  %v382_v7 = vunpack.c.h.bf16 %v298_v53  ;;  %v303_v44 = vld [vmem:[%s2198_s15 + $0xc0] sm:$0xff] }
  0x36   : > { %v526_v3 = vmul.f32 %v2216_v48, %v376_v51  ;;  %v783_v4 = vpack.c.bf16 %v671_v60, %v667_v57  ;;  %v530_v8 = vmul.f32 %v2216_v48, %v380_v2  ;;  %v375_v10 = vunpack.c.l.bf16 %v295_v36  ;;  %v305_v57 = vld [vmem:[%s2198_s15 + $0xd0] sm:$0xff]  ;;  %v304_v2 = vld [vmem:[%s2198_s15 + $0xc8] sm:$0xff] }
  0x37   : > { %1139 = vmatmul.mubr.bf16.gmra.mrb[4].mxu0 %v775_v56  ;;  %v784_v56 = vpack.c.bf16 %v672_v41, %v668_v33  ;;  %v379_v11 = vunpack.c.l.bf16 %v297_v45  ;;  %v528_v14 = vmul.f32 %v2220_v54, %v378_v6  ;;  %v532_v15 = vmul.f32 %v2220_v54, %v382_v7 }
  0x38   : > { %1300 = vmatmul.mubr.bf16.gmra.mrb[4].mxu1 %v777_v5  ;;  %1146 = vmatprep.mubr.bf16.mxu0 %v780_v20  ;;  %v673_v5 = vadd.f32 %v2234_v63, %v523_v61  ;;  %v676_v9 = vadd.f32 %v2218_v49, %v526_v3  ;;  %v377_v16 = vunpack.c.l.bf16 %v296_v52  ;;  %v680_v17 = vadd.f32 %v2218_v49, %v530_v8  ;;  %v306_v3 = vld [vmem:[%s2198_s15 + $0xd8] sm:$0xff] }
  0x39   : > { %1307 = vmatprep.mubr.bf16.mxu1 %v782_v24  ;;  %v525_v18 = vmul.f32 %v2226_v58, %v375_v10  ;;  %v529_v19 = vmul.f32 %v2226_v58, %v379_v11  ;;  %v381_v20 = vunpack.c.l.bf16 %v298_v53  ;;  %v678_v22 = vadd.f32 %v2222_v55, %v528_v14 }
  0x3a   : > { %v785_v13 = vpack.c.bf16 %v673_v5, %v669_v1  ;;  %v682_v23 = vadd.f32 %v2222_v55, %v532_v15  ;;  %v527_v24 = vmul.f32 %v2232_v62, %v377_v16  ;;  %v384_v25 = vunpack.c.h.bf16 %v299_v12 }
  0x3b   : > { %v675_v29 = vadd.f32 %v2228_v59, %v525_v18  ;;  %v679_v30 = vadd.f32 %v2228_v59, %v529_v19  ;;  %v531_v31 = vmul.f32 %v2232_v62, %v381_v20  ;;  %v388_v34 = vunpack.c.h.bf16 %v301_v21  ;;  %v307_v20 = vld [vmem:[%s2198_s15 + $0xe0] sm:$0xff] }
  0x3c   : > { %v790_v32 = vpack.c.bf16 %v682_v23, %v678_v22  ;;  %v677_v33 = vadd.f32 %v2234_v63, %v527_v24  ;;  %v534_v35 = vmul.f32 %v2216_v48, %v384_v25  ;;  %v386_v38 = vunpack.c.h.bf16 %v300_v26 }
  0x3d   : > { %v787_v36 = vpack.c.bf16 %v679_v30, %v675_v29  ;;  %v390_v39 = vunpack.c.h.bf16 %v302_v27  ;;  %v538_v40 = vmul.f32 %v2216_v48, %v388_v34  ;;  %v383_v42 = vunpack.c.l.bf16 %v299_v12  ;;  %v309_v29 = vld [vmem:[%s2198_s15 + $0xf0] sm:$0xff]  ;;  %v308_v34 = vld [vmem:[%s2198_s15 + $0xe8] sm:$0xff] }
  0x3e   : > { %v684_v41 = vadd.f32 %v2218_v49, %v534_v35  ;;  %v387_v43 = vunpack.c.l.bf16 %v301_v21  ;;  %v536_v46 = vmul.f32 %v2220_v54, %v386_v38  ;;  %v385_v50 = vunpack.c.l.bf16 %v300_v26  ;;  %v310_v35 = vld [vmem:[%s2198_s15 + $0xf8] sm:$0xff] }
  0x3f   : > { %1147 = vmatmul.mubr.bf16.gmra.mrb[8].mxu0 %v779_v28  ;;  %v788_v28 = vpack.c.bf16 %v680_v17, %v676_v9  ;;  %v540_v47 = vmul.f32 %v2220_v54, %v390_v39  ;;  %v688_v51 = vadd.f32 %v2218_v49, %v538_v40  ;;  %v533_v52 = vmul.f32 %v2226_v58, %v383_v42 }
  0x40   : > { %1308 = vmatmul.mubr.bf16.gmra.mrb[8].mxu1 %v781_v37  ;;  %1154 = vmatprep.mubr.bf16.mxu0 %v784_v56  ;;  %v681_v37 = vadd.f32 %v2234_v63, %v531_v31  ;;  %v537_v53 = vmul.f32 %v2226_v58, %v387_v43  ;;  %v389_v56 = vunpack.c.l.bf16 %v302_v27  ;;  %v686_v60 = vadd.f32 %v2222_v55, %v536_v46 }
  0x41   : > { %1315 = vmatprep.mubr.bf16.mxu1 %v786_v0  ;;  %v690_v61 = vadd.f32 %v2222_v55, %v540_v47  ;;  %v535_v0 = vmul.f32 %v2232_v62, %v385_v50  ;;  %v392_v1 = vunpack.c.h.bf16 %v303_v44  ;;  %v683_v5 = vadd.f32 %v2228_v59, %v533_v52 }
  0x42   : > { %v789_v45 = vpack.c.bf16 %v681_v37, %v677_v33  ;;  %v687_v6 = vadd.f32 %v2228_v59, %v537_v53  ;;  %v539_v7 = vmul.f32 %v2232_v62, %v389_v56  ;;  %v396_v10 = vunpack.c.h.bf16 %v305_v57  ;;  %v311_v53 = vld [vmem:[%s2198_s15 + $0x100] sm:$0xff] }
  0x43   : > { %v794_v8 = vpack.c.bf16 %v690_v61, %v686_v60  ;;  %v685_v9 = vadd.f32 %v2234_v63, %v535_v0  ;;  %v542_v11 = vmul.f32 %v2216_v48, %v392_v1  ;;  %v394_v14 = vunpack.c.h.bf16 %v304_v2 }
  0x44   : > { %v791_v12 = vpack.c.bf16 %v687_v6, %v683_v5  ;;  %v398_v15 = vunpack.c.h.bf16 %v306_v3  ;;  %v546_v16 = vmul.f32 %v2216_v48, %v396_v10  ;;  %v391_v18 = vunpack.c.l.bf16 %v303_v44  ;;  %v314_v10 = vld [vmem:[%s2198_s15 + $0x118] sm:$0xff] }
  0x45   : > { %v692_v17 = vadd.f32 %v2218_v49, %v542_v11  ;;  %v395_v19 = vunpack.c.l.bf16 %v305_v57  ;;  %v544_v22 = vmul.f32 %v2220_v54, %v394_v14  ;;  %v393_v24 = vunpack.c.l.bf16 %v304_v2 }
  0x46   : > { %v548_v23 = vmul.f32 %v2220_v54, %v398_v15  ;;  %v696_v25 = vadd.f32 %v2218_v49, %v546_v16  ;;  %v541_v26 = vmul.f32 %v2226_v58, %v391_v18  ;;  %v400_v33 = vunpack.c.h.bf16 %v307_v20 }
  0x47   : > { %1155 = vmatmul.mubr.bf16.gmra.mrb[12].mxu0 %v783_v4  ;;  %v792_v4 = vpack.c.bf16 %v688_v51, %v684_v41  ;;  %v545_v27 = vmul.f32 %v2226_v58, %v395_v19  ;;  %v694_v30 = vadd.f32 %v2222_v55, %v544_v22  ;;  %v404_v41 = vunpack.c.h.bf16 %v309_v29 }
  0x48   : > { %1316 = vmatmul.mubr.bf16.gmra.mrb[12].mxu1 %v785_v13  ;;  %1162 = vmatprep.mubr.bf16.mxu0 %v788_v28  ;;  %v689_v13 = vadd.f32 %v2234_v63, %v539_v7  ;;  %v397_v28 = vunpack.c.l.bf16 %v306_v3  ;;  %v698_v31 = vadd.f32 %v2222_v55, %v548_v23  ;;  %v691_v37 = vadd.f32 %v2228_v59, %v541_v26 }
  0x49   : > { %1323 = vmatprep.mubr.bf16.mxu1 %v790_v32  ;;  %v543_v32 = vmul.f32 %v2232_v62, %v393_v24  ;;  %v695_v38 = vadd.f32 %v2228_v59, %v545_v27  ;;  %v550_v42 = vmul.f32 %v2216_v48, %v400_v33  ;;  %v406_v46 = vunpack.c.h.bf16 %v310_v35  ;;  %v315_v27 = vld [vmem:[%s2198_s15 + $0x120] sm:$0xff] }
  0x4a   : > { %v793_v21 = vpack.c.bf16 %v689_v13, %v685_v9  ;;  %v547_v39 = vmul.f32 %v2232_v62, %v397_v28  ;;  %v798_v40 = vpack.c.bf16 %v698_v31, %v694_v30  ;;  %v554_v47 = vmul.f32 %v2216_v48, %v404_v41  ;;  %v312_v9 = vld [vmem:[%s2198_s15 + $0x108] sm:$0xff]  ;;  %v318_v41 = vld [vmem:[%s2198_s15 + $0x138] sm:$0xff] }
  0x4b   : > { %v693_v43 = vadd.f32 %v2234_v63, %v543_v32  ;;  %v700_v50 = vadd.f32 %v2218_v49, %v550_v42  ;;  %v399_v51 = vunpack.c.l.bf16 %v307_v20  ;;  %v403_v52 = vunpack.c.l.bf16 %v309_v29 }
  0x4c   : > { %v697_v44 = vadd.f32 %v2234_v63, %v547_v39  ;;  %v795_v56 = vpack.c.bf16 %v695_v38, %v691_v37  ;;  %v556_v60 = vmul.f32 %v2220_v54, %v406_v46  ;;  %v401_v61 = vunpack.c.l.bf16 %v308_v34 }
  0x4d   : > { %v704_v0 = vadd.f32 %v2218_v49, %v554_v47  ;;  %v549_v1 = vmul.f32 %v2226_v58, %v399_v51  ;;  %v553_v2 = vmul.f32 %v2226_v58, %v403_v52  ;;  %v405_v3 = vunpack.c.l.bf16 %v310_v35  ;;  %v317_v35 = vld [vmem:[%s2198_s15 + $0x130] sm:$0xff] }
  0x4e   : > { %v706_v6 = vadd.f32 %v2222_v55, %v556_v60  ;;  %v551_v7 = vmul.f32 %v2232_v62, %v401_v61  ;;  %v797_v11 = vpack.c.bf16 %v697_v44, %v693_v43  ;;  %v414_v22 = vunpack.c.h.bf16 %v314_v10 }
  0x4f   : > { %1163 = vmatmul.mubr.bf16.gmra.mrb[16].mxu0 %v787_v36  ;;  %v796_v36 = vpack.c.bf16 %v696_v25, %v692_v17  ;;  %v699_v13 = vadd.f32 %v2228_v59, %v549_v1  ;;  %v555_v14 = vmul.f32 %v2232_v62, %v405_v3  ;;  %v703_v16 = vadd.f32 %v2228_v59, %v553_v2  ;;  %v319_v2 = vld [vmem:[%s2198_s15 + $0x140] sm:$0xff] }
  0x50   : > { %1324 = vmatmul.mubr.bf16.gmra.mrb[16].mxu1 %v789_v45  ;;  %1170 = vmatprep.mubr.bf16.mxu0 %v792_v4  ;;  %v402_v45 = vunpack.c.h.bf16 %v308_v34  ;;  %v313_v4 = vld [vmem:[%s2198_s15 + $0x110] sm:$0xff]  ;;  %v701_v19 = vadd.f32 %v2234_v63, %v551_v7  ;;  %v407_v25 = vunpack.c.l.bf16 %v311_v53  ;;  %v564_v29 = vmul.f32 %v2220_v54, %v414_v22 }
  0x51   : > { %1331 = vmatprep.mubr.bf16.mxu1 %v794_v8  ;;  %v408_v8 = vunpack.c.h.bf16 %v311_v53  ;;  %v412_v17 = vunpack.c.h.bf16 %v313_v4  ;;  %v705_v20 = vadd.f32 %v2234_v63, %v555_v14  ;;  %v411_v26 = vunpack.c.l.bf16 %v313_v4 }
  0x52   : > { %v552_v57 = vmul.f32 %v2220_v54, %v402_v45  ;;  %v409_v30 = vunpack.c.l.bf16 %v312_v9  ;;  %v557_v32 = vmul.f32 %v2226_v58, %v407_v25  ;;  %v413_v34 = vunpack.c.l.bf16 %v314_v10  ;;  %v321_v10 = vld [vmem:[%s2198_s15 + $0x150] sm:$0xff] }
  0x53   : > { %v558_v18 = vmul.f32 %v2216_v48, %v408_v8  ;;  %v562_v23 = vmul.f32 %v2216_v48, %v412_v17  ;;  %v561_v33 = vmul.f32 %v2226_v58, %v411_v26  ;;  %v714_v37 = vadd.f32 %v2222_v55, %v564_v29 }
  0x54   : > { %v702_v5 = vadd.f32 %v2222_v55, %v552_v57  ;;  %v559_v38 = vmul.f32 %v2232_v62, %v409_v30  ;;  %v416_v39 = vunpack.c.h.bf16 %v315_v27  ;;  %v799_v42 = vpack.c.bf16 %v703_v16, %v699_v13  ;;  %v322_v16 = vld [vmem:[%s2198_s15 + $0x158] sm:$0xff]  ;;  %v323_v30 = vld [vmem:[%s2198_s15 + $0x160] sm:$0xff] }
  0x55   : > { %v708_v24 = vadd.f32 %v2218_v49, %v558_v18  ;;  %v712_v31 = vadd.f32 %v2218_v49, %v562_v23  ;;  %v801_v43 = vpack.c.bf16 %v705_v20, %v701_v19  ;;  %v563_v45 = vmul.f32 %v2232_v62, %v413_v34 }
  0x56   : > { %v802_v15 = vpack.c.bf16 %v706_v6, %v702_v5  ;;  %v707_v46 = vadd.f32 %v2228_v59, %v557_v32  ;;  %v711_v47 = vadd.f32 %v2228_v59, %v561_v33  ;;  %v566_v51 = vmul.f32 %v2216_v48, %v416_v39 }
  0x57   : > { %1171 = vmatmul.mubr.bf16.gmra.mrb[20].mxu0 %v791_v12  ;;  %v800_v12 = vpack.c.bf16 %v704_v0, %v700_v50  ;;  %v804_v44 = vpack.c.bf16 %v712_v31, %v708_v24  ;;  %v420_v50 = vunpack.c.h.bf16 %v317_v35  ;;  %v709_v53 = vadd.f32 %v2234_v63, %v559_v38  ;;  %v325_v38 = vld [vmem:[%s2198_s15 + $0x170] sm:$0xff] }
  0x58   : > { %1332 = vmatmul.mubr.bf16.gmra.mrb[20].mxu1 %v793_v21  ;;  %1178 = vmatprep.mubr.bf16.mxu0 %v796_v36  ;;  %v410_v21 = vunpack.c.h.bf16 %v312_v9  ;;  %v422_v57 = vunpack.c.h.bf16 %v318_v41  ;;  %v713_v60 = vadd.f32 %v2234_v63, %v563_v45  ;;  %v415_v0 = vunpack.c.l.bf16 %v315_v27 }
  0x59   : > { %1339 = vmatprep.mubr.bf16.mxu1 %v798_v40  ;;  %v316_v40 = vld [vmem:[%s2198_s15 + $0x128] sm:$0xff]  ;;  %v570_v61 = vmul.f32 %v2216_v48, %v420_v50  ;;  %v419_v1 = vunpack.c.l.bf16 %v317_v35  ;;  %v716_v3 = vadd.f32 %v2218_v49, %v566_v51  ;;  %v421_v9 = vunpack.c.l.bf16 %v318_v41 }
  0x5a   : > { %v560_v28 = vmul.f32 %v2220_v54, %v410_v21  ;;  %v572_v5 = vmul.f32 %v2220_v54, %v422_v57  ;;  %v417_v6 = vunpack.c.l.bf16 %v316_v40  ;;  %v565_v8 = vmul.f32 %v2226_v58, %v415_v0 }
  0x5b   : > { %v720_v7 = vadd.f32 %v2218_v49, %v570_v61  ;;  %v569_v13 = vmul.f32 %v2226_v58, %v419_v1  ;;  %v424_v14 = vunpack.c.h.bf16 %v319_v2  ;;  %v803_v17 = vpack.c.bf16 %v711_v47, %v707_v46 }
  0x5c   : > { %v710_v36 = vadd.f32 %v2222_v55, %v560_v28  ;;  %v805_v18 = vpack.c.bf16 %v713_v60, %v709_v53  ;;  %v567_v20 = vmul.f32 %v2232_v62, %v417_v6  ;;  %v428_v21 = vunpack.c.h.bf16 %v321_v10  ;;  %v327_v6 = vld [vmem:[%s2198_s15 + $0x180] sm:$0xff] }
  0x5d   : > { %v808_v19 = vpack.c.bf16 %v720_v7, %v716_v3  ;;  %v571_v22 = vmul.f32 %v2232_v62, %v421_v9  ;;  %v574_v23 = vmul.f32 %v2216_v48, %v424_v14  ;;  %v430_v25 = vunpack.c.h.bf16 %v322_v16  ;;  %v329_v7 = vld [vmem:[%s2198_s15 + $0x190] sm:$0xff] }
  0x5e   : > { %v806_v52 = vpack.c.bf16 %v714_v37, %v710_v36  ;;  %v715_v27 = vadd.f32 %v2228_v59, %v565_v8  ;;  %v719_v28 = vadd.f32 %v2228_v59, %v569_v13  ;;  %v578_v29 = vmul.f32 %v2216_v48, %v428_v21 }
  0x5f   : > { %1179 = vmatmul.mubr.bf16.gmra.mrb[24].mxu0 %v795_v56  ;;  %v418_v56 = vunpack.c.h.bf16 %v316_v40  ;;  %v580_v32 = vmul.f32 %v2220_v54, %v430_v25  ;;  %v423_v33 = vunpack.c.l.bf16 %v319_v2  ;;  %v427_v34 = vunpack.c.l.bf16 %v321_v10 }
  0x60   : > { %1340 = vmatmul.mubr.bf16.gmra.mrb[24].mxu1 %v797_v11  ;;  %1186 = vmatprep.mubr.bf16.mxu0 %v800_v12  ;;  %v722_v12 = vadd.f32 %v2222_v55, %v572_v5  ;;  %v717_v35 = vadd.f32 %v2234_v63, %v567_v20  ;;  %v429_v37 = vunpack.c.l.bf16 %v322_v16  ;;  %v721_v39 = vadd.f32 %v2234_v63, %v571_v22  ;;  %v328_v16 = vld [vmem:[%s2198_s15 + $0x188] sm:$0xff] }
  0x61   : > { %1347 = vmatprep.mubr.bf16.mxu1 %v802_v15  ;;  %v568_v4 = vmul.f32 %v2220_v54, %v418_v56  ;;  %v320_v15 = vld [vmem:[%s2198_s15 + $0x148] sm:$0xff]  ;;  %v724_v40 = vadd.f32 %v2218_v49, %v574_v23  ;;  %v728_v41 = vadd.f32 %v2218_v49, %v578_v29  ;;  %v730_v46 = vadd.f32 %v2222_v55, %v580_v32 }
  0x62   : > { %v426_v24 = vunpack.c.h.bf16 %v320_v15  ;;  %v425_v36 = vunpack.c.l.bf16 %v320_v15  ;;  %v807_v47 = vpack.c.bf16 %v719_v28, %v715_v27  ;;  %v573_v50 = vmul.f32 %v2226_v58, %v423_v33 }
  0x63   : > { %v718_v11 = vadd.f32 %v2222_v55, %v568_v4  ;;  %v577_v51 = vmul.f32 %v2226_v58, %v427_v34  ;;  %v579_v56 = vmul.f32 %v2232_v62, %v429_v37  ;;  %v809_v61 = vpack.c.bf16 %v721_v39, %v717_v35  ;;  %v333_v39 = vld [vmem:[%s2198_s15 + $0x1b0] sm:$0xff] }
  0x64   : > { %v576_v31 = vmul.f32 %v2220_v54, %v426_v24  ;;  %v575_v53 = vmul.f32 %v2232_v62, %v425_v36  ;;  %v812_v0 = vpack.c.bf16 %v728_v41, %v724_v40  ;;  %v723_v8 = vadd.f32 %v2228_v59, %v573_v50 }
  0x65   : > { %v810_v26 = vpack.c.bf16 %v722_v12, %v718_v11  ;;  %v727_v9 = vadd.f32 %v2228_v59, %v577_v51  ;;  %v431_v10 = vunpack.c.l.bf16 %v323_v30  ;;  %v435_v11 = vunpack.c.l.bf16 %v325_v38 }
  0x66   : > { %v726_v45 = vadd.f32 %v2222_v55, %v576_v31  ;;  %v725_v12 = vadd.f32 %v2234_v63, %v575_v53  ;;  %v729_v13 = vadd.f32 %v2234_v63, %v579_v56  ;;  %v440_v20 = vunpack.c.h.bf16 %v327_v6 }
  0x67   : > { %1187 = vmatmul.mubr.bf16.gmra.mrb[28].mxu0 %v799_v42  ;;  %v432_v42 = vunpack.c.h.bf16 %v323_v30  ;;  %v444_v21 = vunpack.c.h.bf16 %v329_v7  ;;  %v581_v24 = vmul.f32 %v2226_v58, %v431_v10  ;;  %v585_v25 = vmul.f32 %v2226_v58, %v435_v11 }
  0x68   : > { %1348 = vmatmul.mubr.bf16.gmra.mrb[28].mxu1 %v801_v43  ;;  %1194 = vmatprep.mubr.bf16.mxu0 %v804_v44  ;;  %v324_v43 = vld [vmem:[%s2198_s15 + $0x168] sm:$0xff]  ;;  %v326_v44 = vld [vmem:[%s2198_s15 + $0x178] sm:$0xff]  ;;  %v814_v3 = vpack.c.bf16 %v730_v46, %v726_v45  ;;  %v811_v28 = vpack.c.bf16 %v727_v9, %v723_v8  ;;  %v813_v31 = vpack.c.bf16 %v729_v13, %v725_v12  ;;  %v441_v50 = vunpack.c.l.bf16 %v328_v16 }
  0x69   : > { %1355 = vmatprep.mubr.bf16.mxu1 %v806_v52  ;;  %v436_v52 = vunpack.c.h.bf16 %v325_v38  ;;  %v434_v57 = vunpack.c.h.bf16 %v324_v43  ;;  %v438_v60 = vunpack.c.h.bf16 %v326_v44  ;;  %v582_v1 = vmul.f32 %v2216_v48, %v432_v42  ;;  %v331_v38 = vld [vmem:[%s2198_s15 + $0x1a0] sm:$0xff]  ;;  %v334_v45 = vld [vmem:[%s2198_s15 + $0x1b8] sm:$0xff] }
  0x6a   : > { %v433_v14 = vunpack.c.l.bf16 %v324_v43  ;;  %v437_v15 = vunpack.c.l.bf16 %v326_v44  ;;  %v590_v33 = vmul.f32 %v2216_v48, %v440_v20  ;;  %v594_v34 = vmul.f32 %v2216_v48, %v444_v21  ;;  %v332_v44 = vld [vmem:[%s2198_s15 + $0x1a8] sm:$0xff]  ;;  %v338_v21 = vld [vmem:[%s2198_s15 + $0x1d8] sm:$0xff] }
  0x6b   : > { %v586_v2 = vmul.f32 %v2216_v48, %v436_v52  ;;  %v584_v4 = vmul.f32 %v2220_v54, %v434_v57  ;;  %v588_v5 = vmul.f32 %v2220_v54, %v438_v60  ;;  %v731_v40 = vadd.f32 %v2228_v59, %v581_v24  ;;  %v336_v20 = vld [vmem:[%s2198_s15 + $0x1c8] sm:$0xff] }
  0x6c   : > { %v583_v29 = vmul.f32 %v2232_v62, %v433_v14  ;;  %v587_v30 = vmul.f32 %v2232_v62, %v437_v15  ;;  %v735_v41 = vadd.f32 %v2228_v59, %v585_v25  ;;  %v439_v42 = vunpack.c.l.bf16 %v327_v6  ;;  %v335_v14 = vld [vmem:[%s2198_s15 + $0x1c0] sm:$0xff]  ;;  %v337_v15 = vld [vmem:[%s2198_s15 + $0x1d0] sm:$0xff] }
  0x6d   : > { %v734_v22 = vadd.f32 %v2222_v55, %v584_v4  ;;  %v738_v23 = vadd.f32 %v2222_v55, %v588_v5  ;;  %v443_v43 = vunpack.c.l.bf16 %v329_v7  ;;  %v740_v52 = vadd.f32 %v2218_v49, %v590_v33 }
  0x6e   : > { %v733_v46 = vadd.f32 %v2234_v63, %v583_v29  ;;  %v744_v53 = vadd.f32 %v2218_v49, %v594_v34  ;;  %v448_v56 = vunpack.c.h.bf16 %v331_v38  ;;  %v452_v57 = vunpack.c.h.bf16 %v333_v39 }
  0x6f   : > { %1195 = vmatmul.mubr.bf16.gmra.mrb[32].mxu0 %v803_v17  ;;  %v330_v17 = vld [vmem:[%s2198_s15 + $0x198] sm:$0xff]  ;;  %v818_v35 = vpack.c.bf16 %v738_v23, %v734_v22  ;;  %v815_v4 = vpack.c.bf16 %v735_v41, %v731_v40  ;;  %v591_v5 = vmul.f32 %v2232_v62, %v441_v50  ;;  %v449_v24 = vunpack.c.l.bf16 %v332_v44 }
  0x70   : > { %1356 = vmatmul.mubr.bf16.gmra.mrb[32].mxu1 %v805_v18  ;;  %1202 = vmatprep.mubr.bf16.mxu0 %v808_v19  ;;  %v732_v18 = vadd.f32 %v2218_v49, %v582_v1  ;;  %v736_v19 = vadd.f32 %v2218_v49, %v586_v2  ;;  %v446_v27 = vunpack.c.h.bf16 %v330_v17  ;;  %v445_v51 = vunpack.c.l.bf16 %v330_v17 }
  0x71   : > { %1363 = vmatprep.mubr.bf16.mxu1 %v810_v26  ;;  %v442_v26 = vunpack.c.h.bf16 %v328_v16  ;;  %v454_v1 = vunpack.c.h.bf16 %v334_v45  ;;  %v589_v2 = vmul.f32 %v2226_v58, %v439_v42  ;;  %v820_v8 = vpack.c.bf16 %v744_v53, %v740_v52 }
  0x72   : > { %v816_v32 = vpack.c.bf16 %v736_v19, %v732_v18  ;;  %v596_v37 = vmul.f32 %v2220_v54, %v446_v27  ;;  %v595_v6 = vmul.f32 %v2232_v62, %v445_v51  ;;  %v598_v9 = vmul.f32 %v2216_v48, %v448_v56  ;;  %v340_v56 = vld [vmem:[%s2198_s15 + $0x1e8] sm:$0xff] }
  0x73   : > { %v592_v36 = vmul.f32 %v2220_v54, %v442_v26  ;;  %v602_v10 = vmul.f32 %v2216_v48, %v452_v57  ;;  %v604_v13 = vmul.f32 %v2220_v54, %v454_v1  ;;  %v739_v16 = vadd.f32 %v2228_v59, %v589_v2  ;;  %v342_v57 = vld [vmem:[%s2198_s15 + $0x1f8] sm:$0xff] }
  0x74   : > { %v447_v18 = vunpack.c.l.bf16 %v331_v38  ;;  %v451_v19 = vunpack.c.l.bf16 %v333_v39  ;;  %v741_v22 = vadd.f32 %v2234_v63, %v591_v5  ;;  %v745_v23 = vadd.f32 %v2234_v63, %v595_v6 }
  0x75   : > { %v742_v60 = vadd.f32 %v2222_v55, %v592_v36  ;;  %v453_v25 = vunpack.c.l.bf16 %v334_v45  ;;  %v748_v26 = vadd.f32 %v2218_v49, %v598_v9  ;;  %v752_v27 = vadd.f32 %v2218_v49, %v602_v10 }
  0x76   : > { %v460_v29 = vunpack.c.h.bf16 %v337_v15  ;;  %v462_v33 = vunpack.c.h.bf16 %v338_v21  ;;  %v597_v34 = vmul.f32 %v2226_v58, %v447_v18  ;;  %v821_v39 = vpack.c.bf16 %v745_v23, %v741_v22 }
  0x77   : > { %1203 = vmatmul.mubr.bf16.gmra.mrb[36].mxu0 %v807_v47  ;;  %v737_v47 = vadd.f32 %v2234_v63, %v587_v30  ;;  %v603_v38 = vmul.f32 %v2232_v62, %v453_v25  ;;  %v824_v40 = vpack.c.bf16 %v752_v27, %v748_v26  ;;  %v455_v52 = vunpack.c.l.bf16 %v335_v14 }
  0x78   : > { %1364 = vmatmul.mubr.bf16.gmra.mrb[36].mxu1 %v809_v61  ;;  %1210 = vmatprep.mubr.bf16.mxu0 %v812_v0  ;;  %v746_v61 = vadd.f32 %v2222_v55, %v596_v37  ;;  %v450_v0 = vunpack.c.h.bf16 %v332_v44  ;;  %v599_v37 = vmul.f32 %v2232_v62, %v449_v24  ;;  %v610_v42 = vmul.f32 %v2216_v48, %v460_v29 }
  0x79   : > { %1371 = vmatprep.mubr.bf16.mxu1 %v814_v3  ;;  %v593_v3 = vmul.f32 %v2226_v58, %v443_v43  ;;  %v817_v7 = vpack.c.bf16 %v737_v47, %v733_v46  ;;  %v612_v45 = vmul.f32 %v2220_v54, %v462_v33  ;;  %v339_v46 = vld [vmem:[%s2198_s15 + $0x1e0] sm:$0xff]  ;;  %v341_v47 = vld [vmem:[%s2198_s15 + $0x1f0] sm:$0xff]  ;;  %v747_v50 = vadd.f32 %v2228_v59, %v597_v34 }
  0x7a   : > { %v822_v11 = vpack.c.bf16 %v746_v61, %v742_v60  ;;  %v600_v12 = vmul.f32 %v2220_v54, %v450_v0  ;;  %v459_v53 = vunpack.c.l.bf16 %v337_v15  ;;  %v749_v60 = vadd.f32 %v2234_v63, %v599_v37 }
  0x7b   : > { %v743_v17 = vadd.f32 %v2228_v59, %v593_v3  ;;  %v753_v61 = vadd.f32 %v2234_v63, %v603_v38  ;;  %v457_v0 = vunpack.c.l.bf16 %v336_v20  ;;  %v461_v1 = vunpack.c.l.bf16 %v338_v21 }
  0x7c   : > { %v750_v30 = vadd.f32 %v2222_v55, %v600_v12  ;;  %v760_v3 = vadd.f32 %v2218_v49, %v610_v42  ;;  %v468_v5 = vunpack.c.h.bf16 %v341_v47  ;;  %v470_v9 = vunpack.c.h.bf16 %v342_v57 }
  0x7d   : > { %v819_v36 = vpack.c.bf16 %v743_v17, %v739_v16  ;;  %v605_v10 = vmul.f32 %v2226_v58, %v455_v52  ;;  %v825_v15 = vpack.c.bf16 %v753_v61, %v749_v60  ;;  %v463_v26 = vunpack.c.l.bf16 %v339_v46 }
  0x7e   : > { %v618_v18 = vmul.f32 %v2216_v48, %v468_v5  ;;  %v620_v21 = vmul.f32 %v2220_v54, %v470_v9  ;;  %v467_v27 = vunpack.c.l.bf16 %v341_v47  ;;  %v465_v29 = vunpack.c.l.bf16 %v340_v56 }
  0x7f   : > { %1211 = vmatmul.mubr.bf16.gmra.mrb[40].mxu0 %v811_v28  ;;  %v456_v28 = vunpack.c.h.bf16 %v335_v14  ;;  %v611_v14 = vmul.f32 %v2232_v62, %v461_v1  ;;  %v755_v22 = vadd.f32 %v2228_v59, %v605_v10  ;;  %v613_v33 = vmul.f32 %v2226_v58, %v463_v26  ;;  %v1421_v1 = vld [vmem:[%s2558_s16 + $0x8] sm:$0xff] }
  0x80   : > { %1372 = vmatmul.mubr.bf16.gmra.mrb[40].mxu1 %v813_v31  ;;  %1218 = vmatprep.mubr.bf16.mxu0 %v816_v32  ;;  %v754_v31 = vadd.f32 %v2222_v55, %v604_v13  ;;  %v458_v32 = vunpack.c.h.bf16 %v336_v20  ;;  %v607_v13 = vmul.f32 %v2232_v62, %v457_v0  ;;  %v617_v34 = vmul.f32 %v2226_v58, %v467_v27 }
  0x81   : > { %1379 = vmatprep.mubr.bf16.mxu1 %v818_v35  ;;  %v601_v35 = vmul.f32 %v2226_v58, %v451_v19  ;;  %v606_v41 = vmul.f32 %v2216_v48, %v456_v28  ;;  %v761_v25 = vadd.f32 %v2234_v63, %v611_v14  ;;  %v768_v28 = vadd.f32 %v2218_v49, %v618_v18 }
  0x82   : > { %v826_v43 = vpack.c.bf16 %v754_v31, %v750_v30  ;;  %v608_v44 = vmul.f32 %v2220_v54, %v458_v32  ;;  %v757_v24 = vadd.f32 %v2234_v63, %v607_v13  ;;  %v469_v30 = vunpack.c.l.bf16 %v342_v57  ;;  %v1420_v57 = vld [vmem:[%s2558_s16] sm:$0xff] }
  0x83   : > { %v751_v51 = vadd.f32 %v2228_v59, %v601_v35  ;;  %v756_v2 = vadd.f32 %v2218_v49, %v606_v41  ;;  %v770_v31 = vadd.f32 %v2222_v55, %v620_v21  ;;  %v615_v37 = vmul.f32 %v2232_v62, %v465_v29  ;;  %v1423_v21 = vld [vmem:[%s2558_s16 + $0x18] sm:$0xff] }
  0x84   : > { %v758_v6 = vadd.f32 %v2222_v55, %v608_v44  ;;  %v829_v35 = vpack.c.bf16 %v761_v25, %v757_v24  ;;  %v619_v38 = vmul.f32 %v2232_v62, %v469_v30  ;;  %v2552_v44 = vld [vmem:[%s2717_s5] ss:$0 sm:$0xff] }
  0x85   : > { %v823_v12 = vpack.c.bf16 %v751_v51, %v747_v50  ;;  %v828_v16 = vpack.c.bf16 %v760_v3, %v756_v2 }
  0x87   : > { %1219 = vmatmul.mubr.bf16.gmra.mrb[44].mxu0 %v815_v4  ;;  %v464_v4 = vunpack.c.h.bf16 %v339_v46 }
  0x88   : > { %1380 = vmatmul.mubr.bf16.gmra.mrb[44].mxu1 %v817_v7  ;;  %1226 = vmatprep.mubr.bf16.mxu0 %v820_v8  ;;  %v762_v7 = vadd.f32 %v2222_v55, %v612_v45  ;;  %v466_v8 = vunpack.c.h.bf16 %v340_v56 }
  0x89   : > { %1387 = vmatprep.mubr.bf16.mxu1 %v822_v11  ;;  %v609_v11 = vmul.f32 %v2226_v58, %v459_v53  ;;  %v614_v17 = vmul.f32 %v2216_v48, %v464_v4  ;;  %v769_v58 = vadd.f32 %v2234_v63, %v619_v38 }
  0x8a   : > { %v830_v19 = vpack.c.bf16 %v762_v7, %v758_v6  ;;  %v616_v20 = vmul.f32 %v2220_v54, %v466_v8 }
  0x8b   : > { %v759_v23 = vadd.f32 %v2228_v59, %v609_v11  ;;  %v764_v48 = vadd.f32 %v2218_v49, %v614_v17  ;;  %v1422_v17 = vld [vmem:[%s2558_s16 + $0x10] sm:$0xff] }
  0x8c   : > { %v766_v54 = vadd.f32 %v2222_v55, %v616_v20  ;;  %v765_v55 = vadd.f32 %v2234_v63, %v615_v37 }
  0x8d   : > { %v827_v32 = vpack.c.bf16 %v759_v23, %v755_v22 }
  0x8e   : > { %v834_v49 = vpack.c.bf16 %v770_v31, %v766_v54  ;;  %v833_v42 = vpack.c.bf16 %v769_v58, %v765_v55 }
  0x8f   : > { %1227 = vmatmul.mubr.bf16.gmra.mrb[48].mxu0 %v819_v36  ;;  %v832_v36 = vpack.c.bf16 %v768_v28, %v764_v48 }
  0x90   : > { %1388 = vmatmul.mubr.bf16.gmra.mrb[48].mxu1 %v821_v39  ;;  %1234 = vmatprep.mubr.bf16.mxu0 %v824_v40  ;;  %v763_v39 = vadd.f32 %v2228_v59, %v613_v33  ;;  %v767_v40 = vadd.f32 %v2228_v59, %v617_v34 }
  0x91   : > { %1395 = vmatprep.mubr.bf16.mxu1 %v826_v43 }
  0x92   : > { %v831_v41 = vpack.c.bf16 %v767_v40, %v763_v39 }
  0x97   : > { %1235 = vmatmul.mubr.bf16.gmra.mrb[52].mxu0 %v823_v12 }
  0x98   : > { %1396 = vmatmul.mubr.bf16.gmra.mrb[52].mxu1 %v825_v15  ;;  %1242 = vmatprep.mubr.bf16.mxu0 %v828_v16 }
  0x99   : > { %1403 = vmatprep.mubr.bf16.mxu1 %v830_v19 }
  0x9f   : > { %1243 = vmatmul.mubr.bf16.gmra.mrb[56].mxu0 %v827_v32 }
  0xa0   : > { %1404 = vmatmul.mubr.bf16.gmra.mrb[56].mxu1 %v829_v35  ;;  %1250 = vmatprep.mubr.bf16.mxu0 %v832_v36  ;;  %v1424_v35 = vld [vmem:[%s2558_s16 + $0x20] sm:$0xff] }
  0xa1   : > { %1411 = vmatprep.mubr.bf16.mxu1 %v834_v49  ;;  %v1425_v49 = vld [vmem:[%s2558_s16 + $0x28] sm:$0xff] }
  0xa7   : > { %1251 = vmatmul.mubr.bf16.gmra.mrb[60].mxu0 %v831_v41 }
  0xa8   : > { %1412 = vmatmul.mubr.bf16.gmra.mrb[60].mxu1 %v833_v42 }
 0x102   : > { %v1670_v62 = vpop.f32.mrb[0].mxu0 }
 0x103   : > { %v1782_v43 = vpop.f32.mrb[0].mxu1  ;;  %v1671_v59 = vpop.f32.mrb[1].mxu0 }
 0x104   : > { %v1672_v45 = vadd.f32 %v1671_v59, %v1670_v62  ;;  %v1783_v63 = vpop.f32.mrb[1].mxu1  ;;  %v1673_v46 = vpop.f32.mrb[2].mxu0 }
 0x105   : > { %v1784_v47 = vadd.f32 %v1783_v63, %v1782_v43  ;;  %v1785_v50 = vpop.f32.mrb[2].mxu1  ;;  %v1674_v51 = vpop.f32.mrb[3].mxu0 }
 0x106   : > { %v1133_v52 = vadd.f32 %v1672_v45, %v2552_v44  ;;  %v1675_v53 = vadd.f32 %v1674_v51, %v1673_v46  ;;  %v1786_v56 = vpop.f32.mrb[3].mxu1 }
 0x107   : > { %v1787_v60 = vadd.f32 %v1786_v56, %v1785_v50 }
 0x108   : > { %v1294_v61 = vadd.f32 %v1784_v47, %v1133_v52  ;;  %v1136_v0 = vadd.f32 %v1675_v53, %v2552_v44  ;;  %v1426_v52 = vld [vmem:[%s2558_s16 + $0x30] sm:$0xff] }
 0x10a   : > { %v1452_v2 = vadd.f32 %v1420_v57, %v1294_v61  ;;  %v1297_v3 = vadd.f32 %v1787_v60, %v1136_v0  ;;  %v1676_v4 = vpop.f32.mrb[4].mxu0  ;;  %v1427_v60 = vld [vmem:[%s2558_s16 + $0x38] sm:$0xff] }
 0x10b   : > { %v1788_v5 = vpop.f32.mrb[4].mxu1  ;;  %v1677_v6 = vpop.f32.mrb[5].mxu0 }
 0x10c   : > { %1484 = vst [vmem:[%s2566_s17] sm:$0xff] %v1452_v2  ;;  %v1453_v7 = vadd.f32 %v1421_v1, %v1297_v3  ;;  %v1678_v8 = vadd.f32 %v1677_v6, %v1676_v4  ;;  %v1789_v9 = vpop.f32.mrb[5].mxu1  ;;  %v1679_v10 = vpop.f32.mrb[6].mxu0 }
 0x10d   : > { %v1790_v11 = vadd.f32 %v1789_v9, %v1788_v5  ;;  %v1791_v12 = vpop.f32.mrb[6].mxu1  ;;  %v1680_v13 = vpop.f32.mrb[7].mxu0 }
 0x10e   : > { %1485 = vst [vmem:[%s2566_s17 + $0x8] sm:$0xff] %v1453_v7  ;;  %v1141_v14 = vadd.f32 %v1678_v8, %v2552_v44  ;;  %v1681_v15 = vadd.f32 %v1680_v13, %v1679_v10  ;;  %v1792_v16 = vpop.f32.mrb[7].mxu1 }
 0x10f   : > { %v1793_v18 = vadd.f32 %v1792_v16, %v1791_v12 }
 0x110   : > { %v1302_v19 = vadd.f32 %v1790_v11, %v1141_v14  ;;  %v1144_v20 = vadd.f32 %v1681_v15, %v2552_v44  ;;  %v1428_v14 = vld [vmem:[%s2558_s16 + $0x40] sm:$0xff] }
 0x112   : > { %v1454_v22 = vadd.f32 %v1422_v17, %v1302_v19  ;;  %v1305_v23 = vadd.f32 %v1793_v18, %v1144_v20  ;;  %v1682_v24 = vpop.f32.mrb[8].mxu0  ;;  %v1429_v18 = vld [vmem:[%s2558_s16 + $0x48] sm:$0xff] }
 0x113   : > { %v1794_v25 = vpop.f32.mrb[8].mxu1  ;;  %v1683_v26 = vpop.f32.mrb[9].mxu0 }
 0x114   : > { %1486 = vst [vmem:[%s2566_s17 + $0x10] sm:$0xff] %v1454_v22  ;;  %v1455_v27 = vadd.f32 %v1423_v21, %v1305_v23  ;;  %v1684_v48 = vadd.f32 %v1683_v26, %v1682_v24  ;;  %v1795_v28 = vpop.f32.mrb[9].mxu1  ;;  %v1685_v29 = vpop.f32.mrb[10].mxu0 }
 0x115   : > { %v1796_v30 = vadd.f32 %v1795_v28, %v1794_v25  ;;  %v1797_v54 = vpop.f32.mrb[10].mxu1  ;;  %v1686_v31 = vpop.f32.mrb[11].mxu0 }
 0x116   : > { %1487 = vst [vmem:[%s2566_s17 + $0x18] sm:$0xff] %v1455_v27  ;;  %v1149_v32 = vadd.f32 %v1684_v48, %v2552_v44  ;;  %v1687_v33 = vadd.f32 %v1686_v31, %v1685_v29  ;;  %v1798_v34 = vpop.f32.mrb[11].mxu1 }
 0x117   : > { %v1799_v36 = vadd.f32 %v1798_v34, %v1797_v54 }
 0x118   : > { %v1310_v37 = vadd.f32 %v1796_v30, %v1149_v32  ;;  %v1152_v38 = vadd.f32 %v1687_v33, %v2552_v44  ;;  %v1430_v32 = vld [vmem:[%s2558_s16 + $0x50] sm:$0xff] }
 0x11a   : > { %v1456_v39 = vadd.f32 %v1424_v35, %v1310_v37  ;;  %v1313_v40 = vadd.f32 %v1799_v36, %v1152_v38  ;;  %v1688_v55 = vpop.f32.mrb[12].mxu0  ;;  %v1431_v36 = vld [vmem:[%s2558_s16 + $0x58] sm:$0xff] }
 0x11b   : > { %v1800_v58 = vpop.f32.mrb[12].mxu1  ;;  %v1689_v41 = vpop.f32.mrb[13].mxu0 }
 0x11c   : > { %1488 = vst [vmem:[%s2566_s17 + $0x20] sm:$0xff] %v1456_v39  ;;  %v1457_v42 = vadd.f32 %v1425_v49, %v1313_v40  ;;  %v1690_v62 = vadd.f32 %v1689_v41, %v1688_v55  ;;  %v1801_v43 = vpop.f32.mrb[13].mxu1  ;;  %v1691_v59 = vpop.f32.mrb[14].mxu0 }
 0x11d   : > { %v1802_v45 = vadd.f32 %v1801_v43, %v1800_v58  ;;  %v1803_v63 = vpop.f32.mrb[14].mxu1  ;;  %v1692_v46 = vpop.f32.mrb[15].mxu0 }
 0x11e   : > { %1489 = vst [vmem:[%s2566_s17 + $0x28] sm:$0xff] %v1457_v42  ;;  %v1157_v47 = vadd.f32 %v1690_v62, %v2552_v44  ;;  %v1693_v50 = vadd.f32 %v1692_v46, %v1691_v59  ;;  %v1804_v51 = vpop.f32.mrb[15].mxu1 }
 0x11f   : > { %v1805_v53 = vadd.f32 %v1804_v51, %v1803_v63 }
 0x120   : > { %v1318_v56 = vadd.f32 %v1802_v45, %v1157_v47  ;;  %v1160_v57 = vadd.f32 %v1693_v50, %v2552_v44  ;;  %v1432_v47 = vld [vmem:[%s2558_s16 + $0x60] sm:$0xff] }
 0x122   : > { %v1458_v61 = vadd.f32 %v1426_v52, %v1318_v56  ;;  %v1321_v0 = vadd.f32 %v1805_v53, %v1160_v57  ;;  %v1694_v1 = vpop.f32.mrb[16].mxu0  ;;  %v1433_v53 = vld [vmem:[%s2558_s16 + $0x68] sm:$0xff] }
 0x123   : > { %v1806_v2 = vpop.f32.mrb[16].mxu1  ;;  %v1695_v3 = vpop.f32.mrb[17].mxu0 }
 0x124   : > { %1490 = vst [vmem:[%s2566_s17 + $0x30] sm:$0xff] %v1458_v61  ;;  %v1459_v4 = vadd.f32 %v1427_v60, %v1321_v0  ;;  %v1696_v5 = vadd.f32 %v1695_v3, %v1694_v1  ;;  %v1807_v6 = vpop.f32.mrb[17].mxu1  ;;  %v1697_v7 = vpop.f32.mrb[18].mxu0 }
 0x125   : > { %v1808_v8 = vadd.f32 %v1807_v6, %v1806_v2  ;;  %v1809_v9 = vpop.f32.mrb[18].mxu1  ;;  %v1698_v10 = vpop.f32.mrb[19].mxu0 }
 0x126   : > { %1491 = vst [vmem:[%s2566_s17 + $0x38] sm:$0xff] %v1459_v4  ;;  %v1165_v11 = vadd.f32 %v1696_v5, %v2552_v44  ;;  %v1699_v12 = vadd.f32 %v1698_v10, %v1697_v7  ;;  %v1810_v13 = vpop.f32.mrb[19].mxu1 }
 0x127   : > { %v1811_v15 = vadd.f32 %v1810_v13, %v1809_v9 }
 0x128   : > { %v1326_v16 = vadd.f32 %v1808_v8, %v1165_v11  ;;  %v1168_v17 = vadd.f32 %v1699_v12, %v2552_v44  ;;  %v1434_v11 = vld [vmem:[%s2558_s16 + $0x70] sm:$0xff] }
 0x12a   : > { %v1460_v19 = vadd.f32 %v1428_v14, %v1326_v16  ;;  %v1329_v20 = vadd.f32 %v1811_v15, %v1168_v17  ;;  %v1700_v21 = vpop.f32.mrb[20].mxu0  ;;  %v1435_v15 = vld [vmem:[%s2558_s16 + $0x78] sm:$0xff] }
 0x12b   : > { %v1812_v22 = vpop.f32.mrb[20].mxu1  ;;  %v1701_v23 = vpop.f32.mrb[21].mxu0 }
 0x12c   : > { %1492 = vst [vmem:[%s2566_s17 + $0x40] sm:$0xff] %v1460_v19  ;;  %v1461_v24 = vadd.f32 %v1429_v18, %v1329_v20  ;;  %v1702_v25 = vadd.f32 %v1701_v23, %v1700_v21  ;;  %v1813_v26 = vpop.f32.mrb[21].mxu1  ;;  %v1703_v27 = vpop.f32.mrb[22].mxu0 }
 0x12d   : > { %v1814_v48 = vadd.f32 %v1813_v26, %v1812_v22  ;;  %v1815_v28 = vpop.f32.mrb[22].mxu1  ;;  %v1704_v29 = vpop.f32.mrb[23].mxu0 }
 0x12e   : > { %1493 = vst [vmem:[%s2566_s17 + $0x48] sm:$0xff] %v1461_v24  ;;  %v1173_v30 = vadd.f32 %v1702_v25, %v2552_v44  ;;  %v1705_v54 = vadd.f32 %v1704_v29, %v1703_v27  ;;  %v1816_v31 = vpop.f32.mrb[23].mxu1 }
 0x12f   : > { %v1817_v33 = vadd.f32 %v1816_v31, %v1815_v28 }
 0x130   : > { %v1334_v34 = vadd.f32 %v1814_v48, %v1173_v30  ;;  %v1176_v35 = vadd.f32 %v1705_v54, %v2552_v44  ;;  %v1436_v30 = vld [vmem:[%s2558_s16 + $0x80] sm:$0xff] }
 0x132   : > { %v1462_v37 = vadd.f32 %v1430_v32, %v1334_v34  ;;  %v1337_v38 = vadd.f32 %v1817_v33, %v1176_v35  ;;  %v1706_v49 = vpop.f32.mrb[24].mxu0  ;;  %v1437_v33 = vld [vmem:[%s2558_s16 + $0x88] sm:$0xff] }
 0x133   : > { %v1818_v39 = vpop.f32.mrb[24].mxu1  ;;  %v1707_v40 = vpop.f32.mrb[25].mxu0 }
 0x134   : > { %1494 = vst [vmem:[%s2566_s17 + $0x50] sm:$0xff] %v1462_v37  ;;  %v1463_v55 = vadd.f32 %v1431_v36, %v1337_v38  ;;  %v1708_v58 = vadd.f32 %v1707_v40, %v1706_v49  ;;  %v1819_v41 = vpop.f32.mrb[25].mxu1  ;;  %v1709_v42 = vpop.f32.mrb[26].mxu0 }
 0x135   : > { %v1820_v62 = vadd.f32 %v1819_v41, %v1818_v39  ;;  %v1821_v43 = vpop.f32.mrb[26].mxu1  ;;  %v1710_v59 = vpop.f32.mrb[27].mxu0 }
 0x136   : > { %1495 = vst [vmem:[%s2566_s17 + $0x58] sm:$0xff] %v1463_v55  ;;  %v1181_v45 = vadd.f32 %v1708_v58, %v2552_v44  ;;  %v1711_v63 = vadd.f32 %v1710_v59, %v1709_v42  ;;  %v1822_v46 = vpop.f32.mrb[27].mxu1 }
 0x137   : > { %v1823_v50 = vadd.f32 %v1822_v46, %v1821_v43 }
 0x138   : > { %v1342_v51 = vadd.f32 %v1820_v62, %v1181_v45  ;;  %v1184_v52 = vadd.f32 %v1711_v63, %v2552_v44  ;;  %v1438_v45 = vld [vmem:[%s2558_s16 + $0x90] sm:$0xff] }
 0x13a   : > { %v1464_v56 = vadd.f32 %v1432_v47, %v1342_v51  ;;  %v1345_v57 = vadd.f32 %v1823_v50, %v1184_v52  ;;  %v1712_v60 = vpop.f32.mrb[28].mxu0  ;;  %v1439_v50 = vld [vmem:[%s2558_s16 + $0x98] sm:$0xff] }
 0x13b   : > { %v1824_v61 = vpop.f32.mrb[28].mxu1  ;;  %v1713_v0 = vpop.f32.mrb[29].mxu0 }
 0x13c   : > { %1496 = vst [vmem:[%s2566_s17 + $0x60] sm:$0xff] %v1464_v56  ;;  %v1465_v1 = vadd.f32 %v1433_v53, %v1345_v57  ;;  %v1714_v2 = vadd.f32 %v1713_v0, %v1712_v60  ;;  %v1825_v3 = vpop.f32.mrb[29].mxu1  ;;  %v1715_v4 = vpop.f32.mrb[30].mxu0 }
 0x13d   : > { %v1826_v5 = vadd.f32 %v1825_v3, %v1824_v61  ;;  %v1827_v6 = vpop.f32.mrb[30].mxu1  ;;  %v1716_v7 = vpop.f32.mrb[31].mxu0 }
 0x13e   : > { %1497 = vst [vmem:[%s2566_s17 + $0x68] sm:$0xff] %v1465_v1  ;;  %v1189_v8 = vadd.f32 %v1714_v2, %v2552_v44  ;;  %v1717_v9 = vadd.f32 %v1716_v7, %v1715_v4  ;;  %v1828_v10 = vpop.f32.mrb[31].mxu1 }
 0x13f   : > { %v1829_v12 = vadd.f32 %v1828_v10, %v1827_v6 }
 0x140   : > { %v1350_v13 = vadd.f32 %v1826_v5, %v1189_v8  ;;  %v1192_v14 = vadd.f32 %v1717_v9, %v2552_v44  ;;  %v1440_v8 = vld [vmem:[%s2558_s16 + $0xa0] sm:$0xff] }
 0x142   : > { %v1466_v16 = vadd.f32 %v1434_v11, %v1350_v13  ;;  %v1353_v17 = vadd.f32 %v1829_v12, %v1192_v14  ;;  %v1718_v18 = vpop.f32.mrb[32].mxu0  ;;  %v1441_v12 = vld [vmem:[%s2558_s16 + $0xa8] sm:$0xff] }
 0x143   : > { %v1830_v19 = vpop.f32.mrb[32].mxu1  ;;  %v1719_v20 = vpop.f32.mrb[33].mxu0 }
 0x144   : > { %1498 = vst [vmem:[%s2566_s17 + $0x70] sm:$0xff] %v1466_v16  ;;  %v1467_v21 = vadd.f32 %v1435_v15, %v1353_v17  ;;  %v1720_v22 = vadd.f32 %v1719_v20, %v1718_v18  ;;  %v1831_v23 = vpop.f32.mrb[33].mxu1  ;;  %v1721_v24 = vpop.f32.mrb[34].mxu0 }
 0x145   : > { %v1832_v25 = vadd.f32 %v1831_v23, %v1830_v19  ;;  %v1833_v26 = vpop.f32.mrb[34].mxu1  ;;  %v1722_v27 = vpop.f32.mrb[35].mxu0 }
 0x146   : > { %1499 = vst [vmem:[%s2566_s17 + $0x78] sm:$0xff] %v1467_v21  ;;  %v1197_v48 = vadd.f32 %v1720_v22, %v2552_v44  ;;  %v1723_v28 = vadd.f32 %v1722_v27, %v1721_v24  ;;  %v1834_v29 = vpop.f32.mrb[35].mxu1 }
 0x147   : > { %v1835_v54 = vadd.f32 %v1834_v29, %v1833_v26 }
 0x148   : > { %v1358_v31 = vadd.f32 %v1832_v25, %v1197_v48  ;;  %v1200_v32 = vadd.f32 %v1723_v28, %v2552_v44  ;;  %v1442_v48 = vld [vmem:[%s2558_s16 + $0xb0] sm:$0xff] }
 0x14a   : > { %v1468_v34 = vadd.f32 %v1436_v30, %v1358_v31  ;;  %v1361_v35 = vadd.f32 %v1835_v54, %v1200_v32  ;;  %v1724_v36 = vpop.f32.mrb[36].mxu0  ;;  %v1443_v54 = vld [vmem:[%s2558_s16 + $0xb8] sm:$0xff] }
 0x14b   : > { %v1836_v37 = vpop.f32.mrb[36].mxu1  ;;  %v1725_v38 = vpop.f32.mrb[37].mxu0 }
 0x14c   : > { %1500 = vst [vmem:[%s2566_s17 + $0x80] sm:$0xff] %v1468_v34  ;;  %v1469_v49 = vadd.f32 %v1437_v33, %v1361_v35  ;;  %v1726_v39 = vadd.f32 %v1725_v38, %v1724_v36  ;;  %v1837_v40 = vpop.f32.mrb[37].mxu1  ;;  %v1727_v55 = vpop.f32.mrb[38].mxu0 }
 0x14d   : > { %v1838_v58 = vadd.f32 %v1837_v40, %v1836_v37  ;;  %v1839_v41 = vpop.f32.mrb[38].mxu1  ;;  %v1728_v42 = vpop.f32.mrb[39].mxu0 }
 0x14e   : > { %1501 = vst [vmem:[%s2566_s17 + $0x88] sm:$0xff] %v1469_v49  ;;  %v1205_v62 = vadd.f32 %v1726_v39, %v2552_v44  ;;  %v1729_v43 = vadd.f32 %v1728_v42, %v1727_v55  ;;  %v1840_v59 = vpop.f32.mrb[39].mxu1 }
 0x14f   : > { %v1841_v63 = vadd.f32 %v1840_v59, %v1839_v41 }
 0x150   : > { %v1366_v46 = vadd.f32 %v1838_v58, %v1205_v62  ;;  %v1208_v47 = vadd.f32 %v1729_v43, %v2552_v44  ;;  %v1444_v62 = vld [vmem:[%s2558_s16 + $0xc0] sm:$0xff] }
 0x152   : > { %v1470_v51 = vadd.f32 %v1438_v45, %v1366_v46  ;;  %v1369_v52 = vadd.f32 %v1841_v63, %v1208_v47  ;;  %v1730_v53 = vpop.f32.mrb[40].mxu0  ;;  %v1445_v63 = vld [vmem:[%s2558_s16 + $0xc8] sm:$0xff] }
 0x153   : > { %v1842_v56 = vpop.f32.mrb[40].mxu1  ;;  %v1731_v57 = vpop.f32.mrb[41].mxu0 }
 0x154   : > { %1502 = vst [vmem:[%s2566_s17 + $0x90] sm:$0xff] %v1470_v51  ;;  %v1471_v60 = vadd.f32 %v1439_v50, %v1369_v52  ;;  %v1732_v61 = vadd.f32 %v1731_v57, %v1730_v53  ;;  %v1843_v0 = vpop.f32.mrb[41].mxu1  ;;  %v1733_v1 = vpop.f32.mrb[42].mxu0 }
 0x155   : > { %v1844_v2 = vadd.f32 %v1843_v0, %v1842_v56  ;;  %v1845_v3 = vpop.f32.mrb[42].mxu1  ;;  %v1734_v4 = vpop.f32.mrb[43].mxu0 }
 0x156   : > { %1503 = vst [vmem:[%s2566_s17 + $0x98] sm:$0xff] %v1471_v60  ;;  %v1213_v5 = vadd.f32 %v1732_v61, %v2552_v44  ;;  %v1735_v6 = vadd.f32 %v1734_v4, %v1733_v1  ;;  %v1846_v7 = vpop.f32.mrb[43].mxu1 }
 0x157   : > { %v1847_v9 = vadd.f32 %v1846_v7, %v1845_v3 }
 0x158   : > { %v1374_v10 = vadd.f32 %v1844_v2, %v1213_v5  ;;  %v1216_v11 = vadd.f32 %v1735_v6, %v2552_v44  ;;  %v1446_v5 = vld [vmem:[%s2558_s16 + $0xd0] sm:$0xff] }
 0x15a   : > { %v1472_v13 = vadd.f32 %v1440_v8, %v1374_v10  ;;  %v1377_v14 = vadd.f32 %v1847_v9, %v1216_v11  ;;  %v1736_v15 = vpop.f32.mrb[44].mxu0  ;;  %v1447_v9 = vld [vmem:[%s2558_s16 + $0xd8] sm:$0xff] }
 0x15b   : > { %v1848_v16 = vpop.f32.mrb[44].mxu1  ;;  %v1737_v17 = vpop.f32.mrb[45].mxu0 }
 0x15c   : > { %1504 = vst [vmem:[%s2566_s17 + $0xa0] sm:$0xff] %v1472_v13  ;;  %v1473_v18 = vadd.f32 %v1441_v12, %v1377_v14  ;;  %v1738_v19 = vadd.f32 %v1737_v17, %v1736_v15  ;;  %v1849_v20 = vpop.f32.mrb[45].mxu1  ;;  %v1739_v21 = vpop.f32.mrb[46].mxu0 }
 0x15d   : > { %v1850_v22 = vadd.f32 %v1849_v20, %v1848_v16  ;;  %v1851_v23 = vpop.f32.mrb[46].mxu1  ;;  %v1740_v24 = vpop.f32.mrb[47].mxu0 }
 0x15e   : > { %1505 = vst [vmem:[%s2566_s17 + $0xa8] sm:$0xff] %v1473_v18  ;;  %v1221_v25 = vadd.f32 %v1738_v19, %v2552_v44  ;;  %v1741_v26 = vadd.f32 %v1740_v24, %v1739_v21  ;;  %v1852_v27 = vpop.f32.mrb[47].mxu1 }
 0x15f   : > { %v1853_v28 = vadd.f32 %v1852_v27, %v1851_v23 }
 0x160   : > { %v1382_v29 = vadd.f32 %v1850_v22, %v1221_v25  ;;  %v1224_v30 = vadd.f32 %v1741_v26, %v2552_v44  ;;  %v1448_v25 = vld [vmem:[%s2558_s16 + $0xe0] sm:$0xff] }
 0x162   : > { %v1474_v31 = vadd.f32 %v1442_v48, %v1382_v29  ;;  %v1385_v32 = vadd.f32 %v1853_v28, %v1224_v30  ;;  %v1742_v33 = vpop.f32.mrb[48].mxu0  ;;  %v1449_v28 = vld [vmem:[%s2558_s16 + $0xe8] sm:$0xff] }
 0x163   : > { %v1854_v34 = vpop.f32.mrb[48].mxu1  ;;  %v1743_v35 = vpop.f32.mrb[49].mxu0 }
 0x164   : > { %1506 = vst [vmem:[%s2566_s17 + $0xb0] sm:$0xff] %v1474_v31  ;;  %v1475_v36 = vadd.f32 %v1443_v54, %v1385_v32  ;;  %v1744_v37 = vadd.f32 %v1743_v35, %v1742_v33  ;;  %v1855_v38 = vpop.f32.mrb[49].mxu1  ;;  %v1745_v49 = vpop.f32.mrb[50].mxu0 }
 0x165   : > { %v1856_v39 = vadd.f32 %v1855_v38, %v1854_v34  ;;  %v1857_v40 = vpop.f32.mrb[50].mxu1  ;;  %v1746_v55 = vpop.f32.mrb[51].mxu0 }
 0x166   : > { %1507 = vst [vmem:[%s2566_s17 + $0xb8] sm:$0xff] %v1475_v36  ;;  %v1229_v58 = vadd.f32 %v1744_v37, %v2552_v44  ;;  %v1747_v41 = vadd.f32 %v1746_v55, %v1745_v49  ;;  %v1858_v42 = vpop.f32.mrb[51].mxu1 }
 0x167   : > { %v1859_v43 = vadd.f32 %v1858_v42, %v1857_v40 }
 0x168   : > { %v1390_v59 = vadd.f32 %v1856_v39, %v1229_v58  ;;  %v1232_v45 = vadd.f32 %v1747_v41, %v2552_v44  ;;  %v1450_v58 = vld [vmem:[%s2558_s16 + $0xf0] sm:$0xff] }
 0x16a   : > { %v1476_v46 = vadd.f32 %v1444_v62, %v1390_v59  ;;  %v1393_v47 = vadd.f32 %v1859_v43, %v1232_v45  ;;  %v1748_v50 = vpop.f32.mrb[52].mxu0  ;;  %v1451_v43 = vld [vmem:[%s2558_s16 + $0xf8] sm:$0xff] }
 0x16b   : > { %v1860_v51 = vpop.f32.mrb[52].mxu1  ;;  %v1749_v52 = vpop.f32.mrb[53].mxu0 }
 0x16c   : > { %1508 = vst [vmem:[%s2566_s17 + $0xc0] sm:$0xff] %v1476_v46  ;;  %v1477_v53 = vadd.f32 %v1445_v63, %v1393_v47  ;;  %v1750_v56 = vadd.f32 %v1749_v52, %v1748_v50  ;;  %v1861_v57 = vpop.f32.mrb[53].mxu1  ;;  %v1751_v60 = vpop.f32.mrb[54].mxu0 }
 0x16d   : > { %v1862_v61 = vadd.f32 %v1861_v57, %v1860_v51  ;;  %v1863_v0 = vpop.f32.mrb[54].mxu1  ;;  %v1752_v1 = vpop.f32.mrb[55].mxu0 }
 0x16e   : > { %1509 = vst [vmem:[%s2566_s17 + $0xc8] sm:$0xff] %v1477_v53  ;;  %v1237_v2 = vadd.f32 %v1750_v56, %v2552_v44  ;;  %v1753_v3 = vadd.f32 %v1752_v1, %v1751_v60  ;;  %v1864_v4 = vpop.f32.mrb[55].mxu1 }
 0x16f   : > { %v1865_v6 = vadd.f32 %v1864_v4, %v1863_v0 }
 0x170   : > { %v1398_v7 = vadd.f32 %v1862_v61, %v1237_v2  ;;  %v1240_v8 = vadd.f32 %v1753_v3, %v2552_v44 }
 0x172   : > { %v1478_v10 = vadd.f32 %v1446_v5, %v1398_v7  ;;  %v1401_v11 = vadd.f32 %v1865_v6, %v1240_v8  ;;  %v1754_v12 = vpop.f32.mrb[56].mxu0 }
 0x173   : > { %v1866_v13 = vpop.f32.mrb[56].mxu1  ;;  %v1755_v14 = vpop.f32.mrb[57].mxu0 }
 0x174   : > { %1510 = vst [vmem:[%s2566_s17 + $0xd0] sm:$0xff] %v1478_v10  ;;  %v1479_v15 = vadd.f32 %v1447_v9, %v1401_v11  ;;  %v1756_v16 = vadd.f32 %v1755_v14, %v1754_v12  ;;  %v1867_v17 = vpop.f32.mrb[57].mxu1  ;;  %v1757_v18 = vpop.f32.mrb[58].mxu0 }
 0x175   : > { %v1868_v19 = vadd.f32 %v1867_v17, %v1866_v13  ;;  %v1869_v20 = vpop.f32.mrb[58].mxu1  ;;  %v1758_v21 = vpop.f32.mrb[59].mxu0 }
 0x176   : > { %1511 = vst [vmem:[%s2566_s17 + $0xd8] sm:$0xff] %v1479_v15  ;;  %v1245_v22 = vadd.f32 %v1756_v16, %v2552_v44  ;;  %v1759_v23 = vadd.f32 %v1758_v21, %v1757_v18  ;;  %v1870_v24 = vpop.f32.mrb[59].mxu1 }
 0x177   : > { %v1871_v26 = vadd.f32 %v1870_v24, %v1869_v20 }
 0x178   : > { %v1406_v27 = vadd.f32 %v1868_v19, %v1245_v22  ;;  %v1248_v48 = vadd.f32 %v1759_v23, %v2552_v44 }
 0x17a   : > { %v1480_v29 = vadd.f32 %v1448_v25, %v1406_v27  ;;  %v1409_v30 = vadd.f32 %v1871_v26, %v1248_v48  ;;  %v1760_v54 = vpop.f32.mrb[60].mxu0 }
 0x17b   : > { %v1872_v31 = vpop.f32.mrb[60].mxu1  ;;  %v1761_v32 = vpop.f32.mrb[61].mxu0 }
 0x17c   : > { %1512 = vst [vmem:[%s2566_s17 + $0xe0] sm:$0xff] %v1480_v29  ;;  %v1481_v33 = vadd.f32 %v1449_v28, %v1409_v30  ;;  %v1762_v34 = vadd.f32 %v1761_v32, %v1760_v54  ;;  %v1873_v35 = vpop.f32.mrb[61].mxu1  ;;  %v1763_v36 = vpop.f32.mrb[62].mxu0 }
 0x17d   : > { %v1874_v37 = vadd.f32 %v1873_v35, %v1872_v31  ;;  %v1875_v38 = vpop.f32.mrb[62].mxu1  ;;  %v1764_v49 = vpop.f32.mrb[63].mxu0 }
 0x17e   : > { %1513 = vst [vmem:[%s2566_s17 + $0xe8] sm:$0xff] %v1481_v33  ;;  %v1253_v39 = vadd.f32 %v1762_v34, %v2552_v44  ;;  %v1765_v40 = vadd.f32 %v1764_v49, %v1763_v36  ;;  %v1876_v55 = vpop.f32.mrb[63].mxu1 }
 0x17f   : > { %v1877_v41 = vadd.f32 %v1876_v55, %v1875_v38 }
 0x180   : > { %v1414_v42 = vadd.f32 %v1874_v37, %v1253_v39  ;;  %v1256_v62 = vadd.f32 %v1765_v40, %v2552_v44 }
 0x182   : > { %v1482_v59 = vadd.f32 %v1450_v58, %v1414_v42  ;;  %v1417_v45 = vadd.f32 %v1877_v41, %v1256_v62 }
 0x184   : > { %1514 = vst [vmem:[%s2566_s17 + $0xf0] sm:$0xff] %v1482_v59  ;;  %v1483_v63 = vadd.f32 %v1451_v43, %v1417_v45 }
 0x186   : > { %1515 = vst [vmem:[%s2566_s17 + $0xf8] sm:$0xff] %v1483_v63 }
 0x187   : > { %1964 = shalt.err (!%p1961_p3)
}
 0x188   : > { %s1965_s13 = scalar_lea.hbm %s2663_s28, 4096  ;;  %s1969_s16 = scalar_lea.hbm %s2718_s6, 8192 }
 0x189   : > { %p1966_p4 = scmp.ne.s32.totalorder %s2663_s28, %s1965_s13  ;;  %p1970_p9 = scmp.lt.u32.totalorder %s2663_s28, %s2718_s6 }
 0x18a   : > { %p1971_p10 = scmp.lt.u32.totalorder %s1969_s16, %s1965_s13  ;;  %p1973_p12 = scmp.lt.u32.totalorder %s1965_s13, %s2663_s28 }
 0x18b   : > { %p1967_p7 = pnand %p1966_p4, %p2091_p5 }
 0x18c   : > { %p1972_p11 = por %p1971_p10, %p1970_p9 }
 0x18d   : > { %p1968_p8 = pneg %p1967_p7 }
 0x18e   : > { %p1974_p13 = por %p1973_p12, %p1972_p11 }
 0x190   : > { %p1975_p0 = pnand %p1974_p13, %p1968_p8 }
 0x192   : > { %1978 = shalt.err (!%p1975_p0)
}
 0x193   : > { %s2016_s18 = smov 128   ;;  %s2017_s20 = smov 8  }
 0x194   : > { %1878 = dma.vmem_to_hbm [thread:$0]  (%p2091_p5), %s2665_s19, 4096, %s2663_s28, %s2671_s29, %s2016_s18, %s2016_s18, %s2017_s20  }
 0x195 PF: > { %p1884_p1 = scmp.ge.s32.totalorder %s2013_s24, 2  ;;  %s1545_s26 = sand.u32 1, %s2001_s21  }
 0x196   : > { %s1546_s25 = scalar_lea.sflag [#allocation3], %s1545_s26 }
 0x197   : > { %p1881_p2 = pnand %p1884_p1, %p2095_p6 }
 0x199   : > { %1996 = dma.done.wait (!%p1881_p2), %s1546_s25, 4096  }
 0x19a   : > { %1998 = vsyncadd (!%p1881_p2), %s1546_s25, 4294963200  ;;  %p16_p3 = scmp.ge.s32.totalorder %s2078_s27, 4   ;;  %s2721_s21 = smov %s2005_s22 }
 0x19b   : > { %s2722_s22 = smov %s2009_s23  ;;  %s2723_s23 = smov %s2089_s30 }
 0x19c   : > { %s2724_s24 = smov %s2078_s27  ;;  %18 = sbr.rel (!%p16_p3) target bundleno = 3 (0x3), region = 82 }
 0x1a3   :  { %1551 = vsyncpa [#allocation3], 1 }
 0x1a4   :  { %1553 = vsyncpa [#allocation3 + $0x1], 1 }

// kernel: sparse_block.2
= control target key start
LH: loop header
LB: loop body
LE: loop exit
PB: predicated region body
PF: predicated region fallthrough
CT: control target
= control target key end

     0   :  { %s4473_s11 = smov 0   ;;  %s4475_s12 = smov 0   ;;  %s6364_s0 = inlined_call_operand.vmem [shape: f32[512,128], index: 0, kind: input, shape index: {}, may-alias: {0,1,2}]   ;;  %s6365_s1 = inlined_call_operand.vmem [shape: f32[512,128], index: 1, kind: input, shape index: {}, may-alias: {0,1,2}]   ;;  %s6366_s2 = inlined_call_operand.vmem [shape: f32[512,128], index: 2, kind: input, shape index: {}, may-alias: {0,1,2}]   ;;  %s6367_s3 = inlined_call_operand.vmem [shape: f32[7,128], index: 3, kind: input, shape index: {}]   ;;  %s6368_s4 = inlined_call_operand.vmem [shape: f32[1,128], index: 4, kind: input, shape index: {}]   ;;  %s6369_s5 = inlined_call_operand.vmem [shape: f32[1,128], index: 5, kind: input, shape index: {}]   ;;  %s6370_s6 = inlined_call_operand.vmem [shape: f32[1,128], index: 6, kind: input, shape index: {}]   ;;  %s6371_s7 = inlined_call_operand.vmem [shape: bf16[128,512], index: 7, kind: input, shape index: {}]   ;;  %s6372_s8 = inlined_call_operand.vmem [shape: f32[1,512], index: 8, kind: input, shape index: {}]   ;;  %s6373_s9 = inlined_call_operand.vmem [shape: bf16[512,512], index: 9, kind: output, shape index: {0}]   ;;  %s6374_s10 = inlined_call_operand.vmem [shape: f32[16,512], index: 10, kind: output, shape index: {1}]  }
   0x1   :  { %s4477_s13 = smov 0  }
   0x2 LB: > { %s33_s14 = sadd.s32 1, %s4410_s12  ;;  %p3817_p0 = scmp.ge.s32.totalorder %s4414_s13, 1  ;;  %s4414_s13 = sphi %s4477_s13, %s21_s13   ;;  %s4410_s12 = sphi %s4475_s12, %s6439_s12   ;;  %s4406_s11 = sphi %s4473_s11, %s6438_s11  }
   0x3   : > { %p35_p1 = scmp.ge.s32.totalorder %s33_s14, 2  ;;  %p392_p2 = scmp.lt.s32.totalorder %s4414_s13, 3 }
   0x5   : > { %s6441_s14 = smov (%p35_p1, %s33_s14), 0  ;;  %p393_p3 = pnand %p3817_p0, %p392_p2 }
   0x7   : > { %396 = sbr.rel (%p393_p3) target bundleno = 878 (0x36e), region = 56 }
   0xe   : > { %s3818_s15 = sshll.u32 %s4406_s11, 5  ;;  %v582_v0 = vlaneseq  ;;  %v547_v1 = vld [vmem:[%s6367_s3] sm:$0x7f]  ;;  %v4416_v2 = vmov 0.0   ;;  %p501_p5 = scmp.lt.s32.totalorder %s4406_s11, 1 }
   0xf   : > { %p472_p4 = scmp.lt.s32.totalorder %s3818_s15, 63  ;;  %548 = vst [vmem:[#allocation2] sm:$0xff] %v4416_v2  ;;  %581 = vst [vmem:[#allocation2 + $0x108] sm:$0xff] %v4416_v2  ;;  %v4519_v10 = vld [vmem:[%s6368_s4] ss:$0 sm:$0xff] }
  0x10   : > { %v4497_v3 = vshrl.u32 %v582_v0, 7  ;;  %s6445_s11 = smov (!%p501_p5, %s4406_s11), 1 }
  0x11   : > { %s6443_s15 = smov (!%p472_p4, %s3818_s15), 63  ;;  %s3931_s29 = sshll.u32 %s6445_s11, 5 }
  0x12   : > { %6388 = vst [vmem:[#allocation3_spill] sm:$0xff] %v4497_v3  ;;  %v6375_v4 = vsub.s32 3, %v4497_v3  ;;  %v6378_v5 = vsub.s32 0, %v4497_v3  ;;  %s3819_s18 = sshll.u32 %s6443_s15, 3  ;;  %v6376_v6 = vsub.s32 1, %v4497_v3  ;;  %v6377_v7 = vsub.s32 2, %v4497_v3  ;;  %s505_s17 = scalar_lea.vmem %s6374_s10, %s3931_s29 }
  0x13   : > { %v991_v8 = vsub.s32 4, %v4497_v3  ;;  %s4510_s21 = scalar_lea.vmem %s6365_s1, %s3819_s18  ;;  %v1091_v11 = vsub.s32 5, %v4497_v3  ;;  %v1191_v14 = vsub.s32 6, %v4497_v3  ;;  %s3930_s27 = sshll.u32 %s6443_s15, 4 }
  0x14   : > { %v4514_v9 = vrot.slane %v547_v1, %v6375_v4  ;;  %v515_v12 = vld [vmem:[%s4510_s21] sm:$0xff]  ;;  %v516_v13 = vld [vmem:[%s4510_s21 + $0x8] sm:$0xff]  ;;  %v517_v15 = vld [vmem:[%s4510_s21 + $0x10] sm:$0xff]  ;;  %v4529_v17 = vrot.slane %v547_v1, %v6378_v5  ;;  %v4538_v23 = vrot.slane %v547_v1, %v6376_v6  ;;  %v4542_v24 = vrot.slane %v547_v1, %v6377_v7  ;;  %s5546_s2 = scalar_lea.vmem %s6373_s9, %s3930_s27 }
  0x15   : > { %549 = vst [vmem:[#allocation2 + $0x8] sm:$0xff] %v515_v12  ;;  %550 = vst [vmem:[#allocation2 + $0x10] sm:$0xff] %v516_v13  ;;  %v518_v19 = vld [vmem:[%s4510_s21 + $0x18] sm:$0xff]  ;;  %v519_v21 = vld [vmem:[%s4510_s21 + $0x20] sm:$0xff]  ;;  %v4544_v25 = vrot.slane %v547_v1, %v991_v8  ;;  %v4550_v30 = vrot.slane %v547_v1, %v1091_v11  ;;  %v4559_v38 = vrot.slane %v547_v1, %v1191_v14 }
  0x16   : > { %v586_v16 = vmul.f32 %v4514_v9, %v515_v12  ;;  %551 = vst [vmem:[#allocation2 + $0x18] sm:$0xff] %v517_v15  ;;  %v587_v18 = vmul.f32 %v4514_v9, %v516_v13  ;;  %v588_v20 = vmul.f32 %v4514_v9, %v517_v15  ;;  %v520_v22 = vld [vmem:[%s4510_s21 + $0x28] sm:$0xff]  ;;  %552 = vst [vmem:[#allocation2 + $0x20] sm:$0xff] %v518_v19  ;;  %v521_v27 = vld [vmem:[%s4510_s21 + $0x30] sm:$0xff] }
  0x17   : > { %553 = vst [vmem:[#allocation2 + $0x28] sm:$0xff] %v519_v21  ;;  %v589_v26 = vmul.f32 %v4514_v9, %v518_v19  ;;  %554 = vst [vmem:[#allocation2 + $0x30] sm:$0xff] %v520_v22  ;;  %v522_v28 = vld [vmem:[%s4510_s21 + $0x38] sm:$0xff]  ;;  %v523_v29 = vld [vmem:[%s4510_s21 + $0x40] sm:$0xff]  ;;  %v590_v31 = vmul.f32 %v4514_v9, %v519_v21  ;;  %v591_v32 = vmul.f32 %v4514_v9, %v520_v22 }
  0x18   : > { %555 = vst [vmem:[#allocation2 + $0x38] sm:$0xff] %v521_v27  ;;  %556 = vst [vmem:[#allocation2 + $0x40] sm:$0xff] %v522_v28  ;;  %v592_v33 = vmul.f32 %v4514_v9, %v521_v27  ;;  %v524_v34 = vld [vmem:[%s4510_s21 + $0x48] sm:$0xff]  ;;  %v525_v35 = vld [vmem:[%s4510_s21 + $0x50] sm:$0xff]  ;;  %v625_v37 = vadd.f32 %v4519_v10, %v586_v16  ;;  %v4562_v39 = vadd.f32 %v4519_v10, %v587_v18 }
  0x19   : > { %557 = vst [vmem:[#allocation2 + $0x48] sm:$0xff] %v523_v29  ;;  %v526_v36 = vld [vmem:[%s4510_s21 + $0x58] sm:$0xff]  ;;  %v593_v40 = vmul.f32 %v4514_v9, %v522_v28  ;;  %558 = vst [vmem:[#allocation2 + $0x50] sm:$0xff] %v524_v34  ;;  %v527_v41 = vld [vmem:[%s4510_s21 + $0x60] sm:$0xff]  ;;  %v4569_v44 = vadd.f32 %v4519_v10, %v588_v20  ;;  %v594_v45 = vmul.f32 %v4514_v9, %v523_v29 }
  0x1a   : > { %559 = vst [vmem:[#allocation2 + $0x58] sm:$0xff] %v525_v35  ;;  %560 = vst [vmem:[#allocation2 + $0x60] sm:$0xff] %v526_v36  ;;  %v528_v42 = vld [vmem:[%s4510_s21 + $0x68] sm:$0xff]  ;;  %v529_v43 = vld [vmem:[%s4510_s21 + $0x70] sm:$0xff]  ;;  %v595_v46 = vmul.f32 %v4514_v9, %v524_v34  ;;  %v596_v47 = vmul.f32 %v4514_v9, %v525_v35  ;;  %v4582_v51 = vadd.f32 %v4519_v10, %v589_v26 }
  0x1b   : > { %561 = vst [vmem:[#allocation2 + $0x68] sm:$0xff] %v527_v41  ;;  %562 = vst [vmem:[#allocation2 + $0x70] sm:$0xff] %v528_v42  ;;  %v530_v48 = vld [vmem:[%s4510_s21 + $0x78] sm:$0xff]  ;;  %v4576_v49 = vld [vmem:[%s4510_s21 + $0x80] sm:$0xff]  ;;  %v597_v52 = vmul.f32 %v4514_v9, %v526_v36  ;;  %v598_v53 = vmul.f32 %v4514_v9, %v527_v41  ;;  %v599_v54 = vmul.f32 %v4514_v9, %v528_v42 }
  0x1c   : > { %563 = vst [vmem:[#allocation2 + $0x78] sm:$0xff] %v529_v43  ;;  %v4579_v50 = vld [vmem:[%s4510_s21 + $0x88] sm:$0xff]  ;;  %564 = vst [vmem:[#allocation2 + $0x80] sm:$0xff] %v530_v48  ;;  %v4590_v55 = vld [vmem:[%s4510_s21 + $0x90] sm:$0xff]  ;;  %v4599_v58 = vadd.f32 %v4519_v10, %v590_v31  ;;  %v4602_v59 = vadd.f32 %v4519_v10, %v591_v32  ;;  %v4605_v60 = vadd.f32 %v4519_v10, %v592_v33 }
  0x1d   : > { %565 = vst [vmem:[#allocation2 + $0x88] sm:$0xff] %v4576_v49  ;;  %566 = vst [vmem:[#allocation2 + $0x90] sm:$0xff] %v4579_v50  ;;  %v4593_v56 = vld [vmem:[%s4510_s21 + $0x98] sm:$0xff]  ;;  %v4596_v57 = vld [vmem:[%s4510_s21 + $0xa0] sm:$0xff]  ;;  %v600_v61 = vmul.f32 %v4514_v9, %v529_v43  ;;  %v4612_v1 = vadd.f32 %v4519_v10, %v593_v40  ;;  %v4615_v2 = vadd.f32 %v4519_v10, %v594_v45 }
  0x1e   : > { %567 = vst [vmem:[#allocation2 + $0x98] sm:$0xff] %v4590_v55  ;;  %568 = vst [vmem:[#allocation2 + $0xa0] sm:$0xff] %v4593_v56  ;;  %v657_v62 = vld [vmem:[#allocation2 + $0x5] sm:$0xff]  ;;  %v4618_v8 = vadd.f32 %v4519_v10, %v595_v46  ;;  %v601_v11 = vmul.f32 %v4514_v9, %v530_v48  ;;  %v4624_v18 = vadd.f32 %v4519_v10, %v596_v47  ;;  %v658_v21 = vld [vmem:[#allocation2 + $0xd] sm:$0xff] }
  0x1f   : > { %569 = vst [vmem:[#allocation2 + $0xa8] sm:$0xff] %v4596_v57  ;;  %v757_v63 = vld [vmem:[#allocation2 + $0x6] sm:$0xff]  ;;  %v693_v12 = vmul.f32 %v4529_v17, %v657_v62  ;;  %v4627_v19 = vadd.f32 %v4519_v10, %v597_v52  ;;  %v758_v22 = vld [vmem:[#allocation2 + $0xe] sm:$0xff]  ;;  %v4631_v27 = vadd.f32 %v4519_v10, %v598_v53  ;;  %v4634_v28 = vadd.f32 %v4519_v10, %v599_v54  ;;  %v759_v46 = vld [vmem:[#allocation2 + $0x16] sm:$0xff] }
  0x20   : > { %v857_v0 = vld [vmem:[#allocation2 + $0x7] sm:$0xff]  ;;  %v793_v13 = vmul.f32 %v4538_v23, %v757_v63  ;;  %v858_v26 = vld [vmem:[#allocation2 + $0xf] sm:$0xff]  ;;  %v4637_v29 = vadd.f32 %v4519_v10, %v600_v61  ;;  %v694_v33 = vmul.f32 %v4529_v17, %v658_v21  ;;  %v794_v34 = vmul.f32 %v4538_v23, %v758_v22  ;;  %v859_v47 = vld [vmem:[#allocation2 + $0x17] sm:$0xff] }
  0x21   : > { %v957_v14 = vld [vmem:[#allocation2 + $0x9] sm:$0xff]  ;;  %v893_v20 = vmul.f32 %v4542_v24, %v857_v0  ;;  %v725_v31 = vadd.f32 %v693_v12, %v625_v37  ;;  %v958_v35 = vld [vmem:[#allocation2 + $0x11] sm:$0xff]  ;;  %v894_v43 = vmul.f32 %v4542_v24, %v858_v26  ;;  %v4646_v37 = vadd.f32 %v4519_v10, %v601_v11  ;;  %v959_v61 = vld [vmem:[#allocation2 + $0x19] sm:$0xff] }
  0x22   : > { %v1057_v15 = vld [vmem:[#allocation2 + $0xa] sm:$0xff]  ;;  %v993_v32 = vmul.f32 %v4544_v25, %v957_v14  ;;  %v1058_v36 = vld [vmem:[#allocation2 + $0x12] sm:$0xff]  ;;  %v726_v52 = vadd.f32 %v694_v33, %v4562_v39  ;;  %v795_v54 = vmul.f32 %v4538_v23, %v759_v46  ;;  %v994_v62 = vmul.f32 %v4544_v25, %v958_v35  ;;  %v660_v14 = vld [vmem:[#allocation2 + $0x1d] sm:$0xff] }
  0x23   : > { %v1157_v16 = vld [vmem:[#allocation2 + $0xb] sm:$0xff]  ;;  %v1158_v40 = vld [vmem:[#allocation2 + $0x13] sm:$0xff]  ;;  %v1093_v41 = vmul.f32 %v4550_v30, %v1057_v15  ;;  %v825_v48 = vadd.f32 %v793_v13, %v725_v31  ;;  %v1094_v63 = vmul.f32 %v4550_v30, %v1058_v36  ;;  %v895_v12 = vmul.f32 %v4542_v24, %v859_v47  ;;  %v760_v15 = vld [vmem:[#allocation2 + $0x1e] sm:$0xff] }
  0x24   : > { %v1193_v42 = vmul.f32 %v4559_v38, %v1157_v16  ;;  %v659_v45 = vld [vmem:[#allocation2 + $0x15] sm:$0xff]  ;;  %v1194_v0 = vmul.f32 %v4559_v38, %v1158_v40  ;;  %v860_v11 = vld [vmem:[#allocation2 + $0x1f] sm:$0xff]  ;;  %v826_v13 = vadd.f32 %v794_v34, %v726_v52  ;;  %v696_v22 = vmul.f32 %v4529_v17, %v660_v14  ;;  %v861_v52 = vld [vmem:[#allocation2 + $0x27] sm:$0xff] }
  0x25   : > { %v695_v53 = vmul.f32 %v4529_v17, %v659_v45  ;;  %v925_v16 = vadd.f32 %v893_v20, %v825_v48  ;;  %v1059_v21 = vld [vmem:[#allocation2 + $0x1a] sm:$0xff]  ;;  %v995_v31 = vmul.f32 %v4544_v25, %v959_v61  ;;  %v796_v33 = vmul.f32 %v4538_v23, %v760_v15  ;;  %v661_v36 = vld [vmem:[#allocation2 + $0x25] sm:$0xff] }
  0x26   : > { %v960_v26 = vld [vmem:[#allocation2 + $0x21] sm:$0xff]  ;;  %v896_v35 = vmul.f32 %v4542_v24, %v860_v11  ;;  %v4662_v45 = vmul.f32 %v4514_v9, %v4576_v49  ;;  %v926_v34 = vadd.f32 %v894_v43, %v826_v13  ;;  %v728_v47 = vadd.f32 %v696_v22, %v4582_v51  ;;  %v662_v43 = vld [vmem:[#allocation2 + $0x2d] sm:$0xff] }
  0x27   : > { %v727_v39 = vadd.f32 %v695_v53, %v4569_v44  ;;  %v761_v40 = vld [vmem:[#allocation2 + $0x26] sm:$0xff]  ;;  %v1025_v20 = vadd.f32 %v993_v32, %v925_v16  ;;  %v1159_v44 = vld [vmem:[#allocation2 + $0x1b] sm:$0xff]  ;;  %v1095_v53 = vmul.f32 %v4550_v30, %v1059_v21  ;;  %v996_v61 = vmul.f32 %v4544_v25, %v960_v26 }
  0x28   : > { %v1060_v48 = vld [vmem:[#allocation2 + $0x22] sm:$0xff]  ;;  %v697_v14 = vmul.f32 %v4529_v17, %v661_v36  ;;  %v797_v15 = vmul.f32 %v4538_v23, %v761_v40  ;;  %v1026_v4 = vadd.f32 %v994_v62, %v926_v34  ;;  %v828_v6 = vadd.f32 %v796_v33, %v728_v47  ;;  %v1061_v62 = vld [vmem:[#allocation2 + $0x2a] sm:$0xff] }
  0x29   : > { %v827_v46 = vadd.f32 %v795_v54, %v727_v39  ;;  %v1125_v11 = vadd.f32 %v1093_v41, %v1025_v20  ;;  %v961_v32 = vld [vmem:[#allocation2 + $0x29] sm:$0xff]  ;;  %v1195_v16 = vmul.f32 %v4559_v38, %v1159_v44  ;;  %v1096_v51 = vmul.f32 %v4550_v30, %v1060_v48  ;;  %v763_v44 = vld [vmem:[#allocation2 + $0x36] sm:$0xff] }
  0x2a   : > { %v762_v54 = vld [vmem:[#allocation2 + $0x2e] sm:$0xff]  ;;  %v1160_v13 = vld [vmem:[#allocation2 + $0x23] sm:$0xff]  ;;  %v729_v39 = vadd.f32 %v697_v14, %v4599_v58  ;;  %v897_v21 = vmul.f32 %v4542_v24, %v861_v52  ;;  %v1126_v26 = vadd.f32 %v1094_v63, %v1026_v4  ;;  %v928_v41 = vadd.f32 %v896_v35, %v828_v6  ;;  %v863_v14 = vld [vmem:[#allocation2 + $0x37] sm:$0xff] }
  0x2b   : > { %v927_v49 = vadd.f32 %v895_v12, %v827_v46  ;;  %v4673_v22 = vadd.f32 %v1193_v42, %v1125_v11  ;;  %v862_v12 = vld [vmem:[#allocation2 + $0x2f] sm:$0xff]  ;;  %v997_v40 = vmul.f32 %v4544_v25, %v961_v32  ;;  %v698_v20 = vmul.f32 %v4529_v17, %v662_v43 }
  0x2c   : > { %v829_v33 = vadd.f32 %v797_v15, %v729_v39  ;;  %v798_v34 = vmul.f32 %v4538_v23, %v762_v54  ;;  %v663_v46 = vld [vmem:[#allocation2 + $0x35] sm:$0xff]  ;;  %v4679_v58 = vadd.f32 %v1194_v0, %v1126_v26  ;;  %v1028_v47 = vadd.f32 %v996_v61, %v928_v41  ;;  %v1161_v6 = vld [vmem:[#allocation2 + $0x2b] sm:$0xff]  ;;  %v664_v61 = vld [vmem:[#allocation2 + $0x3d] sm:$0xff] }
  0x2d   : > { %v1027_v36 = vadd.f32 %v995_v31, %v927_v49  ;;  %1257 = vadd.xlane.f32.xlu0 %v4673_v22  ;;  %v1196_v4 = vmul.f32 %v4559_v38, %v1160_v13  ;;  %v962_v63 = vld [vmem:[#allocation2 + $0x31] sm:$0xff]  ;;  %v1097_v35 = vmul.f32 %v4550_v30, %v1061_v62  ;;  %v730_v48 = vadd.f32 %v698_v20, %v4602_v59  ;;  %v963_v59 = vld [vmem:[#allocation2 + $0x39] sm:$0xff]  ;;  %v665_v20 = vld [vmem:[#allocation2 + $0x45] sm:$0xff] }
  0x2e   : > { %v929_v31 = vadd.f32 %v897_v21, %v829_v33  ;;  %v898_v52 = vmul.f32 %v4542_v24, %v862_v12  ;;  %v1128_v11 = vadd.f32 %v1096_v51, %v1028_v47  ;;  %v1062_v49 = vld [vmem:[#allocation2 + $0x32] sm:$0xff]  ;;  %v699_v0 = vmul.f32 %v4529_v17, %v663_v46  ;;  %v764_v21 = vld [vmem:[#allocation2 + $0x3e] sm:$0xff] }
  0x2f   : > { %v1127_v42 = vadd.f32 %v1095_v53, %v1027_v36  ;;  %v799_v53 = vmul.f32 %v4538_v23, %v763_v44  ;;  %v1197_v43 = vmul.f32 %v4559_v38, %v1161_v6  ;;  %v830_v54 = vadd.f32 %v798_v34, %v730_v48  ;;  %v1162_v39 = vld [vmem:[#allocation2 + $0x33] sm:$0xff]  ;;  %v864_v36 = vld [vmem:[#allocation2 + $0x3f] sm:$0xff] }
  0x30   : > { %v1029_v32 = vadd.f32 %v997_v40, %v929_v31  ;;  %v998_v13 = vmul.f32 %v4544_v25, %v962_v63  ;;  %v731_v51 = vadd.f32 %v699_v0, %v4605_v60  ;;  %v899_v26 = vmul.f32 %v4542_v24, %v863_v14  ;;  %v1063_v33 = vld [vmem:[#allocation2 + $0x3a] sm:$0xff]  ;;  %v765_v34 = vld [vmem:[#allocation2 + $0x46] sm:$0xff] }
  0x31   : > { %v4685_v15 = vadd.f32 %v1195_v16, %v1127_v42  ;;  %1259 = vadd.xlane.f32.xlu0 %v4679_v58  ;;  %v4693_v16 = vadd.f32 %v1196_v4, %v1128_v11  ;;  %v930_v62 = vadd.f32 %v898_v52, %v830_v54  ;;  %v1098_v12 = vmul.f32 %v4550_v30, %v1062_v49  ;;  %v1163_v47 = vld [vmem:[#allocation2 + $0x3b] sm:$0xff]  ;;  %v865_v52 = vld [vmem:[#allocation2 + $0x47] sm:$0xff] }
  0x32   : > { %v1129_v41 = vadd.f32 %v1097_v35, %v1029_v32  ;;  %v700_v40 = vmul.f32 %v4529_v17, %v664_v61  ;;  %v1198_v46 = vmul.f32 %v4559_v38, %v1162_v39  ;;  %v831_v44 = vadd.f32 %v799_v53, %v731_v51  ;;  %v964_v4 = vld [vmem:[#allocation2 + $0x41] sm:$0xff]  ;;  %v666_v53 = vld [vmem:[#allocation2 + $0x4d] sm:$0xff] }
  0x33   : > { %1261 = vadd.xlane.f32.xlu1 %v4685_v15  ;;  %v999_v42 = vmul.f32 %v4544_v25, %v963_v59  ;;  %v800_v60 = vmul.f32 %v4538_v23, %v764_v21  ;;  %v1030_v63 = vadd.f32 %v998_v13, %v930_v62  ;;  %v900_v35 = vmul.f32 %v4542_v24, %v864_v36  ;;  %v1064_v48 = vld [vmem:[#allocation2 + $0x42] sm:$0xff]  ;;  %v766_v61 = vld [vmem:[#allocation2 + $0x4e] sm:$0xff] }
  0x34   : > { %v4702_v6 = vadd.f32 %v1197_v43, %v1129_v41  ;;  %v732_v31 = vadd.f32 %v700_v40, %v4612_v1  ;;  %v931_v14 = vadd.f32 %v899_v26, %v831_v44  ;;  %v1099_v11 = vmul.f32 %v4550_v30, %v1063_v33  ;;  %v1164_v13 = vld [vmem:[#allocation2 + $0x43] sm:$0xff]  ;;  %v866_v41 = vld [vmem:[#allocation2 + $0x4f] sm:$0xff] }
  0x35   : > { %v701_v49 = vmul.f32 %v4529_v17, %v665_v20  ;;  %v801_v0 = vmul.f32 %v4538_v23, %v765_v34  ;;  %v1130_v32 = vadd.f32 %v1098_v12, %v1030_v63  ;;  %v1199_v1 = vmul.f32 %v4559_v38, %v1163_v47  ;;  %v965_v39 = vld [vmem:[#allocation2 + $0x49] sm:$0xff]  ;;  %v667_v20 = vld [vmem:[#allocation2 + $0x55] sm:$0xff] }
  0x36   : > { %1265 = vadd.xlane.f32.xlu0 %v4702_v6  ;;  %v832_v43 = vadd.f32 %v800_v60, %v732_v31  ;;  %v1000_v54 = vmul.f32 %v4544_v25, %v964_v4  ;;  %v1031_v59 = vadd.f32 %v999_v42, %v931_v14  ;;  %v1100_v21 = vmul.f32 %v4550_v30, %v1064_v48  ;;  %v1065_v36 = vld [vmem:[#allocation2 + $0x4a] sm:$0xff]  ;;  %v767_v34 = vld [vmem:[#allocation2 + $0x56] sm:$0xff] }
  0x37   : > { %1263 = vadd.xlane.f32.xlu1 %v4693_v16  ;;  %v733_v51 = vadd.f32 %v701_v49, %v4615_v2  ;;  %v901_v26 = vmul.f32 %v4542_v24, %v865_v52  ;;  %v4716_v62 = vadd.f32 %v1198_v46, %v1130_v32  ;;  %v702_v12 = vmul.f32 %v4529_v17, %v666_v53  ;;  %v1165_v2 = vld [vmem:[#allocation2 + $0x4b] sm:$0xff]  ;;  %v867_v52 = vld [vmem:[#allocation2 + $0x57] sm:$0xff] }
  0x38   : > { %v932_v33 = vadd.f32 %v900_v35, %v832_v43  ;;  %v802_v40 = vmul.f32 %v4538_v23, %v766_v61  ;;  %v1131_v44 = vadd.f32 %v1099_v11, %v1031_v59  ;;  %v1200_v42 = vmul.f32 %v4559_v38, %v1164_v13  ;;  %v966_v4 = vld [vmem:[#allocation2 + $0x51] sm:$0xff]  ;;  %v668_v53 = vld [vmem:[#allocation2 + $0x5d] sm:$0xff] }
  0x39   : > { %v833_v47 = vadd.f32 %v801_v0, %v733_v51  ;;  %v1001_v60 = vmul.f32 %v4544_v25, %v965_v39  ;;  %v1101_v46 = vmul.f32 %v4550_v30, %v1065_v36  ;;  %v734_v31 = vadd.f32 %v702_v12, %v4618_v8  ;;  %v1066_v48 = vld [vmem:[#allocation2 + $0x52] sm:$0xff]  ;;  %v768_v61 = vld [vmem:[#allocation2 + $0x5e] sm:$0xff] }
  0x3a   : > { %v1032_v63 = vadd.f32 %v1000_v54, %v932_v33  ;;  %v902_v35 = vmul.f32 %v4542_v24, %v866_v41  ;;  %v4726_v14 = vadd.f32 %v1199_v1, %v1131_v44  ;;  %v703_v49 = vmul.f32 %v4529_v17, %v667_v20  ;;  %v1166_v8 = vld [vmem:[#allocation2 + $0x53] sm:$0xff]  ;;  %v868_v41 = vld [vmem:[#allocation2 + $0x5f] sm:$0xff] }
  0x3b   : > { %1267 = vadd.xlane.f32.xlu1 %v4716_v62  ;;  %v933_v11 = vadd.f32 %v901_v26, %v833_v47  ;;  %v803_v0 = vmul.f32 %v4538_v23, %v767_v34  ;;  %v1201_v43 = vmul.f32 %v4559_v38, %v1165_v2  ;;  %v834_v54 = vadd.f32 %v802_v40, %v734_v31  ;;  %v967_v39 = vld [vmem:[#allocation2 + $0x59] sm:$0xff]  ;;  %v669_v20 = vld [vmem:[#allocation2 + $0x65] sm:$0xff] }
  0x3c   : > { %v1132_v32 = vadd.f32 %v1100_v21, %v1032_v63  ;;  %v1002_v13 = vmul.f32 %v4544_v25, %v966_v4  ;;  %1269 = vadd.xlane.f32.xlu0 %v4726_v14  ;;  %v1102_v1 = vmul.f32 %v4550_v30, %v1066_v48  ;;  %v735_v51 = vadd.f32 %v703_v49, %v4624_v18  ;;  %v1067_v36 = vld [vmem:[#allocation2 + $0x5a] sm:$0xff]  ;;  %v769_v34 = vld [vmem:[#allocation2 + $0x66] sm:$0xff] }
  0x3d   : > { %v1033_v59 = vadd.f32 %v1001_v60, %v933_v11  ;;  %v903_v26 = vmul.f32 %v4542_v24, %v867_v52  ;;  %v934_v21 = vadd.f32 %v902_v35, %v834_v54  ;;  %v704_v12 = vmul.f32 %v4529_v17, %v668_v53  ;;  %v1167_v18 = vld [vmem:[#allocation2 + $0x5b] sm:$0xff]  ;;  %v869_v52 = vld [vmem:[#allocation2 + $0x67] sm:$0xff] }
  0x3e   : > { %v4736_v33 = vadd.f32 %v1200_v42, %v1132_v32  ;;  %v804_v40 = vmul.f32 %v4538_v23, %v768_v61  ;;  %v1202_v47 = vmul.f32 %v4559_v38, %v1166_v8  ;;  %v835_v60 = vadd.f32 %v803_v0, %v735_v51  ;;  %v968_v4 = vld [vmem:[#allocation2 + $0x61] sm:$0xff]  ;;  %v670_v53 = vld [vmem:[#allocation2 + $0x6d] sm:$0xff] }
  0x3f   : > { %v1133_v44 = vadd.f32 %v1101_v46, %v1033_v59  ;;  %v1003_v2 = vmul.f32 %v4544_v25, %v967_v39  ;;  %v1034_v63 = vadd.f32 %v1002_v13, %v934_v21  ;;  %v1103_v42 = vmul.f32 %v4550_v30, %v1067_v36  ;;  %v1068_v48 = vld [vmem:[#allocation2 + $0x62] sm:$0xff]  ;;  %v770_v61 = vld [vmem:[#allocation2 + $0x6e] sm:$0xff] }
  0x40   : > { %1271 = vadd.xlane.f32.xlu1 %v4736_v33  ;;  %v736_v31 = vadd.f32 %v704_v12, %v4627_v19  ;;  %v904_v35 = vmul.f32 %v4542_v24, %v868_v41  ;;  %v935_v46 = vadd.f32 %v903_v26, %v835_v60  ;;  %v705_v49 = vmul.f32 %v4529_v17, %v669_v20  ;;  %v1168_v19 = vld [vmem:[#allocation2 + $0x63] sm:$0xff]  ;;  %v870_v41 = vld [vmem:[#allocation2 + $0x6f] sm:$0xff] }
  0x41   : > { %v4746_v11 = vadd.f32 %v1201_v43, %v1133_v44  ;;  %v805_v0 = vmul.f32 %v4538_v23, %v769_v34  ;;  %v1134_v32 = vadd.f32 %v1102_v1, %v1034_v63  ;;  %v1203_v54 = vmul.f32 %v4559_v38, %v1167_v18  ;;  %v969_v39 = vld [vmem:[#allocation2 + $0x69] sm:$0xff]  ;;  %v671_v34 = vld [vmem:[#allocation2 + $0x75] sm:$0xff] }
  0x42   : > { %v836_v13 = vadd.f32 %v804_v40, %v736_v31  ;;  %v1004_v8 = vmul.f32 %v4544_v25, %v968_v4  ;;  %v1035_v59 = vadd.f32 %v1003_v2, %v935_v46  ;;  %v1104_v43 = vmul.f32 %v4550_v30, %v1068_v48  ;;  %v1069_v36 = vld [vmem:[#allocation2 + $0x6a] sm:$0xff]  ;;  %v771_v44 = vld [vmem:[#allocation2 + $0x76] sm:$0xff] }
  0x43   : > { %1273 = vadd.xlane.f32.xlu0 %v4746_v11  ;;  %v737_v51 = vadd.f32 %v705_v49, %v4631_v27  ;;  %v905_v26 = vmul.f32 %v4542_v24, %v869_v52  ;;  %v4756_v21 = vadd.f32 %v1202_v47, %v1134_v32  ;;  %v1169_v12 = vld [vmem:[#allocation2 + $0x6b] sm:$0xff]  ;;  %v706_v40 = vmul.f32 %v4529_v17, %v670_v53  ;;  %v871_v31 = vld [vmem:[#allocation2 + $0x77] sm:$0xff] }
  0x44   : > { %v936_v1 = vadd.f32 %v904_v35, %v836_v13  ;;  %v806_v20 = vmul.f32 %v4538_v23, %v770_v61  ;;  %v1135_v60 = vadd.f32 %v1103_v42, %v1035_v59  ;;  %v1204_v2 = vmul.f32 %v4559_v38, %v1168_v19  ;;  %v970_v4 = vld [vmem:[#allocation2 + $0x71] sm:$0xff]  ;;  %v971_v46 = vld [vmem:[#allocation2 + $0x79] sm:$0xff]  ;;  %v4767_v53 = vld [vmem:[%s4510_s21 + $0xa8] sm:$0xff] }
  0x45   : > { %v837_v18 = vadd.f32 %v805_v0, %v737_v51  ;;  %v1005_v27 = vmul.f32 %v4544_v25, %v969_v39  ;;  %v1070_v63 = vld [vmem:[#allocation2 + $0x72] sm:$0xff]  ;;  %1275 = vadd.xlane.f32.xlu1 %v4756_v21  ;;  %v1105_v35 = vmul.f32 %v4550_v30, %v1069_v36  ;;  %v738_v48 = vadd.f32 %v706_v40, %v4634_v28  ;;  %v672_v49 = vld [vmem:[#allocation2 + $0x7d] sm:$0xff]  ;;  %v4788_v40 = vld [vmem:[%s4510_s21 + $0xc8] sm:$0xff] }
  0x46   : > { %v1036_v47 = vadd.f32 %v1004_v8, %v936_v1  ;;  %v906_v42 = vmul.f32 %v4542_v24, %v870_v41  ;;  %v1170_v52 = vld [vmem:[#allocation2 + $0x73] sm:$0xff]  ;;  %v772_v0 = vld [vmem:[#allocation2 + $0x7e] sm:$0xff]  ;;  %v4769_v61 = vadd.f32 %v1203_v54, %v1135_v60  ;;  %v707_v13 = vmul.f32 %v4529_v17, %v671_v34  ;;  %570 = vst [vmem:[#allocation2 + $0xb0] sm:$0xff] %v4767_v53 }
  0x47   : > { %v937_v32 = vadd.f32 %v905_v26, %v837_v18  ;;  %v807_v8 = vmul.f32 %v4538_v23, %v771_v44  ;;  %v1071_v19 = vld [vmem:[#allocation2 + $0x7a] sm:$0xff]  ;;  %v4775_v39 = vld [vmem:[%s4510_s21 + $0xb0] sm:$0xff]  ;;  %v1205_v54 = vmul.f32 %v4559_v38, %v1169_v12  ;;  %v838_v36 = vadd.f32 %v806_v20, %v738_v48  ;;  %v673_v41 = vld [vmem:[#allocation2 + $0x85] sm:$0xff]  ;;  %574 = vst [vmem:[#allocation2 + $0xd0] sm:$0xff] %v4788_v40 }
  0x48   : > { %v872_v28 = vld [vmem:[#allocation2 + $0x7f] sm:$0xff]  ;;  %v1136_v51 = vadd.f32 %v1104_v43, %v1036_v47  ;;  %v1006_v26 = vmul.f32 %v4544_v25, %v970_v4  ;;  %571 = vst [vmem:[#allocation2 + $0xb8] sm:$0xff] %v4775_v39  ;;  %v4791_v34 = vld [vmem:[%s4510_s21 + $0xd0] sm:$0xff]  ;;  %1277 = vadd.xlane.f32.xlu0 %v4769_v61  ;;  %v1106_v12 = vmul.f32 %v4550_v30, %v1070_v63 }
  0x49   : > { %v4778_v59 = vld [vmem:[%s4510_s21 + $0xb8] sm:$0xff]  ;;  %v4785_v1 = vld [vmem:[%s4510_s21 + $0xc0] sm:$0xff]  ;;  %v1037_v43 = vadd.f32 %v1005_v27, %v937_v32  ;;  %v739_v20 = vadd.f32 %v707_v13, %v4637_v29  ;;  %v907_v44 = vmul.f32 %v4542_v24, %v871_v31  ;;  %575 = vst [vmem:[#allocation2 + $0xd8] sm:$0xff] %v4791_v34  ;;  %v938_v47 = vadd.f32 %v906_v42, %v838_v36 }
  0x4a   : > { %572 = vst [vmem:[#allocation2 + $0xc0] sm:$0xff] %v4778_v59  ;;  %v972_v60 = vld [vmem:[#allocation2 + $0x81] sm:$0xff]  ;;  %573 = vst [vmem:[#allocation2 + $0xc8] sm:$0xff] %v4785_v1  ;;  %v4800_v4 = vadd.f32 %v1204_v2, %v1136_v51  ;;  %v708_v27 = vmul.f32 %v4529_v17, %v672_v49  ;;  %v808_v63 = vmul.f32 %v4538_v23, %v772_v0  ;;  %v4805_v29 = vld [vmem:[%s4510_s21 + $0xd8] sm:$0xff] }
  0x4b   : > { %v773_v18 = vld [vmem:[#allocation2 + $0x86] sm:$0xff]  ;;  %v1171_v48 = vld [vmem:[#allocation2 + $0x7b] sm:$0xff]  ;;  %v1137_v31 = vadd.f32 %v1105_v35, %v1037_v43  ;;  %v1206_v13 = vmul.f32 %v4559_v38, %v1170_v52  ;;  %v839_v7 = vadd.f32 %v807_v8, %v739_v20  ;;  %v1007_v5 = vmul.f32 %v4544_v25, %v971_v46  ;;  %576 = vst [vmem:[#allocation2 + $0xe0] sm:$0xff] %v4805_v29 }
  0x4c   : > { %v873_v32 = vld [vmem:[#allocation2 + $0x87] sm:$0xff]  ;;  %1279 = vadd.xlane.f32.xlu1 %v4800_v4  ;;  %v1038_v2 = vadd.f32 %v1006_v26, %v938_v47  ;;  %v1107_v42 = vmul.f32 %v4550_v30, %v1071_v19  ;;  %v740_v49 = vadd.f32 %v708_v27, %v4646_v37  ;;  %v908_v0 = vmul.f32 %v4542_v24, %v872_v28 }
  0x4d   : > { %v4814_v51 = vadd.f32 %v1205_v54, %v1137_v31  ;;  %v939_v36 = vadd.f32 %v907_v44, %v839_v7  ;;  %v1072_v35 = vld [vmem:[#allocation2 + $0x82] sm:$0xff]  ;;  %v641_v52 = vadd.f32 %v4519_v10, %v4662_v45  ;;  %v709_v46 = vmul.f32 %v4529_v17, %v673_v41  ;;  %v674_v47 = vld [vmem:[#allocation2 + $0x8d] sm:$0xff] }
  0x4e   : > { %v1138_v8 = vadd.f32 %v1106_v12, %v1038_v2  ;;  %v840_v43 = vadd.f32 %v808_v63, %v740_v49  ;;  %v1008_v20 = vmul.f32 %v4544_v25, %v972_v60  ;;  %v809_v26 = vmul.f32 %v4538_v23, %v773_v18  ;;  %v973_v19 = vld [vmem:[#allocation2 + $0x89] sm:$0xff]  ;;  %v675_v49 = vld [vmem:[#allocation2 + $0x95] sm:$0xff] }
  0x4f   : > { %1281 = vadd.xlane.f32.xlu0 %v4814_v51  ;;  %v1039_v37 = vadd.f32 %v1007_v5, %v939_v36  ;;  %v1207_v28 = vmul.f32 %v4559_v38, %v1171_v48  ;;  %v1172_v7 = vld [vmem:[#allocation2 + $0x83] sm:$0xff]  ;;  %v741_v54 = vadd.f32 %v709_v46, %v641_v52  ;;  %v909_v44 = vmul.f32 %v4542_v24, %v873_v32  ;;  %v774_v45 = vld [vmem:[#allocation2 + $0x8e] sm:$0xff] }
  0x50   : > { %v4824_v27 = vadd.f32 %v1206_v13, %v1138_v8  ;;  %v940_v41 = vadd.f32 %v908_v0, %v840_v43  ;;  %v1108_v12 = vmul.f32 %v4550_v30, %v1072_v35  ;;  %v1073_v60 = vld [vmem:[#allocation2 + $0x8a] sm:$0xff]  ;;  %v603_v18 = vmul.f32 %v4514_v9, %v4579_v50  ;;  %v775_v43 = vld [vmem:[#allocation2 + $0x96] sm:$0xff] }
  0x51   : > { %v874_v63 = vld [vmem:[#allocation2 + $0x8f] sm:$0xff]  ;;  %v1139_v31 = vadd.f32 %v1107_v42, %v1039_v37  ;;  %v841_v2 = vadd.f32 %v809_v26, %v741_v54  ;;  %v1009_v5 = vmul.f32 %v4544_v25, %v973_v19  ;;  %v710_v48 = vmul.f32 %v4529_v17, %v674_v47  ;;  %v676_v37 = vld [vmem:[#allocation2 + $0x9d] sm:$0xff] }
  0x52   : > { %1283 = vadd.xlane.f32.xlu1 %v4824_v27  ;;  %v1040_v32 = vadd.f32 %v1008_v20, %v940_v41  ;;  %v1208_v13 = vmul.f32 %v4559_v38, %v1172_v7  ;;  %v1173_v0 = vld [vmem:[#allocation2 + $0x8b] sm:$0xff]  ;;  %v642_v36 = vadd.f32 %v4519_v10, %v603_v18  ;;  %v810_v35 = vmul.f32 %v4538_v23, %v774_v45  ;;  %v875_v45 = vld [vmem:[#allocation2 + $0x97] sm:$0xff] }
  0x53   : > { %v974_v52 = vld [vmem:[#allocation2 + $0x91] sm:$0xff]  ;;  %v4835_v50 = vadd.f32 %v1207_v28, %v1139_v31  ;;  %v941_v42 = vadd.f32 %v909_v44, %v841_v2  ;;  %v1109_v46 = vmul.f32 %v4550_v30, %v1073_v60  ;;  %v910_v8 = vmul.f32 %v4542_v24, %v874_v63  ;;  %v975_v2 = vld [vmem:[#allocation2 + $0x99] sm:$0xff] }
  0x54   : > { %v1140_v26 = vadd.f32 %v1108_v12, %v1040_v32  ;;  %v742_v19 = vadd.f32 %v710_v48, %v642_v36  ;;  %v604_v20 = vmul.f32 %v4514_v9, %v4590_v55  ;;  %v711_v47 = vmul.f32 %v4529_v17, %v675_v49  ;;  %v1074_v44 = vld [vmem:[#allocation2 + $0x92] sm:$0xff]  ;;  %v776_v55 = vld [vmem:[#allocation2 + $0x9e] sm:$0xff] }
  0x55   : > { %6389 = vst [vmem:[#allocation4_spill] sm:$0xff] %v4835_v50  ;;  %1285 = vadd.xlane.f32.xlu0 %v4835_v50  ;;  %v1041_v7 = vadd.f32 %v1009_v5, %v941_v42  ;;  %v1209_v28 = vmul.f32 %v4559_v38, %v1173_v0  ;;  %v1010_v54 = vmul.f32 %v4544_v25, %v974_v52  ;;  %v1174_v31 = vld [vmem:[#allocation2 + $0x93] sm:$0xff]  ;;  %v876_v36 = vld [vmem:[#allocation2 + $0x9f] sm:$0xff] }
  0x56   : > { %v4845_v41 = vadd.f32 %v1208_v13, %v1140_v26  ;;  %v842_v60 = vadd.f32 %v810_v35, %v742_v19  ;;  %v643_v12 = vadd.f32 %v4519_v10, %v604_v20  ;;  %v811_v18 = vmul.f32 %v4538_v23, %v775_v43  ;;  %v1075_v52 = vld [vmem:[#allocation2 + $0x9a] sm:$0xff] }
  0x57   : > { %v1141_v63 = vadd.f32 %v1109_v46, %v1041_v7  ;;  %v605_v5 = vmul.f32 %v4514_v9, %v4593_v56  ;;  %v712_v48 = vmul.f32 %v4529_v17, %v676_v37  ;;  %v1110_v32 = vmul.f32 %v4550_v30, %v1074_v44  ;;  %v976_v19 = vld [vmem:[#allocation2 + $0xa1] sm:$0xff] }
  0x58   : > { %6390 = vst [vmem:[#allocation5_spill] sm:$0xff] %v4845_v41  ;;  %1287 = vadd.xlane.f32.xlu1 %v4845_v41  ;;  %v942_v49 = vadd.f32 %v910_v8, %v842_v60  ;;  %v743_v13 = vadd.f32 %v711_v47, %v643_v12  ;;  %v911_v0 = vmul.f32 %v4542_v24, %v875_v45  ;;  %v1175_v20 = vld [vmem:[#allocation2 + $0x9b] sm:$0xff]  ;;  %v4869_v45 = vld [vmem:[%s4510_s21 + $0xe8] sm:$0xff]  ;;  %v4872_v60 = vld [vmem:[%s4510_s21 + $0xf0] sm:$0xff] }
  0x59   : > { %v4855_v35 = vadd.f32 %v1209_v28, %v1141_v63  ;;  %v644_v42 = vadd.f32 %v4519_v10, %v605_v5  ;;  %v812_v46 = vmul.f32 %v4538_v23, %v776_v55  ;;  %v1210_v43 = vmul.f32 %v4559_v38, %v1174_v31  ;;  %v4864_v7 = vld [vmem:[%s4510_s21 + $0xe0] sm:$0xff]  ;;  %578 = vst [vmem:[#allocation2 + $0xf0] sm:$0xff] %v4869_v45  ;;  %v4878_v55 = vld [vmem:[%s4510_s21 + $0xf8] sm:$0xff] }
  0x5a   : > { %v1042_v56 = vadd.f32 %v1010_v54, %v942_v49  ;;  %v843_v8 = vadd.f32 %v811_v18, %v743_v13  ;;  %v1011_v26 = vmul.f32 %v4544_v25, %v975_v2  ;;  %v912_v37 = vmul.f32 %v4542_v24, %v876_v36  ;;  %v1076_v44 = vld [vmem:[#allocation2 + $0xa2] sm:$0xff]  ;;  %577 = vst [vmem:[#allocation2 + $0xe8] sm:$0xff] %v4864_v7 }
  0x5b   : > { %6391 = vst [vmem:[#allocation6_spill] sm:$0xff] %v4855_v35  ;;  %1289 = vadd.xlane.f32.xlu0 %v4855_v35  ;;  %v744_v47 = vadd.f32 %v712_v48, %v644_v42  ;;  %v1111_v54 = vmul.f32 %v4550_v30, %v1075_v52  ;;  %v1012_v18 = vmul.f32 %v4544_v25, %v976_v19  ;;  %579 = vst [vmem:[#allocation2 + $0xf8] sm:$0xff] %v4872_v60  ;;  %v1176_v5 = vld [vmem:[#allocation2 + $0xa3] sm:$0xff]  ;;  %v4030_v19 = vld [vmem:[%s6371_s7 + $0x2c] ss:$16 sps:$4 sm:$0xff]  }
  0x5c   : > { %v1142_v10 = vadd.f32 %v1110_v32, %v1042_v56  ;;  %v943_v28 = vadd.f32 %v911_v0, %v843_v8  ;;  %v1211_v2 = vmul.f32 %v4559_v38, %v1175_v20  ;;  %580 = vst [vmem:[#allocation2 + $0x100] sm:$0xff] %v4878_v55  ;;  %v1112_v49 = vmul.f32 %v4550_v30, %v1076_v44  ;;  %v4024_v56 = vld [vmem:[%s6371_s7 + $0xc] ss:$16 sps:$4 sm:$0xff]   ;;  %v4027_v8 = vld [vmem:[%s6371_s7 + $0x8] ss:$16 sps:$4 sm:$0xff]  }
  0x5d   : > { %v844_v12 = vadd.f32 %v812_v46, %v744_v47  ;;  %v1212_v0 = vmul.f32 %v4559_v38, %v1176_v5  ;;  %v4022_v46 = vld [vmem:[%s6371_s7 + $0x4] ss:$16 sps:$4 sm:$0xff]   ;;  %2111 = vmatprep.subr.bf16.mxu1 %v4024_v56  ;;  %v606_v20 = vmul.f32 %v4514_v9, %v4596_v57  ;;  %v607_v44 = vmul.f32 %v4514_v9, %v4767_v53 }
  0x5e   : > { %v4880_v63 = vadd.f32 %v1210_v43, %v1142_v10  ;;  %v1043_v31 = vadd.f32 %v1011_v26, %v943_v28  ;;  %v4026_v43 = vld [vmem:[%s6371_s7] ss:$16 sps:$4 sm:$0xff]   ;;  %v4028_v26 = vld [vmem:[%s6371_s7 + $0x24] ss:$16 sps:$4 sm:$0xff]   ;;  %1918 = vmatprep.subr.bf16.mxu0 %v4022_v46  ;;  %2112 = vmatpush1.bf16.msra.mxu1 %v4027_v8 }
  0x5f   : > { %v944_v48 = vadd.f32 %v912_v37, %v844_v12  ;;  %1919 = vmatpush1.bf16.msra.mxu0 %v4026_v43  ;;  %2113 = vmatprep.subr.bf16.mxu1 %v4030_v19  ;;  %v677_v47 = vld [vmem:[#allocation2 + $0xa5] sm:$0xff]  ;;  %v4916_v37 = vld [vmem:[%s6368_s4] ss:$0 sm:$0xff]  ;;  %v678_v12 = vld [vmem:[#allocation2 + $0xad] sm:$0xff] }
  0x60   : > { %6392 = vst [vmem:[#allocation7_spill] sm:$0xff] %v4880_v63  ;;  %1291 = vadd.xlane.f32.xlu1 %v4880_v63  ;;  %v1143_v32 = vadd.f32 %v1111_v54, %v1043_v31  ;;  %1920 = vmatprep.subr.bf16.mxu0 %v4028_v26  ;;  %v645_v10 = vadd.f32 %v4916_v37, %v606_v20  ;;  %v777_v54 = vld [vmem:[#allocation2 + $0xa6] sm:$0xff]  ;;  %v878_v56 = vld [vmem:[#allocation2 + $0xaf] sm:$0xff] }
  0x61   : > { %v1044_v13 = vadd.f32 %v1012_v18, %v944_v48  ;;  %v713_v28 = vmul.f32 %v4529_v17, %v677_v47  ;;  %v813_v31 = vmul.f32 %v4538_v23, %v777_v54  ;;  %v646_v57 = vadd.f32 %v4916_v37, %v607_v44  ;;  %v779_v26 = vld [vmem:[#allocation2 + $0xb6] sm:$0xff]  ;;  %v1077_v47 = vld [vmem:[#allocation2 + $0xaa] sm:$0xff] }
  0x62   : > { %v4887_v36 = vadd.f32 %v1211_v2, %v1143_v32  ;;  %v877_v2 = vld [vmem:[#allocation2 + $0xa7] sm:$0xff]  ;;  %v714_v5 = vmul.f32 %v4529_v17, %v678_v12  ;;  %v608_v48 = vmul.f32 %v4514_v9, %v4775_v39  ;;  %v679_v32 = vld [vmem:[#allocation2 + $0xb5] sm:$0xff]  ;;  %v914_v39 = vmul.f32 %v4542_v24, %v878_v56 }
  0x63   : > { %v1144_v52 = vadd.f32 %v1112_v49, %v1044_v13  ;;  %v745_v18 = vadd.f32 %v713_v28, %v645_v10  ;;  %v778_v49 = vld [vmem:[#allocation2 + $0xae] sm:$0xff]  ;;  %v715_v8 = vmul.f32 %v4529_v17, %v679_v32  ;;  %v815_v44 = vmul.f32 %v4538_v23, %v779_v26  ;;  %v879_v12 = vld [vmem:[#allocation2 + $0xb7] sm:$0xff] }
  0x64   : > { %6393 = vst [vmem:[#allocation8_spill] sm:$0xff] %v4887_v36  ;;  %1293 = vadd.xlane.f32.xlu0 %v4887_v36  ;;  %v746_v46 = vadd.f32 %v714_v5, %v646_v57  ;;  %v814_v53 = vmul.f32 %v4538_v23, %v778_v49  ;;  %v647_v43 = vadd.f32 %v4916_v37, %v608_v48  ;;  %v978_v28 = vld [vmem:[#allocation2 + $0xb1] sm:$0xff]  ;;  %v681_v57 = vld [vmem:[#allocation2 + $0xc5] sm:$0xff]  ;;  %v979_v56 = vld [vmem:[#allocation2 + $0xb9] sm:$0xff] }
  0x65   : > { %v4890_v42 = vadd.f32 %v1212_v0, %v1144_v52  ;;  %v845_v13 = vadd.f32 %v813_v31, %v745_v18  ;;  %v913_v0 = vmul.f32 %v4542_v24, %v877_v2  ;;  %v977_v52 = vld [vmem:[#allocation2 + $0xa9] sm:$0xff]  ;;  %v609_v18 = vmul.f32 %v4514_v9, %v4778_v59  ;;  %v680_v31 = vld [vmem:[#allocation2 + $0xbd] sm:$0xff] }
  0x66   : > { %v1013_v20 = vmul.f32 %v4544_v25, %v977_v52  ;;  %v846_v10 = vadd.f32 %v814_v53, %v746_v46  ;;  %v747_v54 = vadd.f32 %v715_v8, %v647_v43  ;;  %v610_v2 = vmul.f32 %v4514_v9, %v4785_v1  ;;  %v1177_v49 = vld [vmem:[#allocation2 + $0xab] sm:$0xff]  ;;  %v1178_v46 = vld [vmem:[#allocation2 + $0xb3] sm:$0xff]  ;;  %v780_v8 = vld [vmem:[#allocation2 + $0xbe] sm:$0xff] }
  0x67   : > { %6394 = vst [vmem:[#allocation9_spill] sm:$0xff] %v4890_v42  ;;  %1295 = vadd.xlane.f32.xlu1 %v4890_v42  ;;  %v945_v19 = vadd.f32 %v913_v0, %v845_v13  ;;  %v1113_v48 = vmul.f32 %v4550_v30, %v1077_v47  ;;  %v1014_v32 = vmul.f32 %v4544_v25, %v978_v28  ;;  %v1078_v52 = vld [vmem:[#allocation2 + $0xb2] sm:$0xff]  ;;  %v1179_v47 = vld [vmem:[#allocation2 + $0xbb] sm:$0xff]  ;;  %v781_v28 = vld [vmem:[#allocation2 + $0xc6] sm:$0xff] }
  0x68   : > { %v915_v13 = vmul.f32 %v4542_v24, %v879_v12  ;;  %v946_v0 = vadd.f32 %v914_v39, %v846_v10  ;;  %v847_v53 = vadd.f32 %v815_v44, %v747_v54  ;;  %v648_v59 = vadd.f32 %v4916_v37, %v609_v18  ;;  %v880_v18 = vld [vmem:[#allocation2 + $0xbf] sm:$0xff]  ;;  %v881_v35 = vld [vmem:[#allocation2 + $0xc7] sm:$0xff] }
  0x69   : > { %v1045_v5 = vadd.f32 %v1013_v20, %v945_v19  ;;  %v716_v43 = vmul.f32 %v4529_v17, %v680_v31  ;;  %v649_v1 = vadd.f32 %v4916_v37, %v610_v2  ;;  %v717_v26 = vmul.f32 %v4529_v17, %v681_v57  ;;  %v1079_v20 = vld [vmem:[#allocation2 + $0xba] sm:$0xff]  ;;  %v682_v31 = vld [vmem:[#allocation2 + $0xcd] sm:$0xff]  ;;  %v1080_v36 = vld [vmem:[#allocation2 + $0xc2] sm:$0xff] }
  0x6a   : > { %v1213_v19 = vmul.f32 %v4559_v38, %v1177_v49  ;;  %v611_v39 = vmul.f32 %v4514_v9, %v4788_v40  ;;  %v1114_v54 = vmul.f32 %v4550_v30, %v1078_v52  ;;  %v1214_v44 = vmul.f32 %v4559_v38, %v1178_v46  ;;  %v980_v42 = vld [vmem:[#allocation2 + $0xc1] sm:$0xff] }
  0x6b   : > { %v1145_v10 = vadd.f32 %v1113_v48, %v1045_v5  ;;  %v1015_v12 = vmul.f32 %v4544_v25, %v979_v56  ;;  %v1046_v2 = vadd.f32 %v1014_v32, %v946_v0  ;;  %v947_v3 = vadd.f32 %v915_v13, %v847_v53  ;;  %v1180_v5 = vld [vmem:[#allocation2 + $0xc3] sm:$0xff] }
  0x6c   : > { %v748_v57 = vadd.f32 %v716_v43, %v648_v59  ;;  %v816_v49 = vmul.f32 %v4538_v23, %v780_v8  ;;  %v1115_v63 = vmul.f32 %v4550_v30, %v1079_v20  ;;  %v4954_v40 = vmul.f32 %v4559_v38, %v1179_v47  ;;  %v981_v32 = vld [vmem:[#allocation2 + $0xc9] sm:$0xff]  ;;  %v683_v20 = vld [vmem:[#allocation2 + $0xd5] sm:$0xff] }
  0x6d   : > { %v749_v48 = vadd.f32 %v717_v26, %v649_v1  ;;  %v817_v52 = vmul.f32 %v4538_v23, %v781_v28  ;;  %v916_v56 = vmul.f32 %v4542_v24, %v880_v18  ;;  %v650_v13 = vadd.f32 %v4916_v37, %v611_v39  ;;  %v782_v26 = vld [vmem:[#allocation2 + $0xce] sm:$0xff] }
  0x6e   : > { %v718_v0 = vmul.f32 %v4529_v17, %v682_v31  ;;  %v612_v53 = vmul.f32 %v4514_v9, %v4791_v34  ;;  %v4962_v43 = vadd.f32 %v1213_v19, %v1145_v10  ;;  %v1016_v8 = vmul.f32 %v4544_v25, %v980_v42  ;;  %v1081_v42 = vld [vmem:[#allocation2 + $0xca] sm:$0xff] }
  0x6f   : > { %v4966_v1 = vmul.f32 %v4550_v30, %v1080_v36  ;;  %v1146_v47 = vadd.f32 %v1114_v54, %v1046_v2  ;;  %v1047_v28 = vadd.f32 %v1015_v12, %v947_v3  ;;  %v848_v18 = vadd.f32 %v816_v49, %v748_v57  ;;  %v882_v54 = vld [vmem:[#allocation2 + $0xcf] sm:$0xff] }
  0x70   : > { %v4969_v39 = vmul.f32 %v4559_v38, %v1180_v5  ;;  %v849_v34 = vadd.f32 %v817_v52, %v749_v48  ;;  %v917_v19 = vmul.f32 %v4542_v24, %v881_v35  ;;  %v1017_v10 = vmul.f32 %v4544_v25, %v981_v32  ;;  %v783_v49 = vld [vmem:[#allocation2 + $0xd6] sm:$0xff] }
  0x71   : > { %v750_v41 = vadd.f32 %v718_v0, %v650_v13  ;;  %v818_v50 = vmul.f32 %v4538_v23, %v782_v26  ;;  %v651_v3 = vadd.f32 %v4916_v37, %v612_v53  ;;  %v719_v12 = vmul.f32 %v4529_v17, %v683_v20  ;;  %v684_v5 = vld [vmem:[#allocation2 + $0xdd] sm:$0xff]  ;;  %v1181_v26 = vld [vmem:[#allocation2 + $0xcb] sm:$0xff] }
  0x72   : > { %v613_v35 = vmul.f32 %v4514_v9, %v4805_v29  ;;  %v4983_v48 = vadd.f32 %v1214_v44, %v1146_v47  ;;  %v1147_v52 = vadd.f32 %v1115_v63, %v1047_v28  ;;  %v948_v32 = vadd.f32 %v916_v56, %v848_v18  ;;  %v1082_v29 = vld [vmem:[#allocation2 + $0xd2] sm:$0xff] }
  0x73   : > { %v1117_v13 = vmul.f32 %v4550_v30, %v1081_v42  ;;  %v918_v20 = vmul.f32 %v4542_v24, %v882_v54  ;;  %v850_v44 = vadd.f32 %v818_v50, %v750_v41  ;;  %v751_v47 = vadd.f32 %v719_v12, %v651_v3  ;;  %v784_v3 = vld [vmem:[#allocation2 + $0xde] sm:$0xff] }
  0x74   : > { %v819_v63 = vmul.f32 %v4538_v23, %v783_v49  ;;  %v720_v56 = vmul.f32 %v4529_v17, %v684_v5  ;;  %v1048_v42 = vadd.f32 %v1016_v8, %v948_v32  ;;  %v5001_v54 = vmul.f32 %v4559_v38, %v1181_v26  ;;  %v685_v12 = vld [vmem:[#allocation2 + $0xe5] sm:$0xff]  ;;  %v983_v49 = vld [vmem:[#allocation2 + $0xd9] sm:$0xff] }
  0x75   : > { %v5005_v41 = vmul.f32 %v4550_v30, %v1082_v29  ;;  %v950_v32 = vadd.f32 %v918_v20, %v850_v44  ;;  %v884_v20 = vld [vmem:[#allocation2 + $0xdf] sm:$0xff] }
  0x76   : > { %v851_v26 = vadd.f32 %v819_v63, %v751_v47  ;;  %v785_v44 = vld [vmem:[#allocation2 + $0xe6] sm:$0xff] }
  0xba   : > { %v1258_v46 = vpop.xlane.xlu0 %1257 }
  0xbb   : > { %v1322_v59 = vmul.f32 0.0078125, %v1258_v46 }
  0xbd   : > { %v4972_v31 = vsub.f32 %v4673_v22, %v1322_v59  ;;  %v949_v59 = vadd.f32 %v917_v19, %v849_v34  ;;  %v652_v34 = vadd.f32 %v4916_v37, %v613_v35  ;;  %v614_v19 = vmul.f32 %v4514_v9, %v4864_v7  ;;  %v1083_v35 = vld [vmem:[#allocation2 + $0xda] sm:$0xff] }
  0xbe   : > { %v1260_v46 = vpop.xlane.xlu0 %1259 }
  0xbf   : > { %v1323_v2 = vmul.f32 0.0078125, %v1260_v46  ;;  %v1386_v22 = vmul.f32 %v4972_v31, %v4972_v31  ;;  %v982_v46 = vld [vmem:[#allocation2 + $0xd1] sm:$0xff]  ;;  %v1049_v5 = vadd.f32 %v1017_v10, %v949_v59  ;;  %v1019_v10 = vmul.f32 %v4544_v25, %v983_v49 }
  0xc0   : > { %v1262_v36 = vpop.xlane.xlu1 %1261  ;;  %v1018_v50 = vmul.f32 %v4544_v25, %v982_v46  ;;  %v5026_v59 = vmul.f32 %v4550_v30, %v1083_v35  ;;  %v821_v35 = vmul.f32 %v4538_v23, %v785_v44 }
  0xc1   : > { %v1324_v57 = vmul.f32 0.0078125, %v1262_v36  ;;  %v4987_v0 = vsub.f32 %v4679_v58, %v1323_v2  ;;  %1418 = vadd.xlane.f32.xlu0 %v1386_v22  ;;  %v5014_v22 = vadd.f32 %v4954_v40, %v1147_v52  ;;  %v1148_v40 = vadd.f32 %v4966_v1, %v1048_v42 }
  0xc2   : > { %v1149_v42 = vadd.f32 %v1117_v13, %v1049_v5  ;;  %v616_v5 = vmul.f32 %v4514_v9, %v4872_v60  ;;  %v4033_v60 = vld [vmem:[%s6371_s7 + $0x28] ss:$16 sps:$4 sm:$0xff]  }
  0xc3   : > { %v4990_v53 = vsub.f32 %v4685_v15, %v1324_v57  ;;  %v1387_v58 = vmul.f32 %v4987_v0, %v4987_v0  ;;  %v1266_v18 = vpop.xlane.xlu0 %1265  ;;  %v883_v15 = vld [vmem:[#allocation2 + $0xd7] sm:$0xff]  ;;  %2114 = vmatpush1.bf16.msra.mxu1 %v4033_v60 }
  0xc4   : > { %v1264_v36 = vpop.xlane.xlu1 %1263  ;;  %v1326_v8 = vmul.f32 0.0078125, %v1266_v18  ;;  %v1182_v57 = vld [vmem:[#allocation2 + $0xd3] sm:$0xff]  ;;  %v919_v46 = vmul.f32 %v4542_v24, %v883_v15  ;;  %v721_v18 = vmul.f32 %v4529_v17, %v685_v12  ;;  %v615_v15 = vmul.f32 %v4514_v9, %v4869_v45 }
  0xc5   : > { %v1325_v28 = vmul.f32 0.0078125, %v1264_v36  ;;  %1297 = vadd.xlane.f32.xlu0 %v4962_v43  ;;  %1420 = vadd.xlane.f32.xlu1 %v1387_v58  ;;  %v1388_v7 = vmul.f32 %v4990_v53, %v4990_v53  ;;  %v1183_v36 = vld [vmem:[#allocation2 + $0xdb] sm:$0xff]  ;;  %v752_v58 = vadd.f32 %v720_v56, %v652_v34  ;;  %v5022_v52 = vmul.f32 %v4559_v38, %v1182_v57  ;;  %v686_v34 = vld [vmem:[#allocation2 + $0xed] sm:$0xff] }
  0xc6   : > { %v5030_v47 = vsub.f32 %v4702_v6, %v1326_v8  ;;  %v984_v56 = vld [vmem:[#allocation2 + $0xe1] sm:$0xff]  ;;  %v951_v12 = vadd.f32 %v919_v46, %v851_v26  ;;  %v920_v6 = vmul.f32 %v4542_v24, %v884_v20  ;;  %v722_v13 = vmul.f32 %v4529_v17, %v686_v34 }
  0xc7   : > { %v5009_v2 = vsub.f32 %v4693_v16, %v1325_v28  ;;  %v820_v16 = vmul.f32 %v4538_v23, %v784_v3  ;;  %v653_v28 = vadd.f32 %v4916_v37, %v614_v19  ;;  %v1050_v3 = vadd.f32 %v1018_v50, %v950_v32  ;;  %v1084_v8 = vld [vmem:[#allocation2 + $0xe2] sm:$0xff]  ;;  %v786_v50 = vld [vmem:[#allocation2 + $0xee] sm:$0xff] }
  0xc8   : > { %v1268_v29 = vpop.xlane.xlu1 %1267  ;;  %v1020_v45 = vmul.f32 %v4544_v25, %v984_v56  ;;  %v1390_v26 = vmul.f32 %v5030_v47, %v5030_v47  ;;  %v654_v46 = vadd.f32 %v4916_v37, %v615_v15  ;;  %v886_v56 = vld [vmem:[#allocation2 + $0xef] sm:$0xff]  ;;  %v822_v15 = vmul.f32 %v4538_v23, %v786_v50  ;;  %v1184_v50 = vld [vmem:[#allocation2 + $0xe3] sm:$0xff] }
  0xc9   : > { %6395 = vst [vmem:[#allocation10_spill] sm:$0xff] %v5009_v2  ;;  %1422 = vadd.xlane.f32.xlu0 %v1388_v7  ;;  %1299 = vadd.xlane.f32.xlu1 %v4983_v48  ;;  %v1389_v63 = vmul.f32 %v5009_v2, %v5009_v2  ;;  %v1327_v1 = vmul.f32 0.0078125, %v1268_v29  ;;  %v1270_v19 = vpop.xlane.xlu0 %1269  ;;  %v5037_v7 = vmul.f32 %v4559_v38, %v1183_v36  ;;  %v885_v2 = vld [vmem:[#allocation2 + $0xe7] sm:$0xff]  ;;  %v687_v36 = vld [vmem:[#allocation2 + $0xf5] sm:$0xff] }
  0xca   : > { %v852_v57 = vadd.f32 %v820_v16, %v752_v58  ;;  %v753_v49 = vadd.f32 %v721_v18, %v653_v28  ;;  %v5042_v29 = vadd.f32 %v4969_v39, %v1148_v40  ;;  %v1328_v39 = vmul.f32 0.0078125, %v1270_v19  ;;  %v4032_v58 = vld [vmem:[%s6371_s7 + $0x20] ss:$16 sps:$4 sm:$0xff]   ;;  %v787_v19 = vld [vmem:[#allocation2 + $0xf6] sm:$0xff] }
  0xcb   : > { %v5050_v32 = vsub.f32 %v4716_v62, %v1327_v1  ;;  %v5062_v16 = vadd.f32 %v5001_v54, %v1149_v42  ;;  %v1150_v28 = vadd.f32 %v5005_v41, %v1050_v3  ;;  %v1051_v18 = vadd.f32 %v1019_v10, %v951_v12  ;;  %v985_v1 = vld [vmem:[#allocation2 + $0xe9] sm:$0xff]  ;;  %1921 = vmatpush1.bf16.msra.mxu0 %v4032_v58  ;;  %v4034_v10 = vld [vmem:[%s6371_s7 + $0x44] ss:$16 sps:$4 sm:$0xff]  }
  0xcc   : > { %v1120_v40 = vmul.f32 %v4550_v30, %v1084_v8  ;;  %v952_v20 = vadd.f32 %v920_v6, %v852_v57  ;;  %v853_v44 = vadd.f32 %v821_v35, %v753_v49  ;;  %v655_v34 = vadd.f32 %v4916_v37, %v616_v5  ;;  %v4039_v6 = vld [vmem:[%s6371_s7 + $0x48] ss:$16 sps:$4 sm:$0xff]   ;;  %1922 = vmatprep.subr.bf16.mxu0 %v4034_v10 }
  0xcd   : > { %1301 = vadd.xlane.f32.xlu0 %v5014_v22  ;;  %1424 = vadd.xlane.f32.xlu1 %v1389_v63  ;;  %v1272_v62 = vpop.xlane.xlu1 %1271  ;;  %v921_v63 = vmul.f32 %v4542_v24, %v885_v2  ;;  %v723_v54 = vmul.f32 %v4529_v17, %v687_v36  ;;  %v617_v41 = vmul.f32 %v4514_v9, %v4878_v55  ;;  %v4036_v2 = vld [vmem:[%s6371_s7 + $0x4c] ss:$16 sps:$4 sm:$0xff]   ;;  %v4038_v55 = vld [vmem:[%s6371_s7 + $0x40] ss:$16 sps:$4 sm:$0xff]  }
  0xce   : > { %v5080_v42 = vsub.f32 %v4726_v14, %v1328_v39  ;;  %v1391_v3 = vmul.f32 %v5050_v32, %v5050_v32  ;;  %v1329_v12 = vmul.f32 0.0078125, %v1272_v62  ;;  %v754_v57 = vadd.f32 %v722_v13, %v654_v46  ;;  %v688_v9 = vld [vmem:[#allocation2 + $0xfd] sm:$0xff]  ;;  %2115 = vmatprep.subr.bf16.mxu1 %v4036_v2  ;;  %v986_v46 = vld [vmem:[#allocation2 + $0xf1] sm:$0xff] }
  0xcf   : > { %v5091_v8 = vadd.f32 %v5022_v52, %v1150_v28  ;;  %v1151_v14 = vadd.f32 %v5026_v59, %v1051_v18  ;;  %v1021_v35 = vmul.f32 %v4544_v25, %v985_v1  ;;  %v1052_v13 = vadd.f32 %v1020_v45, %v952_v20  ;;  %1923 = vmatpush1.bf16.msra.mxu0 %v4038_v55  ;;  %v887_v58 = vld [vmem:[#allocation2 + $0xf7] sm:$0xff] }
  0xd0   : > { %v1274_v49 = vpop.xlane.xlu0 %1273  ;;  %v953_v5 = vadd.f32 %v921_v63, %v853_v44  ;;  %v922_v39 = vmul.f32 %v4542_v24, %v886_v56  ;;  %2116 = vmatpush1.bf16.msra.mxu1 %v4039_v6  ;;  %v755_v36 = vadd.f32 %v723_v54, %v655_v34  ;;  %v823_v52 = vmul.f32 %v4538_v23, %v787_v19  ;;  %v4040_v45 = vld [vmem:[%s6371_s7 + $0x64] ss:$16 sps:$4 sm:$0xff]   ;;  %v4042_v62 = vld [vmem:[%s6371_s7 + $0x6c] ss:$16 sps:$4 sm:$0xff]   ;;  %v4044_v44 = vld [vmem:[%s6371_s7 + $0x60] ss:$16 sps:$4 sm:$0xff]  }
  0xd1   : > { %1303 = vadd.xlane.f32.xlu1 %v5042_v29  ;;  %1426 = vadd.xlane.f32.xlu0 %v1390_v26  ;;  %v1085_v26 = vld [vmem:[#allocation2 + $0xea] sm:$0xff]  ;;  %v656_v60 = vadd.f32 %v4916_v37, %v617_v41  ;;  %v724_v59 = vmul.f32 %v4529_v17, %v688_v9  ;;  %v5107_v28 = vsub.f32 %v4736_v33, %v1329_v12  ;;  %v1330_v37 = vmul.f32 0.0078125, %v1274_v49  ;;  %v788_v17 = vld [vmem:[#allocation2 + $0xfe] sm:$0xff]  ;;  %v1086_v41 = vld [vmem:[#allocation2 + $0xf2] sm:$0xff] }
  0xd2   : > { %v1392_v18 = vmul.f32 %v5080_v42, %v5080_v42  ;;  %v854_v20 = vadd.f32 %v822_v15, %v754_v57  ;;  %v4045_v63 = vld [vmem:[%s6371_s7 + $0x68] ss:$16 sps:$4 sm:$0xff]   ;;  %v1276_v1 = vpop.xlane.xlu1 %1275  ;;  %v1220_v56 = vmul.f32 %v4559_v38, %v1184_v50  ;;  %v1121_v33 = vmul.f32 %v4550_v30, %v1085_v26  ;;  %1924 = vmatprep.subr.bf16.mxu0 %v4040_v45  ;;  %v4046_v55 = vld [vmem:[%s6371_s7 + $0x84] ss:$16 sps:$4 sm:$0xff]  }
  0xd3   : > { %v1022_v34 = vmul.f32 %v4544_v25, %v986_v46  ;;  %2117 = vmatprep.subr.bf16.mxu1 %v4042_v62  ;;  %v5121_v15 = vadd.f32 %v5037_v7, %v1151_v14  ;;  %v1152_v54 = vadd.f32 %v1120_v40, %v1052_v13  ;;  %v1185_v19 = vld [vmem:[#allocation2 + $0xeb] sm:$0xff]  ;;  %v923_v10 = vmul.f32 %v4542_v24, %v887_v58  ;;  %v987_v12 = vld [vmem:[#allocation2 + $0xf9] sm:$0xff]  ;;  %v4052_v45 = vld [vmem:[%s6371_s7 + $0xa4] ss:$16 sps:$4 sm:$0xff]  }
  0xd4   : > { %1925 = vmatpush1.bf16.msra.mxu0 %v4044_v44  ;;  %2118 = vmatpush1.bf16.msra.mxu1 %v4045_v63  ;;  %v1053_v2 = vadd.f32 %v1021_v35, %v953_v5  ;;  %v756_v57 = vadd.f32 %v724_v59, %v656_v60  ;;  %v824_v9 = vmul.f32 %v4538_v23, %v788_v17  ;;  %v4048_v7 = vld [vmem:[%s6371_s7 + $0x8c] ss:$16 sps:$4 sm:$0xff]   ;;  %v1331_v49 = vmul.f32 0.0078125, %v1276_v1  ;;  %v4050_v35 = vld [vmem:[%s6371_s7 + $0x80] ss:$16 sps:$4 sm:$0xff]  }
  0xd5   : > { %1428 = vadd.xlane.f32.xlu1 %v1391_v3  ;;  %1305 = vadd.xlane.f32.xlu0 %v5062_v16  ;;  %v855_v3 = vadd.f32 %v823_v52, %v755_v36  ;;  %v5133_v40 = vsub.f32 %v4746_v11, %v1330_v37  ;;  %v1393_v6 = vmul.f32 %v5107_v28, %v5107_v28  ;;  %v888_v23 = vld [vmem:[#allocation2 + $0xff] sm:$0xff]  ;;  %v4051_v13 = vld [vmem:[%s6371_s7 + $0x88] ss:$16 sps:$4 sm:$0xff]   ;;  %v1278_v50 = vpop.xlane.xlu0 %1277 }
  0xd6   : > { %v954_v14 = vadd.f32 %v922_v39, %v854_v20  ;;  %v1221_v5 = vmul.f32 %v4559_v38, %v1185_v19  ;;  %1926 = vmatprep.subr.bf16.mxu0 %v4046_v55  ;;  %2119 = vmatprep.subr.bf16.mxu1 %v4048_v7  ;;  %v5144_v11 = vadd.f32 %v1220_v56, %v1152_v54  ;;  %v1186_v46 = vld [vmem:[#allocation2 + $0xf3] sm:$0xff]  ;;  %v4054_v62 = vld [vmem:[%s6371_s7 + $0xac] ss:$16 sps:$4 sm:$0xff]   ;;  %v1332_v20 = vmul.f32 0.0078125, %v1278_v50 }
  0xd7   : > { %v1122_v26 = vmul.f32 %v4550_v30, %v1086_v41  ;;  %v1023_v39 = vmul.f32 %v4544_v25, %v987_v12  ;;  %v1153_v36 = vadd.f32 %v1121_v33, %v1053_v2  ;;  %v955_v52 = vadd.f32 %v923_v10, %v855_v3  ;;  %v1087_v58 = vld [vmem:[#allocation2 + $0xfa] sm:$0xff]  ;;  %v4058_v2 = vld [vmem:[%s6371_s7 + $0xc4] ss:$16 sps:$4 sm:$0xff]  }
  0xd8   : > { %1927 = vmatpush1.bf16.msra.mxu0 %v4050_v35  ;;  %2120 = vmatpush1.bf16.msra.mxu1 %v4051_v13  ;;  %v856_v60 = vadd.f32 %v824_v9, %v756_v57  ;;  %v924_v59 = vmul.f32 %v4542_v24, %v888_v23  ;;  %v1394_v37 = vmul.f32 %v5133_v40, %v5133_v40  ;;  %v988_v24 = vld [vmem:[#allocation2 + $0x101] sm:$0xff]  ;;  %v4060_v3 = vld [vmem:[%s6371_s7 + $0xcc] ss:$16 sps:$4 sm:$0xff]  }
  0xd9   : > { %1307 = vadd.xlane.f32.xlu1 %v5091_v8  ;;  %1430 = vadd.xlane.f32.xlu0 %v1392_v18  ;;  %v5157_v18 = vsub.f32 %v4756_v21, %v1331_v49  ;;  %v1054_v17 = vadd.f32 %v1022_v34, %v954_v14  ;;  %v4056_v44 = vld [vmem:[%s6371_s7 + $0xa0] ss:$16 sps:$4 sm:$0xff]   ;;  %v4057_v63 = vld [vmem:[%s6371_s7 + $0xa8] ss:$16 sps:$4 sm:$0xff]   ;;  %v1280_v1 = vpop.xlane.xlu1 %1279  ;;  %v1222_v21 = vmul.f32 %v4559_v38, %v1186_v46  ;;  %v4064_v50 = vld [vmem:[%s6371_s7 + $0xe4] ss:$16 sps:$4 sm:$0xff]  }
  0xda   : > { %1928 = vmatprep.subr.bf16.mxu0 %v4052_v45  ;;  %2121 = vmatprep.subr.bf16.mxu1 %v4054_v62  ;;  %v1123_v33 = vmul.f32 %v4550_v30, %v1087_v58  ;;  %v5169_v34 = vadd.f32 %v1221_v5, %v1153_v36  ;;  %v1055_v54 = vadd.f32 %v1023_v39, %v955_v52  ;;  %v1187_v19 = vld [vmem:[#allocation2 + $0xfb] sm:$0xff]  ;;  %v1333_v9 = vmul.f32 0.0078125, %v1280_v1  ;;  %v1188_v36 = vld [vmem:[#allocation2 + $0x103] sm:$0xff] }
  0xdb   : > { %v956_v41 = vadd.f32 %v924_v59, %v856_v60  ;;  %v1024_v10 = vmul.f32 %v4544_v25, %v988_v24  ;;  %v5180_v12 = vsub.f32 %v4769_v61, %v1332_v20  ;;  %v1395_v57 = vmul.f32 %v5157_v18, %v5157_v18  ;;  %v1088_v25 = vld [vmem:[#allocation2 + $0x102] sm:$0xff]  ;;  %v4066_v5 = vld [vmem:[%s6371_s7 + $0xec] ss:$16 sps:$4 sm:$0xff]  }
  0xdc   : > { %v1282_v56 = vpop.xlane.xlu0 %1281  ;;  %1929 = vmatpush1.bf16.msra.mxu0 %v4056_v44  ;;  %2122 = vmatpush1.bf16.msra.mxu1 %v4057_v63  ;;  %v1154_v55 = vadd.f32 %v1122_v26, %v1054_v17  ;;  %v4062_v7 = vld [vmem:[%s6371_s7 + $0xc0] ss:$16 sps:$4 sm:$0xff]   ;;  %v1155_v61 = vadd.f32 %v1123_v33, %v1055_v54  ;;  %v1223_v14 = vmul.f32 %v4559_v38, %v1187_v19  ;;  %v4069_v58 = vld [vmem:[%s6371_s7 + $0xe8] ss:$16 sps:$4 sm:$0xff]   ;;  %v4417_v44 = vmov 0  }
  0xdd   : > { %1432 = vadd.xlane.f32.xlu1 %v1393_v6  ;;  %1309 = vadd.xlane.f32.xlu0 %v5121_v15  ;;  %v4063_v6 = vld [vmem:[%s6371_s7 + $0xc8] ss:$16 sps:$4 sm:$0xff]   ;;  %v1056_v35 = vadd.f32 %v1024_v10, %v956_v41  ;;  %v1124_v13 = vmul.f32 %v4550_v30, %v1088_v25  ;;  %v5200_v26 = vsub.f32 %v4800_v4, %v1333_v9  ;;  %v1334_v30 = vmul.f32 0.0078125, %v1282_v56  ;;  %v4068_v52 = vld [vmem:[%s6371_s7 + $0xe0] ss:$16 sps:$4 sm:$0xff]  }
  0xde   : > { %1930 = vmatprep.subr.bf16.mxu0 %v4058_v2  ;;  %2123 = vmatprep.subr.bf16.mxu1 %v4060_v3  ;;  %v5202_v46 = vadd.f32 %v1222_v21, %v1154_v55  ;;  %v1396_v39 = vmul.f32 %v5180_v12, %v5180_v12  ;;  %v5212_v4 = vadd.f32 %v1223_v14, %v1155_v61  ;;  %v6396_v1 = vld [vmem:[#allocation4_spill] sm:$0xff]  ;;  %v6397_v19 = vld [vmem:[#allocation5_spill] sm:$0xff]  ;;  %v6398_v10 = vld [vmem:[#allocation6_spill] sm:$0xff] }
  0xdf   : > { %v1284_v49 = vpop.xlane.xlu1 %1283  ;;  %v1156_v60 = vadd.f32 %v1124_v13, %v1056_v35  ;;  %v1224_v59 = vmul.f32 %v4559_v38, %v1188_v36  ;;  %v5217_v62 = vsub.f32 %v4814_v51, %v1334_v30  ;;  %1950 = vmatprep.mubr.bf16.mxu0 %v4417_v44  ;;  %2143 = vmatprep.mubr.bf16.mxu1 %v4417_v44  ;;  %v6400_v61 = vld [vmem:[#allocation8_spill] sm:$0xff]  ;;  %v6401_v13 = vld [vmem:[#allocation9_spill] sm:$0xff] }
  0xe0   : > { %1931 = vmatpush1.bf16.msra.mxu0 %v4062_v7  ;;  %2124 = vmatpush1.bf16.msra.mxu1 %v4063_v6  ;;  %v1335_v20 = vmul.f32 0.0078125, %v1284_v49  ;;  %v6399_v6 = vld [vmem:[#allocation7_spill] sm:$0xff] }
  0xe1   : > { %1311 = vadd.xlane.f32.xlu1 %v5144_v11  ;;  %1434 = vadd.xlane.f32.xlu0 %v1394_v37  ;;  %v1397_v37 = vmul.f32 %v5200_v26, %v5200_v26  ;;  %v5223_v63 = vadd.f32 %v1224_v59, %v1156_v60  ;;  %v1398_v21 = vmul.f32 %v5217_v62, %v5217_v62 }
  0xe2   : > { %v1286_v23 = vpop.xlane.xlu0 %1285  ;;  %1932 = vmatprep.subr.bf16.mxu0 %v4064_v50  ;;  %2125 = vmatprep.subr.bf16.mxu1 %v4066_v5  ;;  %v5227_v51 = vsub.f32 %v4824_v27, %v1335_v20 }
  0xe3   : > { %v1336_v17 = vmul.f32 0.0078125, %v1286_v23 }
  0xe4   : > { %1933 = vmatpush1.bf16.msra.mxu0 %v4068_v52  ;;  %2126 = vmatpush1.bf16.msra.mxu1 %v4069_v58  ;;  %v1399_v27 = vmul.f32 %v5227_v51, %v5227_v51 }
  0xe5   : > { %1436 = vadd.xlane.f32.xlu1 %v1395_v57  ;;  %1313 = vadd.xlane.f32.xlu0 %v5169_v34  ;;  %v1288_v45 = vpop.xlane.xlu1 %1287  ;;  %v5230_v56 = vsub.f32 %v6396_v1, %v1336_v17 }
  0xe6   : > { %v1337_v38 = vmul.f32 0.0078125, %v1288_v45 }
  0xe7   : > { %v1400_v3 = vmul.f32 %v5230_v56, %v5230_v56 }
  0xe8   : > { %v1290_v24 = vpop.xlane.xlu0 %1289  ;;  %v5235_v41 = vsub.f32 %v6397_v19, %v1337_v38 }
  0xe9   : > { %1315 = vadd.xlane.f32.xlu1 %v5202_v46  ;;  %1438 = vadd.xlane.f32.xlu0 %v1396_v39  ;;  %v1338_v33 = vmul.f32 0.0078125, %v1290_v24 }
  0xea   : > { %v1401_v25 = vmul.f32 %v5235_v41, %v5235_v41 }
  0xeb   : > { %v5239_v2 = vsub.f32 %v6398_v10, %v1338_v33 }
  0xed   : > { %1440 = vadd.xlane.f32.xlu1 %v1397_v37  ;;  %1317 = vadd.xlane.f32.xlu0 %v5212_v4  ;;  %v1292_v54 = vpop.xlane.xlu1 %1291  ;;  %v1402_v23 = vmul.f32 %v5239_v2, %v5239_v2 }
  0xee   : > { %v1339_v57 = vmul.f32 0.0078125, %v1292_v54 }
  0xf0   : > { %v5248_v49 = vsub.f32 %v6399_v6, %v1339_v57 }
  0xf1   : > { %1319 = vadd.xlane.f32.xlu1 %v5223_v63  ;;  %1442 = vadd.xlane.f32.xlu0 %v1398_v21  ;;  %v1294_v9 = vpop.xlane.xlu0 %1293 }
  0xf2   : > { %v1340_v55 = vmul.f32 0.0078125, %v1294_v9  ;;  %v1403_v5 = vmul.f32 %v5248_v49, %v5248_v49 }
  0xf4   : > { %v1296_v7 = vpop.xlane.xlu1 %1295  ;;  %v5251_v14 = vsub.f32 %v6400_v61, %v1340_v55 }
  0xf5   : > { %1444 = vadd.xlane.f32.xlu1 %v1399_v27  ;;  %1446 = vadd.xlane.f32.xlu0 %v1400_v3  ;;  %v1341_v35 = vmul.f32 0.0078125, %v1296_v7 }
  0xf6   : > { %v1404_v39 = vmul.f32 %v5251_v14, %v5251_v14 }
  0xf7   : > { %v5256_v50 = vsub.f32 %v6401_v13, %v1341_v35  ;;  %v5283_v13 = vld [vmem:[%s6369_s5] ss:$0 sm:$0xff] }
  0xf9   : > { %1448 = vadd.xlane.f32.xlu1 %v1401_v25  ;;  %1450 = vadd.xlane.f32.xlu0 %v1402_v23  ;;  %v1405_v30 = vmul.f32 %v5256_v50, %v5256_v50 }
  0xfd   : > { %1452 = vadd.xlane.f32.xlu1 %v1403_v5  ;;  %1454 = vadd.xlane.f32.xlu0 %v1404_v39 }
 0x101   : > { %1456 = vadd.xlane.f32.xlu1 %v1405_v30 }
 0x14e   : > { %v1419_v36 = vpop.xlane.xlu0 %1418 }
 0x14f   : > { %v1482_v52 = vmul.f32 0.0078125, %v1419_v36 }
 0x151   : > { %v1514_v58 = vadd.f32 1e-06, %v1482_v52 }
 0x152   : > { %v1421_v60 = vpop.xlane.xlu1 %1420  ;;  %v1298_v59 = vpop.xlane.xlu0 %1297 }
 0x153   : > { %4070 = vrsqrt.f32 %v1514_v58  ;;  %v1483_v45 = vmul.f32 0.0078125, %v1421_v60  ;;  %v1342_v37 = vmul.f32 0.0078125, %v1298_v59 }
 0x155   : > { %v1515_v20 = vadd.f32 1e-06, %v1483_v45  ;;  %v5265_v17 = vsub.f32 %v4962_v43, %v1342_v37  ;;  %v5295_v45 = vld [vmem:[%s6370_s6] ss:$0 sm:$0xff] }
 0x156   : > { %v1300_v24 = vpop.xlane.xlu1 %1299  ;;  %v1423_v38 = vpop.xlane.xlu0 %1422 }
 0x157   : > { %4072 = vrsqrt.f32 %v1515_v20  ;;  %v1343_v1 = vmul.f32 0.0078125, %v1300_v24  ;;  %v1484_v21 = vmul.f32 0.0078125, %v1423_v38  ;;  %v1406_v33 = vmul.f32 %v5265_v17, %v5265_v17 }
 0x159   : > { %v5270_v54 = vsub.f32 %v4983_v48, %v1343_v1  ;;  %v1516_v19 = vadd.f32 1e-06, %v1484_v21  ;;  %1458 = vadd.xlane.f32.xlu0 %v1406_v33 }
 0x15a   : > { %v1425_v10 = vpop.xlane.xlu1 %1424  ;;  %v1302_v27 = vpop.xlane.xlu0 %1301 }
 0x15b   : > { %4074 = vrsqrt.f32 %v1516_v19  ;;  %v1485_v3 = vmul.f32 0.0078125, %v1425_v10  ;;  %v1344_v57 = vmul.f32 0.0078125, %v1302_v27  ;;  %v1407_v43 = vmul.f32 %v5270_v54, %v5270_v54 }
 0x15d   : > { %v4071_v9 = vpop.eup %4070  ;;  %v1517_v55 = vadd.f32 1e-06, %v1485_v3  ;;  %v5275_v25 = vsub.f32 %v5014_v22, %v1344_v57  ;;  %1460 = vadd.xlane.f32.xlu1 %v1407_v43 }
 0x15e   : > { %v1304_v7 = vpop.xlane.xlu1 %1303  ;;  %v1427_v6 = vpop.xlane.xlu0 %1426  ;;  %v1578_v48 = vmul.f32 %v4071_v9, %v4972_v31 }
 0x15f   : > { %4076 = vrsqrt.f32 %v1517_v55  ;;  %v1345_v61 = vmul.f32 0.0078125, %v1304_v7  ;;  %v1486_v23 = vmul.f32 0.0078125, %v1427_v6  ;;  %v1408_v35 = vmul.f32 %v5275_v25, %v5275_v25  ;;  %v6402_v7 = vld [vmem:[#allocation10_spill] sm:$0xff] }
 0x160   : > { %v1617_v52 = vmul.f32 %v5283_v13, %v1578_v48 }
 0x161   : > { %v4073_v5 = vpop.eup %4072  ;;  %v5286_v22 = vsub.f32 %v5042_v29, %v1345_v61  ;;  %v1518_v39 = vadd.f32 1e-06, %v1486_v23  ;;  %1462 = vadd.xlane.f32.xlu0 %v1408_v35 }
 0x162   : > { %v1429_v30 = vpop.xlane.xlu1 %1428  ;;  %v1306_v36 = vpop.xlane.xlu0 %1305  ;;  %v1579_v31 = vmul.f32 %v4073_v5, %v4987_v0  ;;  %v1656_v1 = vadd.f32 %v5295_v45, %v1617_v52 }
 0x163   : > { %4078 = vrsqrt.f32 %v1518_v39  ;;  %v1487_v58 = vmul.f32 0.0078125, %v1429_v30  ;;  %v1346_v60 = vmul.f32 0.0078125, %v1306_v36  ;;  %v1409_v59 = vmul.f32 %v5286_v22, %v5286_v22 }
 0x164   : > { %v1618_v29 = vmul.f32 %v5283_v13, %v1579_v31 }
 0x165   : > { %v4075_v37 = vpop.eup %4074  ;;  %v1519_v20 = vadd.f32 1e-06, %v1487_v58  ;;  %v5299_v24 = vsub.f32 %v5062_v16, %v1346_v60  ;;  %1464 = vadd.xlane.f32.xlu1 %v1409_v59 }
 0x166   : > { %v1308_v0 = vpop.xlane.xlu1 %1307  ;;  %v1431_v38 = vpop.xlane.xlu0 %1430  ;;  %v1657_v21 = vadd.f32 %v5295_v45, %v1618_v29  ;;  %v1580_v33 = vmul.f32 %v4075_v37, %v4990_v53 }
 0x167   : > { %4080 = vrsqrt.f32 %v1519_v20  ;;  %v1347_v19 = vmul.f32 0.0078125, %v1308_v0  ;;  %v1488_v10 = vmul.f32 0.0078125, %v1431_v38  ;;  %v1410_v27 = vmul.f32 %v5299_v24, %v5299_v24 }
 0x168   : > { %v1688_v3 = vpack.c.bf16 %v1657_v21, %v1656_v1  ;;  %v1619_v53 = vmul.f32 %v5283_v13, %v1580_v33 }
 0x169   : > { %v4077_v57 = vpop.eup %4076  ;;  %v5307_v16 = vsub.f32 %v5091_v8, %v1347_v19  ;;  %v1520_v43 = vadd.f32 1e-06, %v1488_v10  ;;  %1466 = vadd.xlane.f32.xlu0 %v1410_v27 }
 0x16a   : > { %v1433_v9 = vpop.xlane.xlu1 %1432  ;;  %1951 = vmatmul.mubr.bf16.vlgmr.msra.gmra.mrb[0].mxu0 %v1688_v3  ;;  %2144 = vmatmul.mubr.bf16.vlgmr.msra.gmra.mrb[0].mxu1 %v1688_v3  ;;  %v1310_v55 = vpop.xlane.xlu0 %1309  ;;  %v1581_v6 = vmul.f32 %v4077_v57, %v6402_v7  ;;  %v1658_v31 = vadd.f32 %v5295_v45, %v1619_v53 }
 0x16b   : > { %4082 = vrsqrt.f32 %v1520_v43  ;;  %v1489_v48 = vmul.f32 0.0078125, %v1433_v9  ;;  %v1348_v61 = vmul.f32 0.0078125, %v1310_v55  ;;  %v1411_v23 = vmul.f32 %v5307_v16, %v5307_v16  ;;  %1960 = vmatprep.mubr.bf16.mxu0 %v4417_v44  ;;  %2153 = vmatprep.mubr.bf16.mxu1 %v4417_v44 }
 0x16c   : > { %v1620_v8 = vmul.f32 %v5283_v13, %v1581_v6 }
 0x16d   : > { %v4079_v35 = vpop.eup %4078  ;;  %v1521_v5 = vadd.f32 1e-06, %v1489_v48  ;;  %v5317_v39 = vsub.f32 %v5121_v15, %v1348_v61  ;;  %1468 = vadd.xlane.f32.xlu1 %v1411_v23 }
 0x16e   : > { %v1312_v30 = vpop.xlane.xlu1 %1311  ;;  %v1435_v36 = vpop.xlane.xlu0 %1434  ;;  %v1659_v52 = vadd.f32 %v5295_v45, %v1620_v8  ;;  %v1582_v58 = vmul.f32 %v4079_v35, %v5030_v47 }
 0x16f   : > { %4084 = vrsqrt.f32 %v1521_v5  ;;  %v1349_v60 = vmul.f32 0.0078125, %v1312_v30  ;;  %v1490_v59 = vmul.f32 0.0078125, %v1435_v36  ;;  %v1412_v29 = vmul.f32 %v5317_v39, %v5317_v39 }
 0x170   : > { %v1689_v37 = vpack.c.bf16 %v1659_v52, %v1658_v31  ;;  %v1621_v47 = vmul.f32 %v5283_v13, %v1582_v58 }
 0x171   : > { %v4081_v20 = vpop.eup %4080  ;;  %v5325_v15 = vsub.f32 %v5144_v11, %v1349_v60  ;;  %v1522_v0 = vadd.f32 1e-06, %v1490_v59  ;;  %1470 = vadd.xlane.f32.xlu0 %v1412_v29 }
 0x172   : > { %v1437_v38 = vpop.xlane.xlu1 %1436  ;;  %1961 = vmatmul.mubr.bf16.gmra.mrb[4].mxu0 %v1689_v37  ;;  %2154 = vmatmul.mubr.bf16.gmra.mrb[4].mxu1 %v1689_v37  ;;  %v1314_v1 = vpop.xlane.xlu0 %1313  ;;  %v1583_v21 = vmul.f32 %v4081_v20, %v5050_v32  ;;  %v1660_v9 = vadd.f32 %v5295_v45, %v1621_v47 }
 0x173   : > { %4086 = vrsqrt.f32 %v1522_v0  ;;  %v1491_v33 = vmul.f32 0.0078125, %v1437_v38  ;;  %v1350_v19 = vmul.f32 0.0078125, %v1314_v1  ;;  %v1413_v10 = vmul.f32 %v5325_v15, %v5325_v15  ;;  %1970 = vmatprep.mubr.bf16.mxu0 %v4417_v44  ;;  %2163 = vmatprep.mubr.bf16.mxu1 %v4417_v44 }
 0x174   : > { %v1622_v11 = vmul.f32 %v5283_v13, %v1583_v21 }
 0x175   : > { %v4083_v27 = vpop.eup %4082  ;;  %v1523_v3 = vadd.f32 1e-06, %v1491_v33  ;;  %v5335_v57 = vsub.f32 %v5169_v34, %v1350_v19  ;;  %1472 = vadd.xlane.f32.xlu1 %v1413_v10 }
 0x176   : > { %v1316_v32 = vpop.xlane.xlu1 %1315  ;;  %v1439_v43 = vpop.xlane.xlu0 %1438  ;;  %v1661_v55 = vadd.f32 %v5295_v45, %v1622_v11  ;;  %v1584_v7 = vmul.f32 %v4083_v27, %v5080_v42 }
 0x177   : > { %4088 = vrsqrt.f32 %v1523_v3  ;;  %v1351_v6 = vmul.f32 0.0078125, %v1316_v32  ;;  %v1492_v53 = vmul.f32 0.0078125, %v1439_v43  ;;  %v1414_v48 = vmul.f32 %v5335_v57, %v5335_v57 }
 0x178   : > { %v1690_v61 = vpack.c.bf16 %v1661_v55, %v1660_v9  ;;  %v1623_v42 = vmul.f32 %v5283_v13, %v1584_v7 }
 0x179   : > { %v4085_v23 = vpop.eup %4084  ;;  %v5343_v34 = vsub.f32 %v5202_v46, %v1351_v6  ;;  %v1524_v8 = vadd.f32 1e-06, %v1492_v53  ;;  %1474 = vadd.xlane.f32.xlu0 %v1414_v48 }
 0x17a   : > { %v1441_v35 = vpop.xlane.xlu1 %1440  ;;  %1971 = vmatmul.mubr.bf16.gmra.mrb[8].mxu0 %v1690_v61  ;;  %2164 = vmatmul.mubr.bf16.gmra.mrb[8].mxu1 %v1690_v61  ;;  %v1318_v5 = vpop.xlane.xlu0 %1317  ;;  %v1585_v30 = vmul.f32 %v4085_v23, %v5107_v28  ;;  %v1662_v37 = vadd.f32 %v5295_v45, %v1623_v42 }
 0x17b   : > { %4090 = vrsqrt.f32 %v1524_v8  ;;  %v1493_v36 = vmul.f32 0.0078125, %v1441_v35  ;;  %v1352_v31 = vmul.f32 0.0078125, %v1318_v5  ;;  %v1415_v52 = vmul.f32 %v5343_v34, %v5343_v34  ;;  %1980 = vmatprep.mubr.bf16.mxu0 %v4417_v44  ;;  %2173 = vmatprep.mubr.bf16.mxu1 %v4417_v44 }
 0x17c   : > { %v1624_v46 = vmul.f32 %v5283_v13, %v1585_v30 }
 0x17d   : > { %v4087_v58 = vpop.eup %4086  ;;  %v1525_v60 = vadd.f32 1e-06, %v1493_v36  ;;  %v5353_v59 = vsub.f32 %v5212_v4, %v1352_v31  ;;  %1476 = vadd.xlane.f32.xlu1 %v1415_v52 }
 0x17e   : > { %v1320_v28 = vpop.xlane.xlu1 %1319  ;;  %v1443_v29 = vpop.xlane.xlu0 %1442  ;;  %v1663_v20 = vadd.f32 %v5295_v45, %v1624_v46  ;;  %v1586_v0 = vmul.f32 %v4087_v58, %v5133_v40 }
 0x17f   : > { %4092 = vrsqrt.f32 %v1525_v60  ;;  %v1353_v38 = vmul.f32 0.0078125, %v1320_v28  ;;  %v1494_v1 = vmul.f32 0.0078125, %v1443_v29  ;;  %v1416_v21 = vmul.f32 %v5353_v59, %v5353_v59 }
 0x180   : > { %v1691_v47 = vpack.c.bf16 %v1663_v20, %v1662_v37  ;;  %v1625_v40 = vmul.f32 %v5283_v13, %v1586_v0 }
 0x181   : > { %v4089_v33 = vpop.eup %4088  ;;  %v5361_v4 = vsub.f32 %v5223_v63, %v1353_v38  ;;  %v1526_v19 = vadd.f32 1e-06, %v1494_v1  ;;  %1478 = vadd.xlane.f32.xlu0 %v1416_v21 }
 0x182   : > { %v1445_v10 = vpop.xlane.xlu1 %1444  ;;  %1981 = vmatmul.mubr.bf16.gmra.mrb[12].mxu0 %v1691_v47  ;;  %2174 = vmatmul.mubr.bf16.gmra.mrb[12].mxu1 %v1691_v47  ;;  %v1447_v11 = vpop.xlane.xlu0 %1446  ;;  %v1587_v27 = vmul.f32 %v4089_v33, %v5157_v18  ;;  %v1664_v53 = vadd.f32 %v5295_v45, %v1625_v40 }
 0x183   : > { %4094 = vrsqrt.f32 %v1526_v19  ;;  %v1495_v3 = vmul.f32 0.0078125, %v1445_v10  ;;  %v1496_v32 = vmul.f32 0.0078125, %v1447_v11  ;;  %v1417_v43 = vmul.f32 %v5361_v4, %v5361_v4  ;;  %1990 = vmatprep.mubr.bf16.mxu0 %v4417_v44  ;;  %2183 = vmatprep.mubr.bf16.mxu1 %v4417_v44 }
 0x184   : > { %v1626_v63 = vmul.f32 %v5283_v13, %v1587_v27 }
 0x185   : > { %v4091_v9 = vpop.eup %4090  ;;  %v1527_v55 = vadd.f32 1e-06, %v1495_v3  ;;  %v1528_v7 = vadd.f32 1e-06, %v1496_v32  ;;  %1480 = vadd.xlane.f32.xlu1 %v1417_v43 }
 0x186   : > { %v1449_v6 = vpop.xlane.xlu1 %1448  ;;  %v1451_v18 = vpop.xlane.xlu0 %1450  ;;  %v1665_v48 = vadd.f32 %v5295_v45, %v1626_v63  ;;  %v1588_v61 = vmul.f32 %v4091_v9, %v5180_v12 }
 0x187   : > { %4096 = vrsqrt.f32 %v1527_v55  ;;  %v1497_v23 = vmul.f32 0.0078125, %v1449_v6  ;;  %v1498_v30 = vmul.f32 0.0078125, %v1451_v18 }
 0x188   : > { %v1692_v8 = vpack.c.bf16 %v1665_v48, %v1664_v53  ;;  %4098 = vrsqrt.f32 %v1528_v7  ;;  %v1627_v31 = vmul.f32 %v5283_v13, %v1588_v61 }
 0x189   : > { %v4093_v35 = vpop.eup %4092  ;;  %v1529_v5 = vadd.f32 1e-06, %v1497_v23  ;;  %v1530_v58 = vadd.f32 1e-06, %v1498_v30 }
 0x18a   : > { %v1453_v42 = vpop.xlane.xlu1 %1452  ;;  %1991 = vmatmul.mubr.bf16.gmra.mrb[16].mxu0 %v1692_v8  ;;  %2184 = vmatmul.mubr.bf16.gmra.mrb[16].mxu1 %v1692_v8  ;;  %v1589_v36 = vmul.f32 %v4093_v35, %v5200_v26  ;;  %v1455_v28 = vpop.xlane.xlu0 %1454  ;;  %v1666_v37 = vadd.f32 %v5295_v45, %v1627_v31 }
 0x18b   : > { %4100 = vrsqrt.f32 %v1529_v5  ;;  %v1499_v52 = vmul.f32 0.0078125, %v1453_v42  ;;  %2000 = vmatprep.mubr.bf16.mxu0 %v4417_v44  ;;  %2193 = vmatprep.mubr.bf16.mxu1 %v4417_v44  ;;  %v1500_v21 = vmul.f32 0.0078125, %v1455_v28 }
 0x18c   : > { %v1628_v12 = vmul.f32 %v5283_v13, %v1589_v36 }
 0x18d   : > { %v4095_v46 = vpop.eup %4094  ;;  %v1531_v60 = vadd.f32 1e-06, %v1499_v52  ;;  %v1532_v27 = vadd.f32 1e-06, %v1500_v21 }
 0x18e   : > { %v1457_v29 = vpop.xlane.xlu1 %1456  ;;  %v1667_v20 = vadd.f32 %v5295_v45, %v1628_v12  ;;  %v1590_v26 = vmul.f32 %v4095_v46, %v5217_v62 }
 0x18f   : > { %4102 = vrsqrt.f32 %v1531_v60  ;;  %v1501_v0 = vmul.f32 0.0078125, %v1457_v29 }
 0x190   : > { %v1693_v38 = vpack.c.bf16 %v1667_v20, %v1666_v37  ;;  %4104 = vrsqrt.f32 %v1530_v58  ;;  %v1629_v33 = vmul.f32 %v5283_v13, %v1590_v26 }
 0x191   : > { %v4097_v1 = vpop.eup %4096  ;;  %v1533_v10 = vadd.f32 1e-06, %v1501_v0 }
 0x192   : > { %2001 = vmatmul.mubr.bf16.gmra.mrb[20].mxu0 %v1693_v38  ;;  %2194 = vmatmul.mubr.bf16.gmra.mrb[20].mxu1 %v1693_v38  ;;  %v1591_v47 = vmul.f32 %v4097_v1, %v5227_v51  ;;  %v4099_v19 = vpop.eup %4098  ;;  %v1668_v40 = vadd.f32 %v5295_v45, %v1629_v33 }
 0x193   : > { %2010 = vmatprep.mubr.bf16.mxu0 %v4417_v44  ;;  %2203 = vmatprep.mubr.bf16.mxu1 %v4417_v44  ;;  %v1592_v32 = vmul.f32 %v4099_v19, %v5230_v56  ;;  %4106 = vrsqrt.f32 %v1533_v10 }
 0x194   : > { %v1630_v62 = vmul.f32 %v5283_v13, %v1591_v47  ;;  %4108 = vrsqrt.f32 %v1532_v27 }
 0x195   : > { %v4101_v11 = vpop.eup %4100  ;;  %v1631_v55 = vmul.f32 %v5283_v13, %v1592_v32 }
 0x196   : > { %v1669_v3 = vadd.f32 %v5295_v45, %v1630_v62  ;;  %v1593_v51 = vmul.f32 %v4101_v11, %v5235_v41 }
 0x197   : > { %v1670_v41 = vadd.f32 %v5295_v45, %v1631_v55 }
 0x198   : > { %v1694_v43 = vpack.c.bf16 %v1669_v3, %v1668_v40  ;;  %v1632_v63 = vmul.f32 %v5283_v13, %v1593_v51 }
 0x199   : > { %v4103_v9 = vpop.eup %4102 }
 0x19a   : > { %2011 = vmatmul.mubr.bf16.gmra.mrb[24].mxu0 %v1694_v43  ;;  %2204 = vmatmul.mubr.bf16.gmra.mrb[24].mxu1 %v1694_v43  ;;  %v4105_v7 = vpop.eup %4104  ;;  %v1671_v6 = vadd.f32 %v5295_v45, %v1632_v63  ;;  %v1595_v56 = vmul.f32 %v4103_v9, %v5248_v49 }
 0x19b   : > { %2020 = vmatprep.mubr.bf16.mxu0 %v4417_v44  ;;  %2213 = vmatprep.mubr.bf16.mxu1 %v4417_v44  ;;  %v1594_v18 = vmul.f32 %v4105_v7, %v5239_v2 }
 0x19c   : > { %v1695_v53 = vpack.c.bf16 %v1671_v6, %v1670_v41  ;;  %v1634_v48 = vmul.f32 %v5283_v13, %v1595_v56 }
 0x19d   : > { %v4107_v61 = vpop.eup %4106  ;;  %v1633_v23 = vmul.f32 %v5283_v13, %v1594_v18 }
 0x19e   : > { %v4109_v8 = vpop.eup %4108  ;;  %v1673_v35 = vadd.f32 %v5295_v45, %v1634_v48  ;;  %v1597_v49 = vmul.f32 %v4107_v61, %v5256_v50 }
 0x19f   : > { %v1672_v5 = vadd.f32 %v5295_v45, %v1633_v23  ;;  %v1596_v2 = vmul.f32 %v4109_v8, %v5251_v14 }
 0x1a0   : > { %v1636_v42 = vmul.f32 %v5283_v13, %v1597_v49 }
 0x1a1   : > { %v1696_v30 = vpack.c.bf16 %v1673_v35, %v1672_v5  ;;  %v1635_v36 = vmul.f32 %v5283_v13, %v1596_v2 }
 0x1a2   : > { %2021 = vmatmul.mubr.bf16.gmra.mrb[28].mxu0 %v1695_v53  ;;  %2214 = vmatmul.mubr.bf16.gmra.mrb[28].mxu1 %v1695_v53  ;;  %v1675_v31 = vadd.f32 %v5295_v45, %v1636_v42 }
 0x1a3   : > { %2030 = vmatprep.mubr.bf16.mxu0 %v4417_v44  ;;  %2223 = vmatprep.mubr.bf16.mxu1 %v4417_v44  ;;  %v1674_v52 = vadd.f32 %v5295_v45, %v1635_v36 }
 0x1a5   : > { %v1697_v50 = vpack.c.bf16 %v1675_v31, %v1674_v52 }
 0x1aa   : > { %2031 = vmatmul.mubr.bf16.gmra.mrb[32].mxu0 %v1696_v30  ;;  %2224 = vmatmul.mubr.bf16.gmra.mrb[32].mxu1 %v1696_v30 }
 0x1ab   : > { %2040 = vmatprep.mubr.bf16.mxu0 %v4417_v44  ;;  %2233 = vmatprep.mubr.bf16.mxu1 %v4417_v44 }
 0x1b2   : > { %2041 = vmatmul.mubr.bf16.gmra.mrb[36].mxu0 %v1697_v50  ;;  %2234 = vmatmul.mubr.bf16.gmra.mrb[36].mxu1 %v1697_v50 }
 0x1b3   : > { %2050 = vmatprep.mubr.bf16.mxu0 %v4417_v44  ;;  %2243 = vmatprep.mubr.bf16.mxu1 %v4417_v44 }
 0x1e6   : > { %v1459_v14 = vpop.xlane.xlu0 %1458 }
 0x1e7   : > { %v1502_v12 = vmul.f32 0.0078125, %v1459_v14 }
 0x1e9   : > { %v1534_v46 = vadd.f32 1e-06, %v1502_v12 }
 0x1ea   : > { %v1461_v58 = vpop.xlane.xlu1 %1460 }
 0x1eb   : > { %4110 = vrsqrt.f32 %v1534_v46  ;;  %v1503_v60 = vmul.f32 0.0078125, %v1461_v58 }
 0x1ed   : > { %v1535_v28 = vadd.f32 1e-06, %v1503_v60 }
 0x1ee   : > { %v1463_v29 = vpop.xlane.xlu0 %1462 }
 0x1ef   : > { %4112 = vrsqrt.f32 %v1535_v28  ;;  %v1504_v37 = vmul.f32 0.0078125, %v1463_v29 }
 0x1f1   : > { %v1536_v20 = vadd.f32 1e-06, %v1504_v37 }
 0x1f2   : > { %v1465_v26 = vpop.xlane.xlu1 %1464 }
 0x1f3   : > { %4114 = vrsqrt.f32 %v1536_v20  ;;  %v1505_v0 = vmul.f32 0.0078125, %v1465_v26 }
 0x1f5   : > { %v4111_v38 = vpop.eup %4110  ;;  %v1537_v1 = vadd.f32 1e-06, %v1505_v0 }
 0x1f6   : > { %v1467_v21 = vpop.xlane.xlu0 %1466  ;;  %v1598_v47 = vmul.f32 %v4111_v38, %v5265_v17 }
 0x1f7   : > { %4116 = vrsqrt.f32 %v1537_v1  ;;  %v1506_v33 = vmul.f32 0.0078125, %v1467_v21 }
 0x1f8   : > { %v1637_v27 = vmul.f32 %v5283_v13, %v1598_v47 }
 0x1f9   : > { %v4113_v19 = vpop.eup %4112  ;;  %v1538_v10 = vadd.f32 1e-06, %v1506_v33 }
 0x1fa   : > { %v1469_v62 = vpop.xlane.xlu1 %1468  ;;  %v1599_v11 = vmul.f32 %v4113_v19, %v5270_v54  ;;  %v1676_v63 = vadd.f32 %v5295_v45, %v1637_v27 }
 0x1fb   : > { %4118 = vrsqrt.f32 %v1538_v10  ;;  %v1507_v40 = vmul.f32 0.0078125, %v1469_v62 }
 0x1fc   : > { %v1638_v3 = vmul.f32 %v5283_v13, %v1599_v11 }
 0x1fd   : > { %v4115_v32 = vpop.eup %4114  ;;  %v1539_v51 = vadd.f32 1e-06, %v1507_v40 }
 0x1fe   : > { %v1471_v43 = vpop.xlane.xlu0 %1470  ;;  %v1677_v17 = vadd.f32 %v5295_v45, %v1638_v3  ;;  %v1600_v9 = vmul.f32 %v4115_v32, %v5275_v25 }
 0x1ff   : > { %4120 = vrsqrt.f32 %v1539_v51  ;;  %v1508_v55 = vmul.f32 0.0078125, %v1471_v43 }
 0x200   : > { %v1698_v7 = vpack.c.bf16 %v1677_v17, %v1676_v63  ;;  %v1639_v18 = vmul.f32 %v5283_v13, %v1600_v9 }
 0x201   : > { %v4117_v6 = vpop.eup %4116  ;;  %v1540_v54 = vadd.f32 1e-06, %v1508_v55 }
 0x202   : > { %v1473_v56 = vpop.xlane.xlu1 %1472  ;;  %2051 = vmatmul.mubr.bf16.gmra.mrb[40].mxu0 %v1698_v7  ;;  %2244 = vmatmul.mubr.bf16.gmra.mrb[40].mxu1 %v1698_v7  ;;  %v1601_v41 = vmul.f32 %v4117_v6, %v5286_v22  ;;  %v1678_v8 = vadd.f32 %v5295_v45, %v1639_v18 }
 0x203   : > { %4122 = vrsqrt.f32 %v1540_v54  ;;  %v1509_v53 = vmul.f32 0.0078125, %v1473_v56  ;;  %2060 = vmatprep.mubr.bf16.mxu0 %v4417_v44  ;;  %2253 = vmatprep.mubr.bf16.mxu1 %v4417_v44 }
 0x204   : > { %v1640_v25 = vmul.f32 %v5283_v13, %v1601_v41 }
 0x205   : > { %v4119_v48 = vpop.eup %4118  ;;  %v1541_v61 = vadd.f32 1e-06, %v1509_v53 }
 0x206   : > { %v1475_v23 = vpop.xlane.xlu0 %1474  ;;  %v1679_v35 = vadd.f32 %v5295_v45, %v1640_v25  ;;  %v1602_v49 = vmul.f32 %v4119_v48, %v5299_v24 }
 0x207   : > { %4124 = vrsqrt.f32 %v1541_v61  ;;  %v1510_v22 = vmul.f32 0.0078125, %v1475_v23 }
 0x208   : > { %v1699_v5 = vpack.c.bf16 %v1679_v35, %v1678_v8  ;;  %v1641_v31 = vmul.f32 %v5283_v13, %v1602_v49 }
 0x209   : > { %v4121_v2 = vpop.eup %4120  ;;  %v1542_v30 = vadd.f32 1e-06, %v1510_v22 }
 0x20a   : > { %v1477_v42 = vpop.xlane.xlu1 %1476  ;;  %2061 = vmatmul.mubr.bf16.gmra.mrb[44].mxu0 %v1699_v5  ;;  %2254 = vmatmul.mubr.bf16.gmra.mrb[44].mxu1 %v1699_v5  ;;  %v1603_v36 = vmul.f32 %v4121_v2, %v5307_v16  ;;  %v1680_v46 = vadd.f32 %v5295_v45, %v1641_v31 }
 0x20b   : > { %4126 = vrsqrt.f32 %v1542_v30  ;;  %v1511_v52 = vmul.f32 0.0078125, %v1477_v42  ;;  %2070 = vmatprep.mubr.bf16.mxu0 %v4417_v44  ;;  %2263 = vmatprep.mubr.bf16.mxu1 %v4417_v44 }
 0x20c   : > { %v1642_v24 = vmul.f32 %v5283_v13, %v1603_v36 }
 0x20d   : > { %v4123_v50 = vpop.eup %4122  ;;  %v1543_v14 = vadd.f32 1e-06, %v1511_v52 }
 0x20e   : > { %v1479_v12 = vpop.xlane.xlu0 %1478  ;;  %v1681_v58 = vadd.f32 %v5295_v45, %v1642_v24  ;;  %v1604_v60 = vmul.f32 %v4123_v50, %v5317_v39 }
 0x20f   : > { %4128 = vrsqrt.f32 %v1543_v14  ;;  %v1512_v16 = vmul.f32 0.0078125, %v1479_v12 }
 0x210   : > { %v1700_v28 = vpack.c.bf16 %v1681_v58, %v1680_v46  ;;  %v1643_v0 = vmul.f32 %v5283_v13, %v1604_v60 }
 0x211   : > { %v4125_v29 = vpop.eup %4124  ;;  %v1544_v37 = vadd.f32 1e-06, %v1512_v16 }
 0x212   : > { %v1481_v20 = vpop.xlane.xlu1 %1480  ;;  %2071 = vmatmul.mubr.bf16.gmra.mrb[48].mxu0 %v1700_v28  ;;  %2264 = vmatmul.mubr.bf16.gmra.mrb[48].mxu1 %v1700_v28  ;;  %v1605_v26 = vmul.f32 %v4125_v29, %v5325_v15  ;;  %v1682_v47 = vadd.f32 %v5295_v45, %v1643_v0 }
 0x213   : > { %4130 = vrsqrt.f32 %v1544_v37  ;;  %v1513_v38 = vmul.f32 0.0078125, %v1481_v20  ;;  %2080 = vmatprep.mubr.bf16.mxu0 %v4417_v44  ;;  %2273 = vmatprep.mubr.bf16.mxu1 %v4417_v44 }
 0x214   : > { %v1644_v39 = vmul.f32 %v5283_v13, %v1605_v26 }
 0x215   : > { %v4127_v1 = vpop.eup %4126  ;;  %v1545_v21 = vadd.f32 1e-06, %v1513_v38 }
 0x216   : > { %v1683_v33 = vadd.f32 %v5295_v45, %v1644_v39  ;;  %v1606_v19 = vmul.f32 %v4127_v1, %v5335_v57 }
 0x217   : > { %4132 = vrsqrt.f32 %v1545_v21 }
 0x218   : > { %v1701_v15 = vpack.c.bf16 %v1683_v33, %v1682_v47  ;;  %v1645_v11 = vmul.f32 %v5283_v13, %v1606_v19 }
 0x219   : > { %v4129_v10 = vpop.eup %4128 }
 0x21a   : > { %2081 = vmatmul.mubr.bf16.gmra.mrb[52].mxu0 %v1701_v15  ;;  %2274 = vmatmul.mubr.bf16.gmra.mrb[52].mxu1 %v1701_v15  ;;  %v1607_v62 = vmul.f32 %v4129_v10, %v5343_v34  ;;  %v1684_v3 = vadd.f32 %v5295_v45, %v1645_v11 }
 0x21b   : > { %2090 = vmatprep.mubr.bf16.mxu0 %v4417_v44  ;;  %2283 = vmatprep.mubr.bf16.mxu1 %v4417_v44 }
 0x21c   : > { %v1646_v27 = vmul.f32 %v5283_v13, %v1607_v62 }
 0x21d   : > { %v4131_v40 = vpop.eup %4130 }
 0x21e   : > { %v1685_v57 = vadd.f32 %v5295_v45, %v1646_v27  ;;  %v1608_v32 = vmul.f32 %v4131_v40, %v5353_v59  ;;  %v1736_v59 = vld [vmem:[%s6372_s8] sm:$0xf] }
 0x220   : > { %v1702_v51 = vpack.c.bf16 %v1685_v57, %v1684_v3  ;;  %v1647_v63 = vmul.f32 %v5283_v13, %v1608_v32 }
 0x221   : > { %v4133_v43 = vpop.eup %4132 }
 0x222   : > { %2091 = vmatmul.mubr.bf16.gmra.mrb[56].mxu0 %v1702_v51  ;;  %2284 = vmatmul.mubr.bf16.gmra.mrb[56].mxu1 %v1702_v51  ;;  %v1609_v34 = vmul.f32 %v4133_v43, %v5361_v4  ;;  %v1686_v9 = vadd.f32 %v5295_v45, %v1647_v63  ;;  %v6403_v4 = vld [vmem:[#allocation3_spill] sm:$0xff] }
 0x223   : > { %2100 = vmatprep.mubr.bf16.mxu0 %v4417_v44  ;;  %2293 = vmatprep.mubr.bf16.mxu1 %v4417_v44  ;;  %v6404_v6 = vsub.s32 0, %v6403_v4  ;;  %v6405_v56 = vsub.s32 2, %v6403_v4 }
 0x224   : > { %v1648_v17 = vmul.f32 %v5283_v13, %v1609_v34  ;;  %v6406_v13 = vsub.s32 1, %v6403_v4 }
 0x225   : > { %v5465_v54 = vrot.slane %v1736_v59, %v6404_v6  ;;  %v5469_v44 = vrot.slane %v1736_v59, %v6405_v56 }
 0x226   : > { %v1687_v55 = vadd.f32 %v5295_v45, %v1648_v17  ;;  %v5473_v41 = vrot.slane %v1736_v59, %v6406_v13  ;;  %v6407_v45 = vsub.s32 3, %v6403_v4 }
 0x228   : > { %v1703_v7 = vpack.c.bf16 %v1687_v55, %v1686_v9  ;;  %v5477_v18 = vrot.slane %v1736_v59, %v6407_v45 }
 0x22a   : > { %2101 = vmatmul.mubr.bf16.gmra.mrb[60].mxu0 %v1703_v7  ;;  %2294 = vmatmul.mubr.bf16.gmra.mrb[60].mxu1 %v1703_v7 }
 0x23d   : > { %v1952_v53 = vpop.f32.mrb[0].mxu0  ;;  %v2145_v25 = vpop.f32.mrb[0].mxu1 }
 0x23e   : > { %v1953_v48 = vadd.f32 %v1952_v53, %v5465_v54  ;;  %v2146_v61 = vadd.f32 %v2145_v25, %v5469_v44  ;;  %v1954_v23 = vpop.f32.mrb[1].mxu0  ;;  %v2147_v8 = vpop.f32.mrb[1].mxu1 }
 0x23f   : > { %v1955_v35 = vadd.f32 %v1954_v23, %v5473_v41  ;;  %v2148_v49 = vadd.f32 %v2147_v8, %v5477_v18  ;;  %v1956_v22 = vpop.f32.mrb[2].mxu0  ;;  %v2149_v5 = vpop.f32.mrb[2].mxu1 }
 0x240   : > { %v2432_v2 = vmul.f32 0.70710677, %v1953_v48  ;;  %v2434_v30 = vmul.f32 0.70710677, %v2146_v61  ;;  %v1957_v31 = vadd.f32 %v1956_v22, %v5465_v54  ;;  %v2150_v52 = vadd.f32 %v2149_v5, %v5469_v44  ;;  %v1958_v24 = vpop.f32.mrb[3].mxu0  ;;  %v2151_v50 = vpop.f32.mrb[3].mxu1 }
 0x241   : > { %v2433_v42 = vmul.f32 0.70710677, %v1955_v35  ;;  %v2435_v36 = vmul.f32 0.70710677, %v2148_v49  ;;  %v1959_v14 = vadd.f32 %v1958_v24, %v5473_v41  ;;  %v2152_v12 = vadd.f32 %v2151_v50, %v5477_v18 }
 0x242   : > { %4134 = verf.f32 %v2432_v2  ;;  %v2304_v46 = vmul.f32 0.5, %v1953_v48  ;;  %v2436_v58 = vmul.f32 0.70710677, %v1957_v31  ;;  %v5487_v60 = vmul.f32 0.5, %v2146_v61 }
 0x243   : > { %4136 = verf.f32 %v2434_v30  ;;  %v2438_v16 = vmul.f32 0.70710677, %v2150_v52  ;;  %v2437_v28 = vmul.f32 0.70710677, %v1959_v14  ;;  %v5489_v37 = vmul.f32 0.5, %v1955_v35 }
 0x244   : > { %4138 = verf.f32 %v2433_v42  ;;  %v2439_v20 = vmul.f32 0.70710677, %v2152_v12  ;;  %v5492_v39 = vmul.f32 0.5, %v2148_v49  ;;  %v5496_v19 = vmul.f32 0.5, %v1957_v31 }
 0x245   : > { %4140 = verf.f32 %v2435_v36  ;;  %v1962_v29 = vpop.f32.mrb[4].mxu0  ;;  %v2155_v0 = vpop.f32.mrb[4].mxu1  ;;  %v5499_v27 = vmul.f32 0.5, %v2150_v52  ;;  %v5501_v40 = vmul.f32 0.5, %v1959_v14  ;;  %v5503_v32 = vmul.f32 0.5, %v2152_v12 }
 0x246   : > { %4142 = verf.f32 %v2436_v58  ;;  %v1963_v26 = vadd.f32 %v1962_v29, %v5465_v54  ;;  %v1964_v38 = vpop.f32.mrb[5].mxu0  ;;  %v2156_v1 = vadd.f32 %v2155_v0, %v5469_v44  ;;  %v2157_v47 = vpop.f32.mrb[5].mxu1 }
 0x247   : > { %4144 = verf.f32 %v2438_v16  ;;  %v1965_v21 = vadd.f32 %v1964_v38, %v5473_v41  ;;  %v1966_v33 = vpop.f32.mrb[6].mxu0  ;;  %v2158_v10 = vadd.f32 %v2157_v47, %v5477_v18  ;;  %v2159_v62 = vpop.f32.mrb[6].mxu1 }
 0x248   : > { %4146 = verf.f32 %v2437_v28  ;;  %v2440_v15 = vmul.f32 0.70710677, %v1963_v26  ;;  %v1968_v11 = vpop.f32.mrb[7].mxu0  ;;  %v2442_v3 = vmul.f32 0.70710677, %v2156_v1  ;;  %v2161_v57 = vpop.f32.mrb[7].mxu1  ;;  %v1967_v34 = vadd.f32 %v1966_v33, %v5465_v54 }
 0x249   : > { %4148 = verf.f32 %v2439_v20  ;;  %v2441_v51 = vmul.f32 0.70710677, %v1965_v21  ;;  %v2443_v43 = vmul.f32 0.70710677, %v2158_v10  ;;  %v2160_v63 = vadd.f32 %v2159_v62, %v5469_v44 }
 0x24a   : > { %4150 = verf.f32 %v2440_v15  ;;  %v5508_v17 = vadd.f32 %v1968_v11, %v5473_v41  ;;  %v5510_v55 = vmul.f32 0.5, %v1963_v26  ;;  %v5512_v7 = vmul.f32 0.5, %v2156_v1 }
 0x24b   : > { %4152 = verf.f32 %v2442_v3  ;;  %v5514_v59 = vmul.f32 0.5, %v1965_v21  ;;  %v5516_v56 = vmul.f32 0.5, %v2158_v10  ;;  %v2444_v13 = vmul.f32 0.70710677, %v1967_v34 }
 0x24c   : > { %v4135_v9 = vpop.eup %4134  ;;  %4154 = verf.f32 %v2441_v51  ;;  %v5520_v61 = vmul.f32 0.5, %v1967_v34  ;;  %v2446_v23 = vmul.f32 0.70710677, %v2160_v63  ;;  %v5523_v8 = vadd.f32 %v2161_v57, %v5477_v18 }
 0x24d   : > { %v4137_v4 = vpop.eup %4136  ;;  %v2688_v6 = vadd.f32 1.0, %v4135_v9  ;;  %4156 = verf.f32 %v2443_v43  ;;  %v1972_v45 = vpop.f32.mrb[8].mxu0  ;;  %v2445_v2 = vmul.f32 0.70710677, %v5508_v17  ;;  %v5534_v24 = vmul.f32 0.5, %v2160_v63 }
 0x24e   : > { %v5518_v53 = vpop.f32.mrb[8].mxu1  ;;  %v4139_v25 = vpop.eup %4138  ;;  %v2690_v48 = vadd.f32 1.0, %v4137_v4  ;;  %4158 = verf.f32 %v2444_v13  ;;  %v2447_v0 = vmul.f32 0.70710677, %v5523_v8 }
 0x24f   : > { %v5525_v35 = vpop.f32.mrb[9].mxu0  ;;  %v4141_v49 = vpop.eup %4140  ;;  %v2816_v22 = vmul.f32 %v2688_v6, %v2304_v46  ;;  %v2689_v5 = vadd.f32 1.0, %v4139_v25  ;;  %4160 = verf.f32 %v2446_v23 }
 0x250   : > { %v5529_v30 = vpop.f32.mrb[9].mxu1  ;;  %v5531_v42 = vpop.f32.mrb[10].mxu0  ;;  %v2818_v31 = vmul.f32 %v2690_v48, %v5487_v60  ;;  %v2691_v52 = vadd.f32 1.0, %v4141_v49  ;;  %4162 = verf.f32 %v2445_v2 }
 0x251   : > { %v4143_v36 = vpop.eup %4142  ;;  %v5536_v50 = vpop.f32.mrb[10].mxu1  ;;  %v2948_v46 = vmul.f32 %v2816_v22, %v2816_v22  ;;  %v2817_v58 = vmul.f32 %v2689_v5, %v5489_v37  ;;  %4164 = verf.f32 %v2447_v0 }
 0x252   : > { %v5538_v14 = vpop.f32.mrb[11].mxu0  ;;  %v4145_v12 = vpop.eup %4144  ;;  %v2692_v16 = vadd.f32 1.0, %v4143_v36  ;;  %v2950_v20 = vmul.f32 %v2818_v31, %v2818_v31  ;;  %v2819_v60 = vmul.f32 %v2691_v52, %v5492_v39 }
 0x253   : > { %v5541_v28 = vpop.f32.mrb[11].mxu1  ;;  %v4147_v29 = vpop.eup %4146  ;;  %v2694_v26 = vadd.f32 1.0, %v4145_v12  ;;  %v2949_v1 = vmul.f32 %v2817_v58, %v2817_v58  ;;  %v3932_v37 = vpack.c.bf16 %v2817_v58, %v2816_v22 }
 0x254   : > { %v4149_v38 = vpop.eup %4148  ;;  %v2820_v21 = vmul.f32 %v2692_v16, %v5496_v19  ;;  %v2693_v47 = vadd.f32 1.0, %v4147_v29  ;;  %v2951_v15 = vmul.f32 %v2819_v60, %v2819_v60  ;;  %v3933_v10 = vpack.c.bf16 %v2819_v60, %v2818_v31 }
 0x255   : > { %v4151_v33 = vpop.eup %4150  ;;  %v2822_v62 = vmul.f32 %v2694_v26, %v5499_v27  ;;  %v2695_v11 = vadd.f32 1.0, %v4149_v38  ;;  %3616 = vst [vmem:[%s5546_s2] sm:$0xff] %v3932_v37  ;;  %v5554_v43 = vpop.f32.mrb[12].mxu0  ;;  %v5561_v27 = vadd.f32 %v1972_v45, %v5465_v54 }
 0x256   : > { %v4153_v3 = vpop.eup %4152  ;;  %v2952_v57 = vmul.f32 %v2820_v21, %v2820_v21  ;;  %v2821_v39 = vmul.f32 %v2693_v47, %v5501_v40  ;;  %v2696_v51 = vadd.f32 1.0, %v4151_v33  ;;  %v5556_v34 = vpop.f32.mrb[12].mxu1  ;;  %3617 = vst [vmem:[%s5546_s2 + $0x8] sm:$0xff] %v3933_v10 }
 0x257   : > { %v4155_v19 = vpop.eup %4154  ;;  %v2954_v63 = vmul.f32 %v2822_v62, %v2822_v62  ;;  %v2823_v9 = vmul.f32 %v2695_v11, %v5503_v32  ;;  %v2698_v4 = vadd.f32 1.0, %v4153_v3  ;;  %v5563_v6 = vpop.f32.mrb[13].mxu0 }
 0x258   : > { %v5565_v13 = vpop.f32.mrb[13].mxu1  ;;  %v4157_v40 = vpop.eup %4156  ;;  %v3076_v25 = vadd.f32 %v2952_v57, %v2948_v46  ;;  %v2953_v48 = vmul.f32 %v2821_v39, %v2821_v39  ;;  %v3934_v23 = vpack.c.bf16 %v2821_v39, %v2820_v21  ;;  %v2824_v49 = vmul.f32 %v2696_v51, %v5510_v55 }
 0x259   : > { %v5568_v22 = vpop.f32.mrb[14].mxu0  ;;  %v5570_v5 = vpop.f32.mrb[14].mxu1  ;;  %v3150_v32 = vadd.f32 %v2954_v63, %v2950_v20  ;;  %v2955_v2 = vmul.f32 %v2823_v9, %v2823_v9  ;;  %v3935_v45 = vpack.c.bf16 %v2823_v9, %v2822_v62  ;;  %v2826_v36 = vmul.f32 %v2698_v4, %v5512_v7 }
 0x25a   : > { %v5573_v31 = vpop.f32.mrb[15].mxu0  ;;  %v5575_v52 = vpop.f32.mrb[15].mxu1  ;;  %v3113_v46 = vadd.f32 %v2953_v48, %v2949_v1  ;;  %3618 = vst [vmem:[%s5546_s2 + $0x10] sm:$0xff] %v3934_v23  ;;  %v2956_v58 = vmul.f32 %v2824_v49, %v2824_v49  ;;  %v2697_v16 = vadd.f32 1.0, %v4155_v19  ;;  %v2699_v55 = vadd.f32 1.0, %v4157_v40 }
 0x25b   : > { %v4159_v12 = vpop.eup %4158  ;;  %v3187_v60 = vadd.f32 %v2955_v2, %v2951_v15  ;;  %3619 = vst [vmem:[%s5546_s2 + $0x18] sm:$0xff] %v3935_v45  ;;  %v2958_v26 = vmul.f32 %v2826_v36, %v2826_v36  ;;  %v2317_v20 = vmul.f32 0.5, %v5508_v17  ;;  %v2448_v62 = vmul.f32 0.70710677, %v5561_v27 }
 0x25c   : > { %v4161_v29 = vpop.eup %4160  ;;  %v2700_v0 = vadd.f32 1.0, %v4159_v12  ;;  %v3077_v37 = vadd.f32 %v3076_v25, %v2956_v58  ;;  %v2825_v7 = vmul.f32 %v2697_v16, %v5514_v59  ;;  %v2827_v21 = vmul.f32 %v2699_v55, %v5516_v56 }
 0x25d   : > { %v4163_v38 = vpop.eup %4162  ;;  %v2702_v47 = vadd.f32 1.0, %v4161_v29  ;;  %v3151_v33 = vadd.f32 %v3150_v32, %v2958_v26  ;;  %v5584_v17 = vpop.f32.mrb[16].mxu0  ;;  %4166 = verf.f32 %v2448_v62  ;;  %v2166_v40 = vadd.f32 %v5518_v53, %v5469_v44 }
 0x25e   : > { %v2828_v1 = vmul.f32 %v2700_v0, %v5520_v61  ;;  %v2701_v10 = vadd.f32 1.0, %v4163_v38  ;;  %v2957_v15 = vmul.f32 %v2825_v7, %v2825_v7  ;;  %v3936_v11 = vpack.c.bf16 %v2825_v7, %v2824_v49  ;;  %v5586_v39 = vpop.f32.mrb[16].mxu1  ;;  %v5589_v19 = vpop.f32.mrb[17].mxu0 }
 0x25f   : > { %v2959_v3 = vmul.f32 %v2827_v21, %v2827_v21  ;;  %v3937_v57 = vpack.c.bf16 %v2827_v21, %v2826_v36  ;;  %v2830_v56 = vmul.f32 %v2702_v47, %v5534_v24  ;;  %v5591_v61 = vpop.f32.mrb[17].mxu1  ;;  %v4165_v63 = vpop.eup %4164  ;;  %v1975_v25 = vadd.f32 %v5525_v35, %v5473_v41 }
 0x260   : > { %v2960_v59 = vmul.f32 %v2828_v1, %v2828_v1  ;;  %v2829_v51 = vmul.f32 %v2701_v10, %v2317_v20  ;;  %v3114_v9 = vadd.f32 %v3113_v46, %v2957_v15  ;;  %3620 = vst [vmem:[%s5546_s2 + $0x20] sm:$0xff] %v3936_v11  ;;  %v5599_v48 = vpop.f32.mrb[18].mxu0  ;;  %v5601_v24 = vpop.f32.mrb[18].mxu1  ;;  %v2319_v12 = vmul.f32 0.5, %v5523_v8 }
 0x261   : > { %v3188_v4 = vadd.f32 %v3187_v60, %v2959_v3  ;;  %3621 = vst [vmem:[%s5546_s2 + $0x28] sm:$0xff] %v3937_v57  ;;  %v2962_v49 = vmul.f32 %v2830_v56, %v2830_v56  ;;  %v5605_v45 = vpop.f32.mrb[19].mxu0  ;;  %v5607_v36 = vpop.f32.mrb[19].mxu1  ;;  %v2703_v53 = vadd.f32 1.0, %v4165_v63  ;;  %v2320_v46 = vmul.f32 0.5, %v5561_v27 }
 0x262   : > { %v5603_v23 = vadd.f32 %v3077_v37, %v2960_v59  ;;  %v2961_v32 = vmul.f32 %v2829_v51, %v2829_v51  ;;  %v3938_v2 = vpack.c.bf16 %v2829_v51, %v2828_v1  ;;  %v2450_v58 = vmul.f32 0.70710677, %v2166_v40 }
 0x263   : > { %v5611_v35 = vadd.f32 %v3151_v33, %v2962_v49  ;;  %v2449_v55 = vmul.f32 0.70710677, %v1975_v25  ;;  %v2168_v29 = vadd.f32 %v5529_v30, %v5477_v18  ;;  %v2831_v60 = vmul.f32 %v2703_v53, %v2319_v12 }
 0x264   : > { %v5613_v16 = vadd.f32 %v3114_v9, %v2961_v32  ;;  %3622 = vst [vmem:[%s5546_s2 + $0x30] sm:$0xff] %v3938_v2  ;;  %4168 = verf.f32 %v2450_v58  ;;  %v1977_v26 = vadd.f32 %v5531_v42, %v5465_v54  ;;  %v2170_v8 = vadd.f32 %v5536_v50, %v5469_v44 }
 0x265   : > { %v5622_v0 = vmul.f32 0.5, %v2166_v40  ;;  %4170 = verf.f32 %v2449_v55  ;;  %v2451_v27 = vmul.f32 0.70710677, %v2168_v29  ;;  %v1979_v20 = vadd.f32 %v5538_v14, %v5473_v41  ;;  %v5628_v21 = vpop.f32.mrb[20].mxu0  ;;  %v5630_v47 = vpop.f32.mrb[20].mxu1 }
 0x266   : > { %v2963_v38 = vmul.f32 %v2831_v60, %v2831_v60  ;;  %v3939_v37 = vpack.c.bf16 %v2831_v60, %v2830_v56  ;;  %v5626_v7 = vmul.f32 0.5, %v1975_v25  ;;  %v2452_v30 = vmul.f32 0.70710677, %v1977_v26  ;;  %v5636_v1 = vpop.f32.mrb[21].mxu0  ;;  %v5638_v10 = vpop.f32.mrb[21].mxu1 }
 0x267   : > { %v5632_v42 = vmul.f32 0.5, %v2168_v29  ;;  %4172 = verf.f32 %v2451_v27  ;;  %v5634_v50 = vmul.f32 0.5, %v1977_v26  ;;  %v2454_v33 = vmul.f32 0.70710677, %v2170_v8  ;;  %v5645_v11 = vpop.f32.mrb[22].mxu0  ;;  %v5647_v3 = vpop.f32.mrb[22].mxu1 }
 0x268   : > { %v5640_v14 = vadd.f32 %v3188_v4, %v2963_v38  ;;  %3623 = vst [vmem:[%s5546_s2 + $0x38] sm:$0xff] %v3939_v37  ;;  %4174 = verf.f32 %v2452_v30  ;;  %v2453_v62 = vmul.f32 0.70710677, %v1979_v20  ;;  %v2172_v15 = vadd.f32 %v5541_v28, %v5477_v18  ;;  %v4167_v57 = vpop.eup %4166  ;;  %v5655_v63 = vpop.f32.mrb[23].mxu0 }
 0x269   : > { %4176 = verf.f32 %v2454_v33  ;;  %v1983_v59 = vadd.f32 %v5554_v43, %v5465_v54  ;;  %v2176_v56 = vadd.f32 %v5556_v34, %v5469_v44  ;;  %v1985_v51 = vadd.f32 %v5563_v6, %v5473_v41  ;;  %v5657_v9 = vpop.f32.mrb[23].mxu1 }
 0x26a   : > { %v2704_v28 = vadd.f32 1.0, %v4167_v57  ;;  %v5659_v4 = vmul.f32 0.5, %v2170_v8  ;;  %4178 = verf.f32 %v2453_v62  ;;  %v2455_v40 = vmul.f32 0.70710677, %v2172_v15 }
 0x26b   : > { %v5661_v25 = vmul.f32 0.5, %v1979_v20  ;;  %v5663_v49 = vmul.f32 0.5, %v2172_v15  ;;  %v2456_v43 = vmul.f32 0.70710677, %v1983_v59  ;;  %v2458_v32 = vmul.f32 0.70710677, %v2176_v56 }
 0x26c   : > { %v2832_v2 = vmul.f32 %v2704_v28, %v2320_v46  ;;  %4180 = verf.f32 %v2455_v40  ;;  %v5665_v34 = vmul.f32 0.5, %v1983_v59  ;;  %v2457_v6 = vmul.f32 0.70710677, %v1985_v51 }
 0x26d   : > { %4182 = verf.f32 %v2456_v43  ;;  %v2178_v12 = vadd.f32 %v5565_v13, %v5477_v18  ;;  %v1987_v53 = vadd.f32 %v5568_v22, %v5465_v54  ;;  %v2180_v58 = vadd.f32 %v5570_v5, %v5469_v44  ;;  %v5677_v26 = vpop.f32.mrb[24].mxu0  ;;  %v5679_v8 = vpop.f32.mrb[24].mxu1 }
 0x26e   : > { %v4169_v55 = vpop.eup %4168  ;;  %v2964_v29 = vmul.f32 %v2832_v2, %v2832_v2  ;;  %v5673_v60 = vmul.f32 0.5, %v2176_v56  ;;  %4184 = verf.f32 %v2458_v32  ;;  %v5675_v46 = vmul.f32 0.5, %v1985_v51  ;;  %v5685_v5 = vpop.f32.mrb[25].mxu0 }
 0x26f   : > { %v4171_v27 = vpop.eup %4170  ;;  %v2706_v20 = vadd.f32 1.0, %v4169_v55  ;;  %4186 = verf.f32 %v2457_v6  ;;  %v2459_v13 = vmul.f32 0.70710677, %v2178_v12  ;;  %v5683_v22 = vadd.f32 %v5573_v31, %v5473_v41  ;;  %v5687_v38 = vpop.f32.mrb[25].mxu1 }
 0x270   : > { %v3079_v37 = vadd.f32 %v5603_v23, %v2964_v29  ;;  %v2705_v30 = vadd.f32 1.0, %v4171_v27  ;;  %v2460_v33 = vmul.f32 0.70710677, %v1987_v53  ;;  %v5692_v62 = vadd.f32 %v5575_v52, %v5477_v18  ;;  %v5694_v15 = vpop.f32.mrb[26].mxu0  ;;  %v5696_v57 = vpop.f32.mrb[26].mxu1 }
 0x271   : > { %6408 = vst [vmem:[#allocation4_spill] sm:$0xff] %v5696_v57  ;;  %v4173_v59 = vpop.eup %4172  ;;  %v2834_v31 = vmul.f32 %v2706_v20, %v5622_v0  ;;  %v5699_v56 = vmul.f32 0.5, %v2178_v12  ;;  %4188 = verf.f32 %v2459_v13  ;;  %v2462_v51 = vmul.f32 0.70710677, %v2180_v58  ;;  %v5701_v28 = vpop.f32.mrb[27].mxu0 }
 0x272   : > { %6409 = vst [vmem:[#allocation5_spill] sm:$0xff] %v5701_v28  ;;  %v5703_v23 = vpop.f32.mrb[27].mxu1  ;;  %v4175_v40 = vpop.eup %4174  ;;  %v2833_v43 = vmul.f32 %v2705_v30, %v5626_v7  ;;  %v2707_v52 = vadd.f32 1.0, %v4173_v59  ;;  %v5706_v32 = vmul.f32 0.5, %v1987_v53  ;;  %4190 = verf.f32 %v2460_v33 }
 0x273   : > { %6410 = vst [vmem:[#allocation6_spill] sm:$0xff] %v5703_v23  ;;  %v4177_v6 = vpop.eup %4176  ;;  %v2966_v55 = vmul.f32 %v2834_v31, %v2834_v31  ;;  %v2708_v29 = vadd.f32 1.0, %v4175_v40  ;;  %4192 = verf.f32 %v2462_v51  ;;  %v2461_v0 = vmul.f32 0.70710677, %v5683_v22 }
 0x274   : > { %v4179_v12 = vpop.eup %4178  ;;  %v2965_v27 = vmul.f32 %v2833_v43, %v2833_v43  ;;  %v3940_v20 = vpack.c.bf16 %v2833_v43, %v2832_v2  ;;  %v2835_v13 = vmul.f32 %v2707_v52, %v5632_v42  ;;  %v2710_v23 = vadd.f32 1.0, %v4177_v6 }
 0x275   : > { %v3153_v28 = vadd.f32 %v5611_v35, %v2966_v55  ;;  %v2836_v7 = vmul.f32 %v2708_v29, %v5634_v50  ;;  %v2709_v53 = vadd.f32 1.0, %v4179_v12  ;;  %4194 = verf.f32 %v2461_v0  ;;  %v5715_v57 = vpop.f32.mrb[28].mxu0  ;;  %v5717_v2 = vpop.f32.mrb[28].mxu1 }
 0x276   : > { %v4181_v30 = vpop.eup %4180  ;;  %v3116_v33 = vadd.f32 %v5613_v16, %v2965_v27  ;;  %3624 = vst [vmem:[%s5546_s2 + $0x40] sm:$0xff] %v3940_v20  ;;  %v2967_v59 = vmul.f32 %v2835_v13, %v2835_v13  ;;  %v3941_v51 = vpack.c.bf16 %v2835_v13, %v2834_v31  ;;  %v2838_v40 = vmul.f32 %v2710_v23, %v5659_v4  ;;  %v5720_v6 = vpop.f32.mrb[29].mxu0 }
 0x277   : > { %v4183_v42 = vpop.eup %4182  ;;  %v2968_v43 = vmul.f32 %v2836_v7, %v2836_v7  ;;  %v2837_v35 = vmul.f32 %v2709_v53, %v5661_v25  ;;  %v2711_v50 = vadd.f32 1.0, %v4181_v30  ;;  %v2334_v52 = vmul.f32 0.5, %v2180_v58  ;;  %6411 = vst [vmem:[#allocation7_spill] sm:$0xff] %v5720_v6  ;;  %v5722_v55 = vpop.f32.mrb[29].mxu1 }
 0x278   : > { %6412 = vst [vmem:[#allocation8_spill] sm:$0xff] %v5722_v55  ;;  %v4185_v16 = vpop.eup %4184  ;;  %v3190_v29 = vadd.f32 %v5640_v14, %v2967_v59  ;;  %3625 = vst [vmem:[%s5546_s2 + $0x48] sm:$0xff] %v3941_v51  ;;  %v2970_v31 = vmul.f32 %v2838_v40, %v2838_v40  ;;  %v2712_v4 = vadd.f32 1.0, %v4183_v42  ;;  %v2463_v23 = vmul.f32 0.70710677, %v5692_v62  ;;  %v5727_v0 = vpop.f32.mrb[30].mxu0 }
 0x279   : > { %6413 = vst [vmem:[#allocation9_spill] sm:$0xff] %v5727_v0  ;;  %v5729_v12 = vpop.f32.mrb[30].mxu1  ;;  %v4187_v25 = vpop.eup %4186  ;;  %v3080_v27 = vadd.f32 %v3079_v37, %v2968_v43  ;;  %v2969_v58 = vmul.f32 %v2837_v35, %v2837_v35  ;;  %v3942_v20 = vpack.c.bf16 %v2837_v35, %v2836_v7  ;;  %v2839_v13 = vmul.f32 %v2711_v50, %v5663_v49 }
 0x27a   : > { %6414 = vst [vmem:[#allocation10_spill] sm:$0xff] %v5729_v12  ;;  %v5732_v53 = vpop.f32.mrb[31].mxu0  ;;  %v5734_v30 = vpop.f32.mrb[31].mxu1  ;;  %v3154_v14 = vadd.f32 %v3153_v28, %v2970_v31  ;;  %v2840_v59 = vmul.f32 %v2712_v4, %v5665_v34  ;;  %v2714_v51 = vadd.f32 1.0, %v4185_v16  ;;  %v2713_v42 = vadd.f32 1.0, %v4187_v25 }
 0x27b   : > { %v4189_v55 = vpop.eup %4188  ;;  %v3117_v0 = vadd.f32 %v3116_v33, %v2969_v58  ;;  %3626 = vst [vmem:[%s5546_s2 + $0x50] sm:$0xff] %v3942_v20  ;;  %v2971_v12 = vmul.f32 %v2839_v13, %v2839_v13  ;;  %v3943_v6 = vpack.c.bf16 %v2839_v13, %v2838_v40  ;;  %4196 = verf.f32 %v2463_v23 }
 0x27c   : > { %v4191_v37 = vpop.eup %4190  ;;  %v2972_v7 = vmul.f32 %v2840_v59, %v2840_v59  ;;  %v2842_v49 = vmul.f32 %v2714_v51, %v5673_v60  ;;  %v2841_v43 = vmul.f32 %v2713_v42, %v5675_v46  ;;  %v2715_v35 = vadd.f32 1.0, %v4189_v55 }
 0x27d   : > { %v4193_v50 = vpop.eup %4192  ;;  %v3191_v28 = vadd.f32 %v3190_v29, %v2971_v12  ;;  %3627 = vst [vmem:[%s5546_s2 + $0x58] sm:$0xff] %v3943_v6  ;;  %v2716_v34 = vadd.f32 1.0, %v4191_v37  ;;  %v1993_v16 = vadd.f32 %v5584_v17, %v5465_v54  ;;  %v2186_v33 = vadd.f32 %v5586_v39, %v5469_v44  ;;  %v5745_v25 = vpop.f32.mrb[32].mxu0 }
 0x27e   : > { %v3081_v40 = vadd.f32 %v3080_v27, %v2972_v7  ;;  %v2974_v31 = vmul.f32 %v2842_v49, %v2842_v49  ;;  %v2973_v4 = vmul.f32 %v2841_v43, %v2841_v43  ;;  %v3944_v23 = vpack.c.bf16 %v2841_v43, %v2840_v59  ;;  %v5747_v60 = vpop.f32.mrb[32].mxu1  ;;  %v5752_v12 = vpop.f32.mrb[33].mxu0 }
 0x27f   : > { %v4195_v46 = vpop.eup %4194  ;;  %v2843_v55 = vmul.f32 %v2715_v35, %v5699_v56  ;;  %v2844_v6 = vmul.f32 %v2716_v34, %v5706_v32  ;;  %v2718_v29 = vadd.f32 1.0, %v4193_v50  ;;  %v2333_v17 = vmul.f32 0.5, %v5683_v22  ;;  %v5754_v39 = vpop.f32.mrb[33].mxu1 }
 0x280   : > { %v3155_v27 = vadd.f32 %v3154_v14, %v2974_v31  ;;  %v3118_v58 = vadd.f32 %v3117_v0, %v2973_v4  ;;  %3628 = vst [vmem:[%s5546_s2 + $0x60] sm:$0xff] %v3944_v23  ;;  %v2717_v20 = vadd.f32 1.0, %v4195_v46  ;;  %v2464_v13 = vmul.f32 0.70710677, %v1993_v16  ;;  %v5757_v59 = vpop.f32.mrb[34].mxu0  ;;  %v5759_v51 = vpop.f32.mrb[34].mxu1 }
 0x281   : > { %v2975_v56 = vmul.f32 %v2843_v55, %v2843_v55  ;;  %v3945_v42 = vpack.c.bf16 %v2843_v55, %v2842_v49  ;;  %v2976_v32 = vmul.f32 %v2844_v6, %v2844_v6  ;;  %v2846_v37 = vmul.f32 %v2718_v29, %v2334_v52  ;;  %v5761_v7 = vpop.f32.mrb[35].mxu0  ;;  %v5763_v22 = vpop.f32.mrb[35].mxu1 }
 0x282   : > { %v2845_v43 = vmul.f32 %v2717_v20, %v2333_v17  ;;  %v2335_v14 = vmul.f32 0.5, %v5692_v62  ;;  %4198 = verf.f32 %v2464_v13  ;;  %v2466_v0 = vmul.f32 0.70710677, %v2186_v33 }
 0x283   : > { %v3192_v35 = vadd.f32 %v3191_v28, %v2975_v56  ;;  %3629 = vst [vmem:[%s5546_s2 + $0x68] sm:$0xff] %v3945_v42  ;;  %v5767_v50 = vadd.f32 %v3081_v40, %v2976_v32  ;;  %v2978_v34 = vmul.f32 %v2846_v37, %v2846_v37  ;;  %v1995_v49 = vadd.f32 %v5589_v19, %v5473_v41 }
 0x284   : > { %v2977_v31 = vmul.f32 %v2845_v43, %v2845_v43  ;;  %v3946_v52 = vpack.c.bf16 %v2845_v43, %v2844_v6  ;;  %4200 = verf.f32 %v2466_v0  ;;  %v2188_v4 = vadd.f32 %v5591_v61, %v5477_v18 }
 0x285   : > { %v4197_v23 = vpop.eup %4196  ;;  %v5773_v46 = vadd.f32 %v3155_v27, %v2978_v34  ;;  %v2336_v62 = vmul.f32 0.5, %v1993_v16  ;;  %v2465_v55 = vmul.f32 0.70710677, %v1995_v49  ;;  %v1997_v28 = vadd.f32 %v5599_v48, %v5465_v54  ;;  %v5780_v20 = vpop.f32.mrb[36].mxu0 }
 0x286   : > { %v5777_v40 = vadd.f32 %v3118_v58, %v2977_v31  ;;  %3630 = vst [vmem:[%s5546_s2 + $0x70] sm:$0xff] %v3946_v52  ;;  %v2719_v29 = vadd.f32 1.0, %v4197_v23  ;;  %v2338_v17 = vmul.f32 0.5, %v2186_v33  ;;  %v2467_v19 = vmul.f32 0.70710677, %v2188_v4  ;;  %v5782_v6 = vpop.f32.mrb[36].mxu1 }
 0x287   : > { %v5784_v13 = vmul.f32 0.5, %v1995_v49  ;;  %4202 = verf.f32 %v2465_v55  ;;  %v2468_v61 = vmul.f32 0.70710677, %v1997_v28  ;;  %v2190_v16 = vadd.f32 %v5601_v24, %v5469_v44  ;;  %v5788_v27 = vpop.f32.mrb[37].mxu0  ;;  %v5790_v48 = vpop.f32.mrb[37].mxu1 }
 0x288   : > { %6415 = vst [vmem:[#allocation3_spill] sm:$0xff] %v5790_v48  ;;  %v2847_v58 = vmul.f32 %v2719_v29, %v2335_v14  ;;  %4204 = verf.f32 %v2467_v19  ;;  %v1999_v33 = vadd.f32 %v5605_v45, %v5473_v41  ;;  %v2192_v56 = vadd.f32 %v5607_v36, %v5477_v18  ;;  %v5796_v42 = vpop.f32.mrb[38].mxu0  ;;  %v5798_v32 = vpop.f32.mrb[38].mxu1 }
 0x289   : > { %6416 = vst [vmem:[#allocation11_spill] sm:$0xff] %v5796_v42  ;;  %6417 = vst [vmem:[#allocation12_spill] sm:$0xff] %v5798_v32  ;;  %v2339_v43 = vmul.f32 0.5, %v2188_v4  ;;  %4206 = verf.f32 %v2468_v61  ;;  %v2470_v24 = vmul.f32 0.70710677, %v2190_v16  ;;  %v2003_v0 = vadd.f32 %v5628_v21, %v5465_v54  ;;  %v5802_v34 = vpop.f32.mrb[39].mxu0 }
 0x28a   : > { %6418 = vst [vmem:[#allocation13_spill] sm:$0xff] %v5802_v34  ;;  %v5804_v14 = vpop.f32.mrb[39].mxu1  ;;  %v2979_v49 = vmul.f32 %v2847_v58, %v2847_v58  ;;  %v3947_v45 = vpack.c.bf16 %v2847_v58, %v2846_v37  ;;  %v2340_v31 = vmul.f32 0.5, %v1997_v28  ;;  %v2469_v52 = vmul.f32 0.70710677, %v1999_v33 }
 0x28b   : > { %6419 = vst [vmem:[#allocation14_spill] sm:$0xff] %v5804_v14  ;;  %v5806_v36 = vmul.f32 0.5, %v2190_v16  ;;  %4208 = verf.f32 %v2470_v24  ;;  %v5808_v23 = vmul.f32 0.5, %v1999_v33  ;;  %v2471_v4 = vmul.f32 0.70710677, %v2192_v56 }
 0x28c   : > { %v4199_v55 = vpop.eup %4198  ;;  %v3193_v29 = vadd.f32 %v3192_v35, %v2979_v49  ;;  %3631 = vst [vmem:[%s5546_s2 + $0x78] sm:$0xff] %v3947_v45  ;;  %4210 = verf.f32 %v2469_v52  ;;  %v2472_v19 = vmul.f32 0.70710677, %v2003_v0  ;;  %v2196_v21 = vadd.f32 %v5630_v47, %v5469_v44 }
 0x28d   : > { %v2720_v61 = vadd.f32 1.0, %v4199_v55  ;;  %4212 = verf.f32 %v2471_v4  ;;  %v2005_v37 = vadd.f32 %v5636_v1, %v5473_v41  ;;  %v2198_v28 = vadd.f32 %v5638_v10, %v5477_v18 }
 0x28e   : > { %v4201_v16 = vpop.eup %4200  ;;  %v2343_v58 = vmul.f32 0.5, %v2192_v56  ;;  %4214 = verf.f32 %v2472_v19  ;;  %v2474_v33 = vmul.f32 0.70710677, %v2196_v21  ;;  %v2007_v35 = vadd.f32 %v5645_v11, %v5465_v54 }
 0x28f   : > { %v2848_v24 = vmul.f32 %v2720_v61, %v2336_v62  ;;  %v2722_v49 = vadd.f32 1.0, %v4201_v16  ;;  %v2344_v45 = vmul.f32 0.5, %v2003_v0  ;;  %v2473_v52 = vmul.f32 0.70710677, %v2005_v37 }
 0x290   : > { %v5819_v47 = vmul.f32 0.5, %v2196_v21  ;;  %4216 = verf.f32 %v2474_v33  ;;  %v5821_v4 = vmul.f32 0.5, %v2005_v37  ;;  %v2475_v1 = vmul.f32 0.70710677, %v2198_v28 }
 0x291   : > { %v4203_v55 = vpop.eup %4202  ;;  %v2980_v14 = vmul.f32 %v2848_v24, %v2848_v24  ;;  %v2850_v10 = vmul.f32 %v2722_v49, %v2338_v17  ;;  %4218 = verf.f32 %v2473_v52  ;;  %v2476_v56 = vmul.f32 0.70710677, %v2007_v35 }
 0x292   : > { %v4205_v19 = vpop.eup %4204  ;;  %v2721_v34 = vadd.f32 1.0, %v4203_v55  ;;  %4220 = verf.f32 %v2475_v1  ;;  %v2200_v11 = vadd.f32 %v5647_v3, %v5469_v44  ;;  %v5827_v62 = vadd.f32 %v5655_v63, %v5473_v41 }
 0x293   : > { %v4207_v0 = vpop.eup %4206  ;;  %v3083_v21 = vadd.f32 %v5767_v50, %v2980_v14  ;;  %v2982_v61 = vmul.f32 %v2850_v10, %v2850_v10  ;;  %v2723_v37 = vadd.f32 1.0, %v4205_v19  ;;  %4222 = verf.f32 %v2476_v56 }
 0x294   : > { %v2849_v17 = vmul.f32 %v2721_v34, %v5784_v13  ;;  %v2724_v16 = vadd.f32 1.0, %v4207_v0  ;;  %v2347_v33 = vmul.f32 0.5, %v2198_v28  ;;  %v2478_v49 = vmul.f32 0.70710677, %v2200_v11 }
 0x295   : > { %v4209_v52 = vpop.eup %4208  ;;  %v3157_v1 = vadd.f32 %v5773_v46, %v2982_v61  ;;  %v2851_v3 = vmul.f32 %v2723_v37, %v2339_v43  ;;  %v2348_v55 = vmul.f32 0.5, %v2007_v35  ;;  %v2477_v63 = vmul.f32 0.70710677, %v5827_v62 }
 0x296   : > { %v4211_v32 = vpop.eup %4210  ;;  %v2981_v42 = vmul.f32 %v2849_v17, %v2849_v17  ;;  %v3948_v50 = vpack.c.bf16 %v2849_v17, %v2848_v24  ;;  %v2852_v14 = vmul.f32 %v2724_v16, %v2340_v31  ;;  %v2726_v19 = vadd.f32 1.0, %v4209_v52 }
 0x297   : > { %v4213_v56 = vpop.eup %4212  ;;  %v2983_v48 = vmul.f32 %v2851_v3, %v2851_v3  ;;  %v3949_v13 = vpack.c.bf16 %v2851_v3, %v2850_v10  ;;  %v2725_v34 = vadd.f32 1.0, %v4211_v32  ;;  %4224 = verf.f32 %v2478_v49 }
 0x298   : > { %v4215_v28 = vpop.eup %4214  ;;  %v3120_v0 = vadd.f32 %v5777_v40, %v2981_v42  ;;  %3632 = vst [vmem:[%s5546_s2 + $0x80] sm:$0xff] %v3948_v50  ;;  %v2984_v46 = vmul.f32 %v2852_v14, %v2852_v14  ;;  %v2854_v43 = vmul.f32 %v2726_v19, %v5806_v36  ;;  %v2727_v35 = vadd.f32 1.0, %v4213_v56 }
 0x299   : > { %v3194_v61 = vadd.f32 %v3193_v29, %v2983_v48  ;;  %3633 = vst [vmem:[%s5546_s2 + $0x88] sm:$0xff] %v3949_v13  ;;  %v2853_v37 = vmul.f32 %v2725_v34, %v5808_v23  ;;  %v2728_v24 = vadd.f32 1.0, %v4215_v28  ;;  %4226 = verf.f32 %v2477_v63 }
 0x29a   : > { %v4217_v31 = vpop.eup %4216  ;;  %v3084_v17 = vadd.f32 %v3083_v21, %v2984_v46  ;;  %v2986_v10 = vmul.f32 %v2854_v43, %v2854_v43  ;;  %v2855_v32 = vmul.f32 %v2727_v35, %v2343_v58  ;;  %v2202_v16 = vadd.f32 %v5657_v9, %v5477_v18 }
 0x29b   : > { %v4219_v40 = vpop.eup %4218  ;;  %v2985_v42 = vmul.f32 %v2853_v37, %v2853_v37  ;;  %v3950_v49 = vpack.c.bf16 %v2853_v37, %v2852_v14  ;;  %v2856_v36 = vmul.f32 %v2728_v24, %v2344_v45  ;;  %v2730_v52 = vadd.f32 1.0, %v4217_v31 }
 0x29c   : > { %v4221_v48 = vpop.eup %4220  ;;  %v3158_v29 = vadd.f32 %v3157_v1, %v2986_v10  ;;  %v2987_v3 = vmul.f32 %v2855_v32, %v2855_v32  ;;  %v3951_v23 = vpack.c.bf16 %v2855_v32, %v2854_v43  ;;  %v2729_v50 = vadd.f32 1.0, %v4219_v40 }
 0x29d   : > { %v4223_v63 = vpop.eup %4222  ;;  %v3121_v19 = vadd.f32 %v3120_v0, %v2985_v42  ;;  %3634 = vst [vmem:[%s5546_s2 + $0x90] sm:$0xff] %v3950_v49  ;;  %v2988_v21 = vmul.f32 %v2856_v36, %v2856_v36  ;;  %v2858_v58 = vmul.f32 %v2730_v52, %v5819_v47  ;;  %v2731_v56 = vadd.f32 1.0, %v4221_v48 }
 0x29e   : > { %v3195_v13 = vadd.f32 %v3194_v61, %v2987_v3  ;;  %3635 = vst [vmem:[%s5546_s2 + $0x98] sm:$0xff] %v3951_v23  ;;  %v2857_v9 = vmul.f32 %v2729_v50, %v5821_v4  ;;  %v2732_v34 = vadd.f32 1.0, %v4223_v63  ;;  %v2350_v45 = vmul.f32 0.5, %v2200_v11 }
 0x29f   : > { %v3085_v14 = vadd.f32 %v3084_v17, %v2988_v21  ;;  %v2990_v28 = vmul.f32 %v2858_v58, %v2858_v58  ;;  %v2859_v1 = vmul.f32 %v2731_v56, %v2347_v33  ;;  %v2479_v46 = vmul.f32 0.70710677, %v2202_v16 }
 0x2a0   : > { %v2989_v43 = vmul.f32 %v2857_v9, %v2857_v9  ;;  %v3952_v35 = vpack.c.bf16 %v2857_v9, %v2856_v36  ;;  %v2860_v0 = vmul.f32 %v2732_v34, %v2348_v55  ;;  %v2013_v37 = vadd.f32 %v5677_v26, %v5465_v54 }
 0x2a1   : > { %v4225_v47 = vpop.eup %4224  ;;  %v3159_v24 = vadd.f32 %v3158_v29, %v2990_v28  ;;  %v2991_v61 = vmul.f32 %v2859_v1, %v2859_v1  ;;  %v3953_v31 = vpack.c.bf16 %v2859_v1, %v2858_v58  ;;  %4228 = verf.f32 %v2479_v46 }
 0x2a2   : > { %v3122_v4 = vadd.f32 %v3121_v19, %v2989_v43  ;;  %3636 = vst [vmem:[%s5546_s2 + $0xa0] sm:$0xff] %v3952_v35  ;;  %v2992_v10 = vmul.f32 %v2860_v0, %v2860_v0  ;;  %v2734_v11 = vadd.f32 1.0, %v4225_v47  ;;  %v2349_v17 = vmul.f32 0.5, %v5827_v62  ;;  %v6420_v19 = vld [vmem:[#allocation4_spill] sm:$0xff] }
 0x2a3   : > { %v4227_v33 = vpop.eup %4226  ;;  %v5848_v32 = vadd.f32 %v3195_v13, %v2991_v61  ;;  %3637 = vst [vmem:[%s5546_s2 + $0xa8] sm:$0xff] %v3953_v31  ;;  %v2480_v40 = vmul.f32 0.70710677, %v2013_v37  ;;  %v2206_v55 = vadd.f32 %v5679_v8, %v5469_v44  ;;  %v2015_v26 = vadd.f32 %v5685_v5, %v5473_v41 }
 0x2a4   : > { %v5855_v42 = vadd.f32 %v3085_v14, %v2992_v10  ;;  %v2862_v49 = vmul.f32 %v2734_v11, %v2350_v45  ;;  %v2733_v36 = vadd.f32 1.0, %v4227_v33  ;;  %v2208_v52 = vadd.f32 %v5687_v38, %v5477_v18  ;;  %v6421_v14 = vld [vmem:[#allocation5_spill] sm:$0xff] }
 0x2a5   : > { %v2351_v48 = vmul.f32 0.5, %v2202_v16  ;;  %v2352_v62 = vmul.f32 0.5, %v2013_v37  ;;  %4230 = verf.f32 %v2480_v40  ;;  %v2482_v29 = vmul.f32 0.70710677, %v2206_v55 }
 0x2a6   : > { %v2994_v3 = vmul.f32 %v2862_v49, %v2862_v49  ;;  %v2861_v23 = vmul.f32 %v2733_v36, %v2349_v17  ;;  %v2354_v50 = vmul.f32 0.5, %v2206_v55  ;;  %v2481_v63 = vmul.f32 0.70710677, %v2015_v26 }
 0x2a7   : > { %4232 = verf.f32 %v2482_v29  ;;  %v2483_v8 = vmul.f32 0.70710677, %v2208_v52  ;;  %v2017_v5 = vadd.f32 %v5694_v15, %v5465_v54  ;;  %v2210_v21 = vadd.f32 %v6420_v19, %v5469_v44  ;;  %v6422_v15 = vld [vmem:[#allocation6_spill] sm:$0xff] }
 0x2a8   : > { %v5863_v58 = vadd.f32 %v3159_v24, %v2994_v3  ;;  %v2993_v38 = vmul.f32 %v2861_v23, %v2861_v23  ;;  %v3954_v16 = vpack.c.bf16 %v2861_v23, %v2860_v0  ;;  %4234 = verf.f32 %v2481_v63  ;;  %v6423_v0 = vld [vmem:[#allocation7_spill] sm:$0xff] }
 0x2a9   : > { %v2353_v56 = vmul.f32 0.5, %v2015_v26  ;;  %v2355_v13 = vmul.f32 0.5, %v2208_v52  ;;  %4236 = verf.f32 %v2483_v8  ;;  %v2484_v9 = vmul.f32 0.70710677, %v2017_v5  ;;  %v6424_v26 = vld [vmem:[#allocation8_spill] sm:$0xff]  ;;  %v6425_v8 = vld [vmem:[#allocation9_spill] sm:$0xff] }
 0x2aa   : > { %v5865_v34 = vadd.f32 %v3122_v4, %v2993_v38  ;;  %3638 = vst [vmem:[%s5546_s2 + $0xb0] sm:$0xff] %v3954_v16  ;;  %v2486_v45 = vmul.f32 0.70710677, %v2210_v21  ;;  %v2019_v28 = vadd.f32 %v6421_v14, %v5473_v41  ;;  %v2212_v1 = vadd.f32 %v6422_v15, %v5477_v18 }
 0x2ab   : > { %v4229_v46 = vpop.eup %4228  ;;  %4238 = verf.f32 %v2484_v9  ;;  %v2023_v43 = vadd.f32 %v5715_v57, %v5465_v54  ;;  %v2216_v35 = vadd.f32 %v5717_v2, %v5469_v44  ;;  %v2025_v37 = vadd.f32 %v6423_v0, %v5473_v41 }
 0x2ac   : > { %v2735_v47 = vadd.f32 1.0, %v4229_v46  ;;  %v2356_v24 = vmul.f32 0.5, %v2017_v5  ;;  %4240 = verf.f32 %v2486_v45  ;;  %v2485_v61 = vmul.f32 0.70710677, %v2019_v28 }
 0x2ad   : > { %v2358_v31 = vmul.f32 0.5, %v2210_v21  ;;  %v5878_v4 = vmul.f32 0.5, %v2019_v28  ;;  %v2487_v10 = vmul.f32 0.70710677, %v2212_v1  ;;  %v2488_v11 = vmul.f32 0.70710677, %v2023_v43 }
 0x2ae   : > { %v2863_v17 = vmul.f32 %v2735_v47, %v2351_v48  ;;  %4242 = verf.f32 %v2485_v61  ;;  %v5880_v33 = vmul.f32 0.5, %v2212_v1  ;;  %v2490_v57 = vmul.f32 0.70710677, %v2216_v35 }
 0x2af   : > { %v4231_v40 = vpop.eup %4230  ;;  %4244 = verf.f32 %v2487_v10  ;;  %v5882_v2 = vmul.f32 0.5, %v2023_v43  ;;  %v2489_v55 = vmul.f32 0.70710677, %v2025_v37  ;;  %v2218_v36 = vadd.f32 %v6424_v26, %v5477_v18 }
 0x2b0   : > { %v2995_v52 = vmul.f32 %v2863_v17, %v2863_v17  ;;  %v3955_v29 = vpack.c.bf16 %v2863_v17, %v2862_v49  ;;  %v2736_v3 = vadd.f32 1.0, %v4231_v40  ;;  %4246 = verf.f32 %v2488_v11 }
 0x2b1   : > { %v4233_v23 = vpop.eup %4232  ;;  %v5886_v63 = vmul.f32 0.5, %v2216_v35  ;;  %4248 = verf.f32 %v2490_v57  ;;  %v2491_v48 = vmul.f32 0.70710677, %v2218_v36  ;;  %v2027_v5 = vadd.f32 %v6425_v8, %v5465_v54 }
 0x2b2   : > { %v4235_v19 = vpop.eup %4234  ;;  %v3197_v21 = vadd.f32 %v5848_v32, %v2995_v52  ;;  %3639 = vst [vmem:[%s5546_s2 + $0xb8] sm:$0xff] %v3955_v29  ;;  %v2864_v38 = vmul.f32 %v2736_v3, %v2352_v62  ;;  %v2738_v16 = vadd.f32 1.0, %v4233_v23  ;;  %4250 = verf.f32 %v2489_v55  ;;  %v6426_v32 = vld [vmem:[#allocation10_spill] sm:$0xff] }
 0x2b3   : > { %v4237_v9 = vpop.eup %4236  ;;  %v2737_v45 = vadd.f32 1.0, %v4235_v19  ;;  %v5892_v49 = vmul.f32 0.5, %v2025_v37  ;;  %4252 = verf.f32 %v2491_v48  ;;  %v2492_v14 = vmul.f32 0.70710677, %v2027_v5 }
 0x2b4   : > { %v2996_v28 = vmul.f32 %v2864_v38, %v2864_v38  ;;  %v2866_v15 = vmul.f32 %v2738_v16, %v2354_v50  ;;  %v2739_v1 = vadd.f32 1.0, %v4237_v9  ;;  %v5894_v46 = vmul.f32 0.5, %v2218_v36 }
 0x2b5   : > { %v4239_v43 = vpop.eup %4238  ;;  %v2865_v35 = vmul.f32 %v2737_v45, %v2353_v56  ;;  %v5896_v0 = vmul.f32 0.5, %v2027_v5  ;;  %4254 = verf.f32 %v2492_v14  ;;  %v2220_v62 = vadd.f32 %v6426_v32, %v5469_v44 }
 0x2b6   : > { %v4241_v47 = vpop.eup %4240  ;;  %v3087_v37 = vadd.f32 %v5855_v42, %v2996_v28  ;;  %v2998_v61 = vmul.f32 %v2866_v15, %v2866_v15  ;;  %v2867_v10 = vmul.f32 %v2739_v1, %v2355_v13  ;;  %v2740_v11 = vadd.f32 1.0, %v4239_v43 }
 0x2b7   : > { %v2997_v17 = vmul.f32 %v2865_v35, %v2865_v35  ;;  %v3956_v50 = vpack.c.bf16 %v2865_v35, %v2864_v38  ;;  %v2742_v57 = vadd.f32 1.0, %v4241_v47  ;;  %v5903_v56 = vadd.f32 %v5732_v53, %v5473_v41 }
 0x2b8   : > { %v4243_v40 = vpop.eup %4242  ;;  %v3161_v55 = vadd.f32 %v5863_v58, %v2998_v61  ;;  %v2999_v26 = vmul.f32 %v2867_v10, %v2867_v10  ;;  %v3957_v36 = vpack.c.bf16 %v2867_v10, %v2866_v15  ;;  %v2868_v52 = vmul.f32 %v2740_v11, %v2356_v24 }
 0x2b9   : > { %v4245_v29 = vpop.eup %4244  ;;  %v3124_v42 = vadd.f32 %v5865_v34, %v2997_v17  ;;  %3640 = vst [vmem:[%s5546_s2 + $0xc0] sm:$0xff] %v3956_v50  ;;  %v2870_v13 = vmul.f32 %v2742_v57, %v2358_v31  ;;  %v2741_v3 = vadd.f32 1.0, %v4243_v40  ;;  %v2494_v23 = vmul.f32 0.70710677, %v2220_v62 }
 0x2ba   : > { %v4247_v48 = vpop.eup %4246  ;;  %v3198_v8 = vadd.f32 %v3197_v21, %v2999_v26  ;;  %3641 = vst [vmem:[%s5546_s2 + $0xc8] sm:$0xff] %v3957_v36  ;;  %v3000_v5 = vmul.f32 %v2868_v52, %v2868_v52  ;;  %v2743_v19 = vadd.f32 1.0, %v4245_v29  ;;  %v2222_v53 = vadd.f32 %v5734_v30, %v5477_v18 }
 0x2bb   : > { %v4249_v38 = vpop.eup %4248  ;;  %v3002_v58 = vmul.f32 %v2870_v13, %v2870_v13  ;;  %v2869_v16 = vmul.f32 %v2741_v3, %v5878_v4  ;;  %v2744_v24 = vadd.f32 1.0, %v4247_v48  ;;  %4256 = verf.f32 %v2494_v23 }
 0x2bc   : > { %v4251_v9 = vpop.eup %4250  ;;  %v3088_v34 = vadd.f32 %v3087_v37, %v3000_v5  ;;  %v2871_v31 = vmul.f32 %v2743_v19, %v5880_v33  ;;  %v2746_v45 = vadd.f32 1.0, %v4249_v38  ;;  %v2493_v21 = vmul.f32 0.70710677, %v5903_v56 }
 0x2bd   : > { %v4253_v14 = vpop.eup %4252  ;;  %v3162_v28 = vadd.f32 %v3161_v55, %v3002_v58  ;;  %v3001_v15 = vmul.f32 %v2869_v16, %v2869_v16  ;;  %v3958_v1 = vpack.c.bf16 %v2869_v16, %v2868_v52  ;;  %v2872_v30 = vmul.f32 %v2744_v24, %v5882_v2 }
 0x2be   : > { %v3003_v43 = vmul.f32 %v2871_v31, %v2871_v31  ;;  %v3959_v35 = vpack.c.bf16 %v2871_v31, %v2870_v13  ;;  %v2874_v4 = vmul.f32 %v2746_v45, %v5886_v63  ;;  %v2745_v32 = vadd.f32 1.0, %v4251_v9 }
 0x2bf   : > { %v4255_v47 = vpop.eup %4254  ;;  %v3125_v61 = vadd.f32 %v3124_v42, %v3001_v15  ;;  %3642 = vst [vmem:[%s5546_s2 + $0xd0] sm:$0xff] %v3958_v1  ;;  %v3004_v37 = vmul.f32 %v2872_v30, %v2872_v30  ;;  %v2747_v33 = vadd.f32 1.0, %v4253_v14  ;;  %4258 = verf.f32 %v2493_v21 }
 0x2c0   : > { %v3199_v10 = vadd.f32 %v3198_v8, %v3003_v43  ;;  %3643 = vst [vmem:[%s5546_s2 + $0xd8] sm:$0xff] %v3959_v35  ;;  %v3006_v11 = vmul.f32 %v2874_v4, %v2874_v4  ;;  %v2873_v17 = vmul.f32 %v2745_v32, %v5892_v49  ;;  %v2748_v50 = vadd.f32 1.0, %v4255_v47 }
 0x2c1   : > { %v3089_v57 = vadd.f32 %v3088_v34, %v3004_v37  ;;  %v2875_v2 = vmul.f32 %v2747_v33, %v5894_v46  ;;  %v2366_v40 = vmul.f32 0.5, %v2220_v62  ;;  %v2495_v55 = vmul.f32 0.70710677, %v2222_v53 }
 0x2c2   : > { %v3163_v63 = vadd.f32 %v3162_v28, %v3006_v11  ;;  %v3005_v26 = vmul.f32 %v2873_v17, %v2873_v17  ;;  %v3960_v36 = vpack.c.bf16 %v2873_v17, %v2872_v30  ;;  %v2876_v52 = vmul.f32 %v2748_v50, %v5896_v0 }
 0x2c3   : > { %v3007_v29 = vmul.f32 %v2875_v2, %v2875_v2  ;;  %v3961_v42 = vpack.c.bf16 %v2875_v2, %v2874_v4  ;;  %4260 = verf.f32 %v2495_v55  ;;  %v2033_v13 = vadd.f32 %v5745_v25, %v5465_v54  ;;  %v6428_v55 = vld [vmem:[#allocation11_spill] sm:$0xff] }
 0x2c4   : > { %v3126_v3 = vadd.f32 %v3125_v61, %v3005_v26  ;;  %3644 = vst [vmem:[%s5546_s2 + $0xe0] sm:$0xff] %v3960_v36  ;;  %v3008_v49 = vmul.f32 %v2876_v52, %v2876_v52  ;;  %v2226_v46 = vadd.f32 %v5747_v60, %v5469_v44  ;;  %v2035_v62 = vadd.f32 %v5752_v12, %v5473_v41 }
 0x2c5   : > { %v4257_v23 = vpop.eup %4256  ;;  %v5928_v48 = vadd.f32 %v3199_v10, %v3007_v29  ;;  %3645 = vst [vmem:[%s5546_s2 + $0xe8] sm:$0xff] %v3961_v42  ;;  %v2365_v0 = vmul.f32 0.5, %v5903_v56  ;;  %v2496_v8 = vmul.f32 0.70710677, %v2033_v13  ;;  %v2228_v5 = vadd.f32 %v5754_v39, %v5477_v18 }
 0x2c6   : > { %v5934_v25 = vadd.f32 %v3089_v57, %v3008_v49  ;;  %v2750_v19 = vadd.f32 1.0, %v4257_v23  ;;  %v2367_v38 = vmul.f32 0.5, %v2222_v53  ;;  %v2498_v58 = vmul.f32 0.70710677, %v2226_v46 }
 0x2c7   : > { %v2368_v16 = vmul.f32 0.5, %v2033_v13  ;;  %4262 = verf.f32 %v2496_v8  ;;  %v2370_v60 = vmul.f32 0.5, %v2226_v46  ;;  %v2497_v24 = vmul.f32 0.70710677, %v2035_v62 }
 0x2c8   : > { %v2878_v12 = vmul.f32 %v2750_v19, %v2366_v40  ;;  %4264 = verf.f32 %v2498_v58  ;;  %v2499_v9 = vmul.f32 0.70710677, %v2228_v5  ;;  %v2037_v34 = vadd.f32 %v5757_v59, %v5465_v54 }
 0x2c9   : > { %v4259_v56 = vpop.eup %4258  ;;  %4266 = verf.f32 %v2497_v24  ;;  %v2230_v39 = vadd.f32 %v5759_v51, %v5469_v44  ;;  %v2039_v31 = vadd.f32 %v5761_v7, %v5473_v41  ;;  %v2232_v53 = vadd.f32 %v5763_v22, %v5477_v18 }
 0x2ca   : > { %v3010_v45 = vmul.f32 %v2878_v12, %v2878_v12  ;;  %v2749_v21 = vadd.f32 1.0, %v4259_v56  ;;  %v2369_v14 = vmul.f32 0.5, %v2035_v62  ;;  %4268 = verf.f32 %v2499_v9 }
 0x2cb   : > { %v2371_v28 = vmul.f32 0.5, %v2228_v5  ;;  %v5944_v15 = vmul.f32 0.5, %v2037_v34  ;;  %v2500_v1 = vmul.f32 0.70710677, %v2037_v34  ;;  %v2502_v59 = vmul.f32 0.70710677, %v2230_v39 }
 0x2cc   : > { %v5946_v30 = vadd.f32 %v3163_v63, %v3010_v45  ;;  %v2877_v43 = vmul.f32 %v2749_v21, %v2365_v0  ;;  %v5948_v35 = vmul.f32 0.5, %v2230_v39  ;;  %v2501_v51 = vmul.f32 0.70710677, %v2039_v31 }
 0x2cd   : > { %v4261_v7 = vpop.eup %4260  ;;  %4270 = verf.f32 %v2500_v1  ;;  %v2503_v4 = vmul.f32 0.70710677, %v2232_v53  ;;  %v2043_v22 = vadd.f32 %v5780_v20, %v5465_v54  ;;  %v2236_v32 = vadd.f32 %v5782_v6, %v5469_v44  ;;  %v6427_v6 = vld [vmem:[#allocation3_spill] sm:$0xff] }
 0x2ce   : > { %v3009_v47 = vmul.f32 %v2877_v43, %v2877_v43  ;;  %v3962_v61 = vpack.c.bf16 %v2877_v43, %v2876_v52  ;;  %v2751_v37 = vadd.f32 1.0, %v4261_v7  ;;  %4272 = verf.f32 %v2502_v59 }
 0x2cf   : > { %v5954_v33 = vmul.f32 0.5, %v2039_v31  ;;  %4274 = verf.f32 %v2501_v51  ;;  %v5956_v10 = vmul.f32 0.5, %v2232_v53  ;;  %v2504_v11 = vmul.f32 0.70710677, %v2043_v22 }
 0x2d0   : > { %v3127_v17 = vadd.f32 %v3126_v3, %v3009_v47  ;;  %3646 = vst [vmem:[%s5546_s2 + $0xf0] sm:$0xff] %v3962_v61  ;;  %v2879_v50 = vmul.f32 %v2751_v37, %v2367_v38  ;;  %4276 = verf.f32 %v2503_v4  ;;  %v2506_v57 = vmul.f32 0.70710677, %v2236_v32 }
 0x2d1   : > { %v4263_v2 = vpop.eup %4262  ;;  %4278 = verf.f32 %v2504_v11  ;;  %v2045_v20 = vadd.f32 %v5788_v27, %v5473_v41  ;;  %v2238_v40 = vadd.f32 %v6427_v6, %v5477_v18  ;;  %v2047_v63 = vadd.f32 %v6428_v55, %v5465_v54 }
 0x2d2   : > { %v4265_v26 = vpop.eup %4264  ;;  %v3011_v36 = vmul.f32 %v2879_v50, %v2879_v50  ;;  %v3963_v52 = vpack.c.bf16 %v2879_v50, %v2878_v12  ;;  %v2752_v29 = vadd.f32 1.0, %v4263_v2  ;;  %4280 = verf.f32 %v2506_v57 }
 0x2d3   : > { %v4267_v42 = vpop.eup %4266  ;;  %v2754_v13 = vadd.f32 1.0, %v4265_v26  ;;  %v5965_v3 = vmul.f32 0.5, %v2043_v22  ;;  %v5967_v49 = vmul.f32 0.5, %v2236_v32  ;;  %v2505_v46 = vmul.f32 0.70710677, %v2045_v20 }
 0x2d4   : > { %v4269_v62 = vpop.eup %4268  ;;  %v3201_v27 = vadd.f32 %v5928_v48, %v3011_v36  ;;  %3647 = vst [vmem:[%s5546_s2 + $0xf8] sm:$0xff] %v3963_v52  ;;  %v2880_v23 = vmul.f32 %v2752_v29, %v2368_v16  ;;  %v2753_v0 = vadd.f32 1.0, %v4267_v42  ;;  %v2507_v8 = vmul.f32 0.70710677, %v2238_v40  ;;  %v6429_v16 = vld [vmem:[#allocation12_spill] sm:$0xff] }
 0x2d5   : > { %v2882_v5 = vmul.f32 %v2754_v13, %v2370_v60  ;;  %v2755_v19 = vadd.f32 1.0, %v4269_v62  ;;  %v5971_v38 = vmul.f32 0.5, %v2045_v20  ;;  %4282 = verf.f32 %v2505_v46  ;;  %v5973_v9 = vpop.f32.mrb[40].mxu0  ;;  %v5975_v34 = vpop.f32.mrb[40].mxu1  ;;  %v6430_v13 = vld [vmem:[#allocation13_spill] sm:$0xff] }
 0x2d6   : > { %v3012_v58 = vmul.f32 %v2880_v23, %v2880_v23  ;;  %v2881_v24 = vmul.f32 %v2753_v0, %v2369_v14  ;;  %4284 = verf.f32 %v2507_v8  ;;  %v2508_v12 = vmul.f32 0.70710677, %v2047_v63  ;;  %v5983_v53 = vpop.f32.mrb[41].mxu0  ;;  %v5985_v45 = vpop.f32.mrb[41].mxu1 }
 0x2d7   : > { %v4271_v56 = vpop.eup %4270  ;;  %v3014_v39 = vmul.f32 %v2882_v5, %v2882_v5  ;;  %v2883_v48 = vmul.f32 %v2755_v19, %v2371_v28  ;;  %v5977_v31 = vmul.f32 0.5, %v2238_v40  ;;  %v5981_v60 = vadd.f32 %v6429_v16, %v5469_v44  ;;  %v5988_v51 = vpop.f32.mrb[42].mxu0 }
 0x2d8   : > { %v4273_v21 = vpop.eup %4272  ;;  %v3091_v14 = vadd.f32 %v5934_v25, %v3012_v58  ;;  %v3013_v1 = vmul.f32 %v2881_v24, %v2881_v24  ;;  %v3964_v59 = vpack.c.bf16 %v2881_v24, %v2880_v23  ;;  %v2756_v43 = vadd.f32 1.0, %v4271_v56  ;;  %v5990_v28 = vpop.f32.mrb[42].mxu1 }
 0x2d9   : > { %v4275_v7 = vpop.eup %4274  ;;  %v3165_v4 = vadd.f32 %v5946_v30, %v3014_v39  ;;  %v3015_v22 = vmul.f32 %v2883_v48, %v2883_v48  ;;  %v3965_v32 = vpack.c.bf16 %v2883_v48, %v2882_v5  ;;  %v2758_v47 = vadd.f32 1.0, %v4273_v21  ;;  %v5993_v61 = vpop.f32.mrb[43].mxu0 }
 0x2da   : > { %v5995_v37 = vpop.f32.mrb[43].mxu1  ;;  %v4277_v11 = vpop.eup %4276  ;;  %v3128_v25 = vadd.f32 %v3127_v17, %v3013_v1  ;;  %3648 = vst [vmem:[%s5546_s2 + $0x100] sm:$0xff] %v3964_v59  ;;  %v2884_v50 = vmul.f32 %v2756_v43, %v5944_v15  ;;  %v2757_v57 = vadd.f32 1.0, %v4275_v7  ;;  %4286 = verf.f32 %v2508_v12 }
 0x2db   : > { %v4279_v2 = vpop.eup %4278  ;;  %v3202_v20 = vadd.f32 %v3201_v27, %v3015_v22  ;;  %3649 = vst [vmem:[%s5546_s2 + $0x108] sm:$0xff] %v3965_v32  ;;  %v2886_v6 = vmul.f32 %v2758_v47, %v5948_v35  ;;  %v2759_v30 = vadd.f32 1.0, %v4277_v11  ;;  %v6001_v40 = vmul.f32 0.5, %v2047_v63  ;;  %v6431_v22 = vld [vmem:[#allocation14_spill] sm:$0xff] }
 0x2dc   : > { %v4281_v55 = vpop.eup %4280  ;;  %v3016_v26 = vmul.f32 %v2884_v50, %v2884_v50  ;;  %v2885_v36 = vmul.f32 %v2757_v57, %v5954_v33  ;;  %v2760_v52 = vadd.f32 1.0, %v4279_v2  ;;  %v2510_v17 = vmul.f32 0.70710677, %v5981_v60 }
 0x2dd   : > { %v3018_v29 = vmul.f32 %v2886_v6, %v2886_v6  ;;  %v2887_v15 = vmul.f32 %v2759_v30, %v5956_v10  ;;  %v2762_v42 = vadd.f32 1.0, %v4281_v55  ;;  %v2049_v46 = vadd.f32 %v6430_v13, %v5473_v41  ;;  %v6009_v23 = vpop.f32.mrb[44].mxu0  ;;  %v6011_v0 = vpop.f32.mrb[44].mxu1 }
 0x2de   : > { %v3092_v62 = vadd.f32 %v3091_v14, %v3016_v26  ;;  %v3017_v35 = vmul.f32 %v2885_v36, %v2885_v36  ;;  %v3966_v27 = vpack.c.bf16 %v2885_v36, %v2884_v50  ;;  %v2888_v63 = vmul.f32 %v2760_v52, %v5965_v3  ;;  %v6014_v58 = vpop.f32.mrb[45].mxu0  ;;  %v6016_v24 = vpop.f32.mrb[45].mxu1 }
 0x2df   : > { %v4283_v33 = vpop.eup %4282  ;;  %v3166_v8 = vadd.f32 %v3165_v4, %v3018_v29  ;;  %v3019_v5 = vmul.f32 %v2887_v15, %v2887_v15  ;;  %v3967_v19 = vpack.c.bf16 %v2887_v15, %v2886_v6  ;;  %v2890_v10 = vmul.f32 %v2762_v42, %v5967_v49  ;;  %v6019_v48 = vpop.f32.mrb[46].mxu0 }
 0x2e0   : > { %v4285_v12 = vpop.eup %4284  ;;  %v3129_v56 = vadd.f32 %v3128_v25, %v3017_v35  ;;  %3650 = vst [vmem:[%s5546_s2 + $0x110] sm:$0xff] %v3966_v27  ;;  %v3020_v39 = vmul.f32 %v2888_v63, %v2888_v63  ;;  %v2761_v3 = vadd.f32 1.0, %v4283_v33  ;;  %4288 = verf.f32 %v2510_v17  ;;  %v6021_v16 = vpop.f32.mrb[46].mxu1 }
 0x2e1   : > { %v3203_v21 = vadd.f32 %v3202_v20, %v3019_v5  ;;  %3651 = vst [vmem:[%s5546_s2 + $0x118] sm:$0xff] %v3967_v19  ;;  %v3022_v14 = vmul.f32 %v2890_v10, %v2890_v10  ;;  %v2763_v1 = vadd.f32 1.0, %v4285_v12  ;;  %v2509_v59 = vmul.f32 0.70710677, %v2049_v46  ;;  %v6024_v49 = vpop.f32.mrb[47].mxu0  ;;  %v6026_v43 = vpop.f32.mrb[47].mxu1 }
 0x2e2   : > { %v3093_v7 = vadd.f32 %v3092_v62, %v3020_v39  ;;  %v2889_v4 = vmul.f32 %v2761_v3, %v5971_v38  ;;  %v2242_v32 = vadd.f32 %v6431_v22, %v5477_v18  ;;  %v2053_v47 = vadd.f32 %v5973_v9, %v5465_v54 }
 0x2e3   : > { %v6033_v11 = vadd.f32 %v3166_v8, %v3022_v14  ;;  %v2891_v25 = vmul.f32 %v2763_v1, %v5977_v31  ;;  %4290 = verf.f32 %v2509_v59  ;;  %v2246_v50 = vadd.f32 %v5975_v34, %v5469_v44 }
 0x2e4   : > { %v4287_v57 = vpop.eup %4286  ;;  %v3021_v2 = vmul.f32 %v2889_v4, %v2889_v4  ;;  %v3968_v20 = vpack.c.bf16 %v2889_v4, %v2888_v63  ;;  %v2382_v38 = vmul.f32 0.5, %v5981_v60  ;;  %v2511_v6 = vmul.f32 0.70710677, %v2242_v32 }
 0x2e5   : > { %v3023_v30 = vmul.f32 %v2891_v25, %v2891_v25  ;;  %v3969_v55 = vpack.c.bf16 %v2891_v25, %v2890_v10  ;;  %v2764_v26 = vadd.f32 1.0, %v4287_v57  ;;  %v2381_v36 = vmul.f32 0.5, %v2049_v46  ;;  %v6044_v17 = vpop.f32.mrb[48].mxu0  ;;  %v6046_v34 = vpop.f32.mrb[48].mxu1 }
 0x2e6   : > { %v6039_v9 = vadd.f32 %v3129_v56, %v3021_v2  ;;  %3652 = vst [vmem:[%s5546_s2 + $0x120] sm:$0xff] %v3968_v20  ;;  %v6042_v52 = vmul.f32 0.5, %v2242_v32  ;;  %4292 = verf.f32 %v2511_v6  ;;  %v2512_v31 = vmul.f32 0.70710677, %v2053_v47  ;;  %v6056_v13 = vpop.f32.mrb[49].mxu0  ;;  %v6058_v46 = vpop.f32.mrb[49].mxu1 }
 0x2e7   : > { %v6048_v29 = vadd.f32 %v3203_v21, %v3023_v30  ;;  %3653 = vst [vmem:[%s5546_s2 + $0x128] sm:$0xff] %v3969_v55  ;;  %v6052_v60 = vmul.f32 %v2764_v26, %v6001_v40  ;;  %v2514_v15 = vmul.f32 0.70710677, %v2246_v50  ;;  %v2055_v42 = vadd.f32 %v5983_v53, %v5473_v41  ;;  %v6066_v40 = vpop.f32.mrb[50].mxu0  ;;  %v6068_v63 = vpop.f32.mrb[50].mxu1 }
 0x2e8   : > { %4294 = verf.f32 %v2512_v31  ;;  %v2248_v62 = vadd.f32 %v5985_v45, %v5477_v18  ;;  %v2057_v35 = vadd.f32 %v5988_v51, %v5465_v54  ;;  %v2250_v27 = vadd.f32 %v5990_v28, %v5469_v44  ;;  %v6074_v5 = vpop.f32.mrb[51].mxu0  ;;  %v6076_v45 = vpop.f32.mrb[51].mxu1 }
 0x2e9   : > { %v3024_v53 = vmul.f32 %v6052_v60, %v6052_v60  ;;  %v6072_v33 = vmul.f32 0.5, %v2053_v47  ;;  %4296 = verf.f32 %v2514_v15  ;;  %v2513_v8 = vmul.f32 0.70710677, %v2055_v42 }
 0x2ea   : > { %v4289_v19 = vpop.eup %4288  ;;  %v6078_v51 = vmul.f32 0.5, %v2246_v50  ;;  %v6080_v10 = vmul.f32 0.5, %v2055_v42  ;;  %v2515_v28 = vmul.f32 0.70710677, %v2248_v62  ;;  %v2516_v12 = vmul.f32 0.70710677, %v2057_v35 }
 0x2eb   : > { %v6082_v56 = vadd.f32 %v3093_v7, %v3024_v53  ;;  %v2766_v39 = vadd.f32 1.0, %v4289_v19  ;;  %4298 = verf.f32 %v2513_v8  ;;  %v6084_v3 = vmul.f32 0.5, %v2248_v62 }
 0x2ec   : > { %4300 = verf.f32 %v2515_v28  ;;  %v2518_v21 = vmul.f32 0.70710677, %v2250_v27  ;;  %v2059_v14 = vadd.f32 %v5993_v61, %v5473_v41  ;;  %v2252_v1 = vadd.f32 %v5995_v37, %v5477_v18 }
 0x2ed   : > { %v4291_v59 = vpop.eup %4290  ;;  %v2894_v4 = vmul.f32 %v2766_v39, %v2382_v38  ;;  %4302 = verf.f32 %v2516_v12  ;;  %v2063_v22 = vadd.f32 %v6009_v23, %v5465_v54  ;;  %v2256_v7 = vadd.f32 %v6011_v0, %v5469_v44  ;;  %v6096_v50 = vpop.f32.mrb[52].mxu0 }
 0x2ee   : > { %v2765_v32 = vadd.f32 1.0, %v4291_v59  ;;  %v6094_v47 = vmul.f32 0.5, %v2057_v35  ;;  %4304 = verf.f32 %v2518_v21  ;;  %v2517_v25 = vmul.f32 0.70710677, %v2059_v14  ;;  %v6098_v61 = vpop.f32.mrb[52].mxu1  ;;  %v6104_v38 = vpop.f32.mrb[53].mxu0 }
 0x2ef   : > { %v3026_v57 = vmul.f32 %v2894_v4, %v2894_v4  ;;  %v6100_v37 = vmul.f32 0.5, %v2250_v27  ;;  %v6102_v2 = vmul.f32 0.5, %v2059_v14  ;;  %v2519_v20 = vmul.f32 0.70710677, %v2252_v1  ;;  %v6106_v23 = vpop.f32.mrb[53].mxu1  ;;  %v6110_v26 = vpop.f32.mrb[54].mxu0 }
 0x2f0   : > { %v4293_v0 = vpop.eup %4292  ;;  %v2893_v6 = vmul.f32 %v2765_v32, %v2381_v36  ;;  %4306 = verf.f32 %v2517_v25  ;;  %v6108_v30 = vmul.f32 0.5, %v2252_v1  ;;  %v2520_v55 = vmul.f32 0.70710677, %v2063_v22  ;;  %v6112_v31 = vpop.f32.mrb[54].mxu1 }
 0x2f1   : > { %v3168_v15 = vadd.f32 %v6033_v11, %v3026_v57  ;;  %v2767_v42 = vadd.f32 1.0, %v4293_v0  ;;  %4308 = verf.f32 %v2519_v20  ;;  %v2522_v62 = vmul.f32 0.70710677, %v2256_v7  ;;  %v6115_v35 = vpop.f32.mrb[55].mxu0  ;;  %v6117_v27 = vpop.f32.mrb[55].mxu1 }
 0x2f2   : > { %v4295_v53 = vpop.eup %4294  ;;  %v3025_v36 = vmul.f32 %v2893_v6, %v2893_v6  ;;  %v3970_v8 = vpack.c.bf16 %v2893_v6, %v6052_v60  ;;  %4310 = verf.f32 %v2520_v55  ;;  %v2065_v19 = vadd.f32 %v6014_v58, %v5473_v41 }
 0x2f3   : > { %v4297_v28 = vpop.eup %4296  ;;  %v2895_v12 = vmul.f32 %v2767_v42, %v6042_v52  ;;  %v2768_v11 = vadd.f32 1.0, %v4295_v53  ;;  %4312 = verf.f32 %v2522_v62  ;;  %v6125_v39 = vadd.f32 %v6016_v24, %v5477_v18 }
 0x2f4   : > { %v3131_v21 = vadd.f32 %v6039_v9, %v3025_v36  ;;  %3654 = vst [vmem:[%s5546_s2 + $0x130] sm:$0xff] %v3970_v8  ;;  %v2770_v14 = vadd.f32 1.0, %v4297_v28  ;;  %v6129_v1 = vmul.f32 0.5, %v2063_v22  ;;  %v2521_v60 = vmul.f32 0.70710677, %v2065_v19 }
 0x2f5   : > { %v4299_v59 = vpop.eup %4298  ;;  %v3027_v32 = vmul.f32 %v2895_v12, %v2895_v12  ;;  %v3971_v58 = vpack.c.bf16 %v2895_v12, %v2894_v4  ;;  %v2896_v25 = vmul.f32 %v2768_v11, %v6072_v33  ;;  %v6132_v52 = vmul.f32 0.5, %v2256_v7  ;;  %v6136_v0 = vpop.f32.mrb[56].mxu0 }
 0x2f6   : > { %v4301_v57 = vpop.eup %4300  ;;  %v2898_v20 = vmul.f32 %v2770_v14, %v6078_v51  ;;  %v2769_v24 = vadd.f32 1.0, %v4299_v59  ;;  %4314 = verf.f32 %v2521_v60  ;;  %v2523_v9 = vmul.f32 0.70710677, %v6125_v39  ;;  %v6138_v22 = vpop.f32.mrb[56].mxu1 }
 0x2f7   : > { %v4303_v6 = vpop.eup %4302  ;;  %v3205_v55 = vadd.f32 %v6048_v29, %v3027_v32  ;;  %3655 = vst [vmem:[%s5546_s2 + $0x138] sm:$0xff] %v3971_v58  ;;  %v3028_v4 = vmul.f32 %v2896_v25, %v2896_v25  ;;  %v2771_v42 = vadd.f32 1.0, %v4301_v57  ;;  %v6144_v33 = vadd.f32 %v6019_v48, %v5465_v54  ;;  %v6146_v7 = vpop.f32.mrb[57].mxu0 }
 0x2f8   : > { %v6148_v51 = vpop.f32.mrb[57].mxu1  ;;  %v4305_v62 = vpop.eup %4304  ;;  %v3030_v53 = vmul.f32 %v2898_v20, %v2898_v20  ;;  %v2897_v36 = vmul.f32 %v2769_v24, %v6080_v10  ;;  %v2772_v8 = vadd.f32 1.0, %v4303_v6  ;;  %4316 = verf.f32 %v2523_v9 }
 0x2f9   : > { %v6151_v28 = vpop.f32.mrb[58].mxu0  ;;  %v6153_v29 = vpop.f32.mrb[58].mxu1  ;;  %v3095_v12 = vadd.f32 %v6082_v56, %v3028_v4  ;;  %v2899_v11 = vmul.f32 %v2771_v42, %v6084_v3  ;;  %v2774_v48 = vadd.f32 1.0, %v4305_v62  ;;  %v2393_v14 = vmul.f32 0.5, %v2065_v19 }
 0x2fa   : > { %6432 = vst [vmem:[#allocation4_spill] sm:$0xff] %v6153_v29  ;;  %v6157_v60 = vpop.f32.mrb[59].mxu0  ;;  %v6159_v59 = vpop.f32.mrb[59].mxu1  ;;  %v3169_v58 = vadd.f32 %v3168_v15, %v3030_v53  ;;  %v3029_v10 = vmul.f32 %v2897_v36, %v2897_v36  ;;  %v3972_v57 = vpack.c.bf16 %v2897_v36, %v2896_v25  ;;  %v2900_v24 = vmul.f32 %v2772_v8, %v6094_v47 }
 0x2fb   : > { %6433 = vst [vmem:[#allocation5_spill] sm:$0xff] %v6157_v60  ;;  %6434 = vst [vmem:[#allocation6_spill] sm:$0xff] %v6159_v59  ;;  %v4307_v32 = vpop.eup %4306  ;;  %v3031_v6 = vmul.f32 %v2899_v11, %v2899_v11  ;;  %v3973_v29 = vpack.c.bf16 %v2899_v11, %v2898_v20  ;;  %v2902_v56 = vmul.f32 %v2774_v48, %v6100_v37  ;;  %v2524_v59 = vmul.f32 0.70710677, %v6144_v33 }
 0x2fc   : > { %v4309_v9 = vpop.eup %4308  ;;  %v2773_v3 = vadd.f32 1.0, %v4307_v32  ;;  %v3132_v42 = vadd.f32 %v3131_v21, %v3029_v10  ;;  %3656 = vst [vmem:[%s5546_s2 + $0x140] sm:$0xff] %v3972_v57  ;;  %v3032_v19 = vmul.f32 %v2900_v24, %v2900_v24 }
 0x2fd   : > { %v4311_v4 = vpop.eup %4310  ;;  %v2775_v62 = vadd.f32 1.0, %v4309_v9  ;;  %v3206_v15 = vadd.f32 %v3205_v55, %v3031_v6  ;;  %3657 = vst [vmem:[%s5546_s2 + $0x148] sm:$0xff] %v3973_v29  ;;  %v3034_v53 = vmul.f32 %v2902_v56, %v2902_v56  ;;  %4318 = verf.f32 %v2524_v59  ;;  %v6168_v37 = vpop.f32.mrb[60].mxu0 }
 0x2fe   : > { %v4313_v60 = vpop.eup %4312  ;;  %v2901_v25 = vmul.f32 %v2773_v3, %v6102_v2  ;;  %v2776_v47 = vadd.f32 1.0, %v4311_v4  ;;  %v3096_v36 = vadd.f32 %v3095_v12, %v3032_v19  ;;  %v6170_v21 = vpop.f32.mrb[60].mxu1  ;;  %v2260_v59 = vadd.f32 %v6021_v16, %v5469_v44 }
 0x2ff   : > { %v2903_v20 = vmul.f32 %v2775_v62, %v6108_v30  ;;  %v2778_v8 = vadd.f32 1.0, %v4313_v60  ;;  %v3170_v11 = vadd.f32 %v3169_v58, %v3034_v53  ;;  %v6173_v29 = vpop.f32.mrb[61].mxu0  ;;  %v6175_v10 = vpop.f32.mrb[61].mxu1  ;;  %v2069_v6 = vadd.f32 %v6024_v49, %v5473_v41 }
 0x300   : > { %v3033_v48 = vmul.f32 %v2901_v25, %v2901_v25  ;;  %v3974_v32 = vpack.c.bf16 %v2901_v25, %v2900_v24  ;;  %v2904_v55 = vmul.f32 %v2776_v47, %v6129_v1  ;;  %v4315_v2 = vpop.eup %4314  ;;  %v6180_v57 = vpop.f32.mrb[62].mxu0  ;;  %v2526_v16 = vmul.f32 0.70710677, %v2260_v59 }
 0x301   : > { %v3035_v12 = vmul.f32 %v2903_v20, %v2903_v20  ;;  %v3975_v30 = vpack.c.bf16 %v2903_v20, %v2902_v56  ;;  %v2906_v60 = vmul.f32 %v2778_v8, %v6132_v52  ;;  %v6182_v58 = vpop.f32.mrb[62].mxu1  ;;  %v2777_v9 = vadd.f32 1.0, %v4315_v2  ;;  %v6187_v3 = vpop.f32.mrb[63].mxu0 }
 0x302   : > { %v3133_v24 = vadd.f32 %v3132_v42, %v3033_v48  ;;  %3658 = vst [vmem:[%s5546_s2 + $0x150] sm:$0xff] %v3974_v32  ;;  %v3036_v1 = vmul.f32 %v2904_v55, %v2904_v55  ;;  %v6189_v4 = vpop.f32.mrb[63].mxu1  ;;  %v4317_v56 = vpop.eup %4316  ;;  %v2395_v42 = vmul.f32 0.5, %v6125_v39  ;;  %4320 = verf.f32 %v2526_v16 }
 0x303   : > { %v3207_v52 = vadd.f32 %v3206_v15, %v3035_v12  ;;  %3659 = vst [vmem:[%s5546_s2 + $0x158] sm:$0xff] %v3975_v30  ;;  %v3038_v19 = vmul.f32 %v2906_v60, %v2906_v60  ;;  %v2905_v53 = vmul.f32 %v2777_v9, %v2393_v14  ;;  %v2779_v25 = vadd.f32 1.0, %v4317_v56 }
 0x304   : > { %v3097_v62 = vadd.f32 %v3096_v36, %v3036_v1  ;;  %v2525_v20 = vmul.f32 0.70710677, %v2069_v6  ;;  %v2262_v49 = vadd.f32 %v6026_v43, %v5477_v18  ;;  %v2073_v15 = vadd.f32 %v6044_v17, %v5465_v54 }
 0x305   : > { %v6193_v47 = vadd.f32 %v3170_v11, %v3038_v19  ;;  %v3037_v8 = vmul.f32 %v2905_v53, %v2905_v53  ;;  %v3976_v48 = vpack.c.bf16 %v2905_v53, %v2904_v55  ;;  %v2907_v32 = vmul.f32 %v2779_v25, %v2395_v42 }
 0x306   : > { %v2396_v14 = vmul.f32 0.5, %v6144_v33  ;;  %4322 = verf.f32 %v2525_v20  ;;  %v2527_v36 = vmul.f32 0.70710677, %v2262_v49  ;;  %v2266_v39 = vadd.f32 %v6046_v34, %v5469_v44 }
 0x307   : > { %v6202_v11 = vadd.f32 %v3133_v24, %v3037_v8  ;;  %3660 = vst [vmem:[%s5546_s2 + $0x160] sm:$0xff] %v3976_v48  ;;  %v3039_v2 = vmul.f32 %v2907_v32, %v2907_v32  ;;  %v3977_v12 = vpack.c.bf16 %v2907_v32, %v2906_v60  ;;  %v2398_v43 = vmul.f32 0.5, %v2260_v59  ;;  %v4319_v30 = vpop.eup %4318 }
 0x308   : > { %v2397_v55 = vmul.f32 0.5, %v2069_v6  ;;  %4324 = verf.f32 %v2527_v36  ;;  %v2528_v1 = vmul.f32 0.70710677, %v2073_v15  ;;  %v2530_v9 = vmul.f32 0.70710677, %v2266_v39 }
 0x309   : > { %v6205_v17 = vadd.f32 %v3207_v52, %v3039_v2  ;;  %3661 = vst [vmem:[%s5546_s2 + $0x168] sm:$0xff] %v3977_v12  ;;  %v2780_v33 = vadd.f32 1.0, %v4319_v30  ;;  %v2075_v56 = vadd.f32 %v6056_v13, %v5473_v41  ;;  %v2268_v34 = vadd.f32 %v6058_v46, %v5477_v18 }
 0x30a   : > { %4326 = verf.f32 %v2528_v1  ;;  %v2077_v60 = vadd.f32 %v6066_v40, %v5465_v54  ;;  %v2270_v59 = vadd.f32 %v6068_v63, %v5469_v44  ;;  %v2079_v24 = vadd.f32 %v6074_v5, %v5473_v41 }
 0x30b   : > { %v2908_v6 = vmul.f32 %v2780_v33, %v2396_v14  ;;  %v2399_v52 = vmul.f32 0.5, %v2262_v49  ;;  %4328 = verf.f32 %v2530_v9  ;;  %v2529_v19 = vmul.f32 0.70710677, %v2075_v56 }
 0x30c   : > { %v2400_v16 = vmul.f32 0.5, %v2073_v15  ;;  %v2402_v53 = vmul.f32 0.5, %v2266_v39  ;;  %v2531_v13 = vmul.f32 0.70710677, %v2268_v34  ;;  %v2532_v42 = vmul.f32 0.70710677, %v2077_v60  ;;  %v4321_v40 = vpop.eup %4320 }
 0x30d   : > { %v3040_v25 = vmul.f32 %v2908_v6, %v2908_v6  ;;  %v6218_v46 = vmul.f32 0.5, %v2075_v56  ;;  %4330 = verf.f32 %v2529_v19  ;;  %v2534_v20 = vmul.f32 0.70710677, %v2270_v59 }
 0x30e   : > { %v6220_v8 = vmul.f32 0.5, %v2268_v34  ;;  %4332 = verf.f32 %v2531_v13  ;;  %v2533_v63 = vmul.f32 0.70710677, %v2079_v24  ;;  %v2272_v5 = vadd.f32 %v6076_v45, %v5477_v18 }
 0x30f   : > { %v6224_v49 = vadd.f32 %v3097_v62, %v3040_v25  ;;  %v2782_v48 = vadd.f32 1.0, %v4321_v40  ;;  %4334 = verf.f32 %v2532_v42  ;;  %v2083_v32 = vadd.f32 %v6096_v50, %v5465_v54 }
 0x310   : > { %v4323_v15 = vpop.eup %4322  ;;  %v6228_v14 = vmul.f32 0.5, %v2077_v60  ;;  %4336 = verf.f32 %v2534_v20  ;;  %v2535_v36 = vmul.f32 0.70710677, %v2272_v5  ;;  %v2276_v39 = vadd.f32 %v6098_v61, %v5469_v44 }
 0x311   : > { %v2910_v2 = vmul.f32 %v2782_v48, %v2398_v43  ;;  %v2781_v12 = vadd.f32 1.0, %v4323_v15  ;;  %v2406_v30 = vmul.f32 0.5, %v2270_v59  ;;  %4338 = verf.f32 %v2533_v63 }
 0x312   : > { %v4325_v45 = vpop.eup %4324  ;;  %v6232_v62 = vmul.f32 0.5, %v2079_v24  ;;  %4340 = verf.f32 %v2535_v36  ;;  %v2536_v1 = vmul.f32 0.70710677, %v2083_v32  ;;  %v2538_v9 = vmul.f32 0.70710677, %v2276_v39 }
 0x313   : > { %v3042_v33 = vmul.f32 %v2910_v2, %v2910_v2  ;;  %v2909_v50 = vmul.f32 %v2781_v12, %v2397_v55  ;;  %v2783_v56 = vadd.f32 1.0, %v4325_v45  ;;  %v6236_v34 = vadd.f32 %v6104_v38, %v5473_v41 }
 0x314   : > { %v4327_v60 = vpop.eup %4326  ;;  %v2407_v61 = vmul.f32 0.5, %v2272_v5  ;;  %v6238_v43 = vmul.f32 0.5, %v2083_v32  ;;  %4342 = verf.f32 %v2536_v1  ;;  %v6242_v59 = vadd.f32 %v6106_v23, %v5477_v18 }
 0x315   : > { %v4329_v24 = vpop.eup %4328  ;;  %v3172_v19 = vadd.f32 %v6193_v47, %v3042_v33  ;;  %v3041_v13 = vmul.f32 %v2909_v50, %v2909_v50  ;;  %v3978_v55 = vpack.c.bf16 %v2909_v50, %v2908_v6  ;;  %v2911_v42 = vmul.f32 %v2783_v56, %v2399_v52 }
 0x316   : > { %v2784_v25 = vadd.f32 1.0, %v4327_v60  ;;  %v2786_v20 = vadd.f32 1.0, %v4329_v24  ;;  %v6245_v38 = vmul.f32 0.5, %v2276_v39  ;;  %4344 = verf.f32 %v2538_v9 }
 0x317   : > { %v4331_v40 = vpop.eup %4330  ;;  %v3135_v63 = vadd.f32 %v6202_v11, %v3041_v13  ;;  %3662 = vst [vmem:[%s5546_s2 + $0x170] sm:$0xff] %v3978_v55  ;;  %v3043_v5 = vmul.f32 %v2911_v42, %v2911_v42  ;;  %v3979_v48 = vpack.c.bf16 %v2911_v42, %v2910_v2  ;;  %v2537_v23 = vmul.f32 0.70710677, %v6236_v34 }
 0x318   : > { %v4333_v32 = vpop.eup %4332  ;;  %v2912_v15 = vmul.f32 %v2784_v25, %v2400_v16  ;;  %v2914_v47 = vmul.f32 %v2786_v20, %v2402_v53  ;;  %v2785_v36 = vadd.f32 1.0, %v4331_v40  ;;  %v6252_v6 = vadd.f32 %v6110_v26, %v5465_v54 }
 0x319   : > { %v4335_v52 = vpop.eup %4334  ;;  %v3209_v39 = vadd.f32 %v6205_v17, %v3043_v5  ;;  %3663 = vst [vmem:[%s5546_s2 + $0x178] sm:$0xff] %v3979_v48  ;;  %v2787_v12 = vadd.f32 1.0, %v4333_v32  ;;  %4346 = verf.f32 %v2537_v23  ;;  %v2539_v11 = vmul.f32 0.70710677, %v6242_v59 }
 0x31a   : > { %v4337_v45 = vpop.eup %4336  ;;  %v3044_v2 = vmul.f32 %v2912_v15, %v2912_v15  ;;  %v3046_v1 = vmul.f32 %v2914_v47, %v2914_v47  ;;  %v2913_v9 = vmul.f32 %v2785_v36, %v6218_v46  ;;  %v2788_v16 = vadd.f32 1.0, %v4335_v52 }
 0x31b   : > { %v4339_v53 = vpop.eup %4338  ;;  %v2915_v33 = vmul.f32 %v2787_v12, %v6220_v8  ;;  %v2790_v26 = vadd.f32 1.0, %v4337_v45  ;;  %4348 = verf.f32 %v2539_v11  ;;  %v2280_v17 = vadd.f32 %v6112_v31, %v5469_v44 }
 0x31c   : > { %v4341_v50 = vpop.eup %4340  ;;  %v3099_v56 = vadd.f32 %v6224_v49, %v3044_v2  ;;  %v3173_v60 = vadd.f32 %v3172_v19, %v3046_v1  ;;  %v3045_v24 = vmul.f32 %v2913_v9, %v2913_v9  ;;  %v3980_v13 = vpack.c.bf16 %v2913_v9, %v2912_v15 }
 0x31d   : > { %v3047_v55 = vmul.f32 %v2915_v33, %v2915_v33  ;;  %v3981_v42 = vpack.c.bf16 %v2915_v33, %v2914_v47  ;;  %v2916_v46 = vmul.f32 %v2788_v16, %v6228_v14  ;;  %v2918_v25 = vmul.f32 %v2790_v26, %v2406_v30 }
 0x31e   : > { %v4343_v20 = vpop.eup %4342  ;;  %v3136_v40 = vadd.f32 %v3135_v63, %v3045_v24  ;;  %3664 = vst [vmem:[%s5546_s2 + $0x180] sm:$0xff] %v3980_v13  ;;  %v2789_v8 = vadd.f32 1.0, %v4339_v53  ;;  %v2791_v5 = vadd.f32 1.0, %v4341_v50  ;;  %v2540_v48 = vmul.f32 0.70710677, %v6252_v6 }
 0x31f   : > { %v3210_v31 = vadd.f32 %v3209_v39, %v3047_v55  ;;  %3665 = vst [vmem:[%s5546_s2 + $0x188] sm:$0xff] %v3981_v42  ;;  %v3048_v23 = vmul.f32 %v2916_v46, %v2916_v46  ;;  %v3050_v32 = vmul.f32 %v2918_v25, %v2918_v25  ;;  %v2792_v49 = vadd.f32 1.0, %v4343_v20 }
 0x320   : > { %v4345_v19 = vpop.eup %4344  ;;  %v2917_v15 = vmul.f32 %v2789_v8, %v6232_v62  ;;  %v2919_v36 = vmul.f32 %v2791_v5, %v2407_v61  ;;  %v2409_v47 = vmul.f32 0.5, %v6236_v34  ;;  %4350 = verf.f32 %v2540_v48 }
 0x321   : > { %v3100_v14 = vadd.f32 %v3099_v56, %v3048_v23  ;;  %v3174_v30 = vadd.f32 %v3173_v60, %v3050_v32  ;;  %v2920_v63 = vmul.f32 %v2792_v49, %v6238_v43  ;;  %v2794_v52 = vadd.f32 1.0, %v4345_v19  ;;  %v6435_v19 = vld [vmem:[#allocation4_spill] sm:$0xff] }
 0x322   : > { %v3049_v12 = vmul.f32 %v2917_v15, %v2917_v15  ;;  %v3982_v39 = vpack.c.bf16 %v2917_v15, %v2916_v46  ;;  %v3051_v11 = vmul.f32 %v2919_v36, %v2919_v36  ;;  %v3983_v45 = vpack.c.bf16 %v2919_v36, %v2918_v25 }
 0x323   : > { %v4347_v2 = vpop.eup %4346  ;;  %v3052_v1 = vmul.f32 %v2920_v63, %v2920_v63  ;;  %v2922_v9 = vmul.f32 %v2794_v52, %v6245_v38  ;;  %v2542_v62 = vmul.f32 0.70710677, %v2280_v17  ;;  %v2089_v34 = vadd.f32 %v6115_v35, %v5473_v41 }
 0x324   : > { %v3137_v61 = vadd.f32 %v3136_v40, %v3049_v12  ;;  %3666 = vst [vmem:[%s5546_s2 + $0x190] sm:$0xff] %v3982_v39  ;;  %v3211_v16 = vadd.f32 %v3210_v31, %v3051_v11  ;;  %3667 = vst [vmem:[%s5546_s2 + $0x198] sm:$0xff] %v3983_v45  ;;  %v2793_v53 = vadd.f32 1.0, %v4347_v2  ;;  %v2282_v43 = vadd.f32 %v6117_v27, %v5477_v18  ;;  %v6436_v45 = vld [vmem:[#allocation5_spill] sm:$0xff] }
 0x325   : > { %v4349_v33 = vpop.eup %4348  ;;  %v3101_v26 = vadd.f32 %v3100_v14, %v3052_v1  ;;  %v3054_v50 = vmul.f32 %v2922_v9, %v2922_v9  ;;  %v2411_v56 = vmul.f32 0.5, %v6242_v59  ;;  %4352 = verf.f32 %v2542_v62  ;;  %v6437_v1 = vld [vmem:[#allocation6_spill] sm:$0xff] }
 0x326   : > { %v2921_v60 = vmul.f32 %v2793_v53, %v2409_v47  ;;  %v2795_v38 = vadd.f32 1.0, %v4349_v33  ;;  %v2412_v24 = vmul.f32 0.5, %v6252_v6  ;;  %v2541_v35 = vmul.f32 0.70710677, %v2089_v34 }
 0x327   : > { %v6278_v13 = vadd.f32 %v3174_v30, %v3054_v50  ;;  %v2543_v55 = vmul.f32 0.70710677, %v2282_v43  ;;  %v2093_v42 = vadd.f32 %v6136_v0, %v5465_v54  ;;  %v2286_v27 = vadd.f32 %v6138_v22, %v5469_v44 }
 0x328   : > { %v3053_v46 = vmul.f32 %v2921_v60, %v2921_v60  ;;  %v3984_v25 = vpack.c.bf16 %v2921_v60, %v2920_v63  ;;  %v2923_v20 = vmul.f32 %v2795_v38, %v2411_v56  ;;  %4354 = verf.f32 %v2541_v35 }
 0x329   : > { %v2414_v59 = vmul.f32 0.5, %v2280_v17  ;;  %v2413_v40 = vmul.f32 0.5, %v2089_v34  ;;  %4356 = verf.f32 %v2543_v55  ;;  %v2544_v6 = vmul.f32 0.70710677, %v2093_v42 }
 0x32a   : > { %v4351_v8 = vpop.eup %4350  ;;  %v6284_v5 = vadd.f32 %v3137_v61, %v3053_v46  ;;  %3668 = vst [vmem:[%s5546_s2 + $0x1a0] sm:$0xff] %v3984_v25  ;;  %v3055_v48 = vmul.f32 %v2923_v20, %v2923_v20  ;;  %v3985_v31 = vpack.c.bf16 %v2923_v20, %v2922_v9  ;;  %v2546_v23 = vmul.f32 0.70710677, %v2286_v27 }
 0x32b   : > { %v2796_v0 = vadd.f32 1.0, %v4351_v8  ;;  %4358 = verf.f32 %v2544_v6  ;;  %v2095_v22 = vadd.f32 %v6146_v7, %v5473_v41  ;;  %v2288_v32 = vadd.f32 %v6148_v51, %v5477_v18 }
 0x32c   : > { %v6291_v49 = vadd.f32 %v3211_v16, %v3055_v48  ;;  %3669 = vst [vmem:[%s5546_s2 + $0x1a8] sm:$0xff] %v3985_v31  ;;  %4360 = verf.f32 %v2546_v23  ;;  %v2097_v17 = vadd.f32 %v6151_v28, %v5465_v54  ;;  %v2290_v15 = vadd.f32 %v6435_v19, %v5469_v44 }
 0x32d   : > { %v2924_v36 = vmul.f32 %v2796_v0, %v2412_v24  ;;  %v2415_v47 = vmul.f32 0.5, %v2282_v43  ;;  %v2416_v14 = vmul.f32 0.5, %v2093_v42  ;;  %v2545_v30 = vmul.f32 0.70710677, %v2095_v22 }
 0x32e   : > { %v2418_v63 = vmul.f32 0.5, %v2286_v27  ;;  %v6298_v52 = vmul.f32 0.5, %v2095_v22  ;;  %v2547_v7 = vmul.f32 0.70710677, %v2288_v32  ;;  %v2548_v12 = vmul.f32 0.70710677, %v2097_v17 }
 0x32f   : > { %v4353_v51 = vpop.eup %4352  ;;  %v3056_v39 = vmul.f32 %v2924_v36, %v2924_v36  ;;  %4362 = verf.f32 %v2545_v30  ;;  %v2550_v11 = vmul.f32 0.70710677, %v2290_v15  ;;  %v2099_v2 = vadd.f32 %v6436_v45, %v5473_v41 }
 0x330   : > { %v2798_v28 = vadd.f32 1.0, %v4353_v51  ;;  %4364 = verf.f32 %v2547_v7  ;;  %v2292_v9 = vadd.f32 %v6437_v1, %v5477_v18  ;;  %v2103_v62 = vadd.f32 %v6168_v37, %v5465_v54 }
 0x331   : > { %v3102_v34 = vadd.f32 %v3101_v26, %v3056_v39  ;;  %v2419_v61 = vmul.f32 0.5, %v2288_v32  ;;  %4366 = verf.f32 %v2548_v12  ;;  %v2549_v16 = vmul.f32 0.70710677, %v2099_v2 }
 0x332   : > { %v4355_v53 = vpop.eup %4354  ;;  %v2926_v43 = vmul.f32 %v2798_v28, %v2414_v59  ;;  %v2420_v33 = vmul.f32 0.5, %v2097_v17  ;;  %4368 = verf.f32 %v2550_v11  ;;  %v2551_v50 = vmul.f32 0.70710677, %v2292_v9 }
 0x333   : > { %v4357_v56 = vpop.eup %4356  ;;  %v2797_v60 = vadd.f32 1.0, %v4355_v53  ;;  %v2422_v38 = vmul.f32 0.5, %v2290_v15  ;;  %4370 = verf.f32 %v2549_v16  ;;  %v2552_v24 = vmul.f32 0.70710677, %v2103_v62 }
 0x334   : > { %v3058_v35 = vmul.f32 %v2926_v43, %v2926_v43  ;;  %v2799_v55 = vadd.f32 1.0, %v4357_v56  ;;  %4372 = verf.f32 %v2551_v50  ;;  %v6308_v37 = vadd.f32 %v6170_v21, %v5469_v44 }
 0x335   : > { %v4359_v26 = vpop.eup %4358  ;;  %v2925_v42 = vmul.f32 %v2797_v60, %v2413_v40  ;;  %v2421_v27 = vmul.f32 0.5, %v2099_v2  ;;  %4374 = verf.f32 %v2552_v24  ;;  %v6312_v46 = vadd.f32 %v6173_v29, %v5473_v41 }
 0x336   : > { %v4361_v25 = vpop.eup %4360  ;;  %v3176_v20 = vadd.f32 %v6278_v13, %v3058_v35  ;;  %v2927_v59 = vmul.f32 %v2799_v55, %v2415_v47  ;;  %v2800_v6 = vadd.f32 1.0, %v4359_v26  ;;  %v6317_v8 = vadd.f32 %v6175_v10, %v5477_v18 }
 0x337   : > { %v3057_v21 = vmul.f32 %v2925_v42, %v2925_v42  ;;  %v3986_v48 = vpack.c.bf16 %v2925_v42, %v2924_v36  ;;  %v2802_v40 = vadd.f32 1.0, %v4361_v25  ;;  %v2554_v31 = vmul.f32 0.70710677, %v6308_v37 }
 0x338   : > { %v3059_v23 = vmul.f32 %v2927_v59, %v2927_v59  ;;  %v3987_v0 = vpack.c.bf16 %v2927_v59, %v2926_v43  ;;  %v2928_v29 = vmul.f32 %v2800_v6, %v2416_v14  ;;  %v2423_v22 = vmul.f32 0.5, %v2292_v9 }
 0x339   : > { %v4363_v32 = vpop.eup %4362  ;;  %v3139_v17 = vadd.f32 %v6284_v5, %v3057_v21  ;;  %3670 = vst [vmem:[%s5546_s2 + $0x1b0] sm:$0xff] %v3986_v48  ;;  %v2930_v13 = vmul.f32 %v2802_v40, %v2418_v63  ;;  %4376 = verf.f32 %v2554_v31  ;;  %v2553_v19 = vmul.f32 0.70710677, %v6312_v46 }
 0x33a   : > { %v4365_v10 = vpop.eup %4364  ;;  %v3213_v15 = vadd.f32 %v6291_v49, %v3059_v23  ;;  %3671 = vst [vmem:[%s5546_s2 + $0x1b8] sm:$0xff] %v3987_v0  ;;  %v3060_v36 = vmul.f32 %v2928_v29, %v2928_v29  ;;  %v2801_v47 = vadd.f32 1.0, %v4363_v32  ;;  %v2424_v30 = vmul.f32 0.5, %v2103_v62 }
 0x33b   : > { %v4367_v7 = vpop.eup %4366  ;;  %v3062_v12 = vmul.f32 %v2930_v13, %v2930_v13  ;;  %v2803_v51 = vadd.f32 1.0, %v4365_v10  ;;  %4378 = verf.f32 %v2553_v19  ;;  %v2555_v14 = vmul.f32 0.70710677, %v6317_v8 }
 0x33c   : > { %v4369_v39 = vpop.eup %4368  ;;  %v3103_v5 = vadd.f32 %v3102_v34, %v3060_v36  ;;  %v2929_v63 = vmul.f32 %v2801_v47, %v6298_v52  ;;  %v2804_v11 = vadd.f32 1.0, %v4367_v7  ;;  %v6329_v45 = vadd.f32 %v6180_v57, %v5465_v54 }
 0x33d   : > { %v4371_v49 = vpop.eup %4370  ;;  %v3177_v2 = vadd.f32 %v3176_v20, %v3062_v12  ;;  %v2931_v28 = vmul.f32 %v2803_v51, %v2419_v61  ;;  %v2806_v1 = vadd.f32 1.0, %v4369_v39  ;;  %4380 = verf.f32 %v2555_v14 }
 0x33e   : > { %v4373_v9 = vpop.eup %4372  ;;  %v3061_v62 = vmul.f32 %v2929_v63, %v2929_v63  ;;  %v3988_v16 = vpack.c.bf16 %v2929_v63, %v2928_v29  ;;  %v2932_v53 = vmul.f32 %v2804_v11, %v2420_v33  ;;  %v2805_v43 = vadd.f32 1.0, %v4371_v49 }
 0x33f   : > { %v4375_v34 = vpop.eup %4374  ;;  %v3063_v50 = vmul.f32 %v2931_v28, %v2931_v28  ;;  %v3989_v52 = vpack.c.bf16 %v2931_v28, %v2930_v13  ;;  %v2934_v56 = vmul.f32 %v2806_v1, %v2422_v38  ;;  %v2807_v60 = vadd.f32 1.0, %v4373_v9 }
 0x340   : > { %v3140_v24 = vadd.f32 %v3139_v17, %v3061_v62  ;;  %3672 = vst [vmem:[%s5546_s2 + $0x1c0] sm:$0xff] %v3988_v16  ;;  %v3064_v54 = vmul.f32 %v2932_v53, %v2932_v53  ;;  %v2933_v57 = vmul.f32 %v2805_v43, %v2421_v27  ;;  %v2808_v35 = vadd.f32 1.0, %v4375_v34 }
 0x341   : > { %v3214_v61 = vadd.f32 %v3213_v15, %v3063_v50  ;;  %3673 = vst [vmem:[%s5546_s2 + $0x1c8] sm:$0xff] %v3989_v52  ;;  %v3066_v55 = vmul.f32 %v2934_v56, %v2934_v56  ;;  %v2935_v26 = vmul.f32 %v2807_v60, %v2423_v22  ;;  %v2426_v42 = vmul.f32 0.5, %v6308_v37 }
 0x342   : > { %v3104_v25 = vadd.f32 %v3103_v5, %v3064_v54  ;;  %v3065_v33 = vmul.f32 %v2933_v57, %v2933_v57  ;;  %v3990_v20 = vpack.c.bf16 %v2933_v57, %v2932_v53  ;;  %v2936_v59 = vmul.f32 %v2808_v35, %v2424_v30 }
 0x343   : > { %v4377_v6 = vpop.eup %4376  ;;  %v3178_v38 = vadd.f32 %v3177_v2, %v3066_v55  ;;  %v3067_v21 = vmul.f32 %v2935_v26, %v2935_v26  ;;  %v3991_v48 = vpack.c.bf16 %v2935_v26, %v2934_v56  ;;  %v2556_v40 = vmul.f32 0.70710677, %v6329_v45 }
 0x344   : > { %v3141_v27 = vadd.f32 %v3140_v24, %v3065_v33  ;;  %3674 = vst [vmem:[%s5546_s2 + $0x1d0] sm:$0xff] %v3990_v20  ;;  %v3068_v31 = vmul.f32 %v2936_v59, %v2936_v59  ;;  %v2810_v23 = vadd.f32 1.0, %v4377_v6  ;;  %v2300_v0 = vadd.f32 %v6182_v58, %v5469_v44 }
 0x345   : > { %v4379_v29 = vpop.eup %4378  ;;  %v3215_v37 = vadd.f32 %v3214_v61, %v3067_v21  ;;  %3675 = vst [vmem:[%s5546_s2 + $0x1d8] sm:$0xff] %v3991_v48  ;;  %4382 = verf.f32 %v2556_v40  ;;  %v2109_v22 = vadd.f32 %v6187_v3, %v5473_v41  ;;  %v2302_v32 = vadd.f32 %v6189_v4, %v5477_v18 }
 0x346   : > { %v3105_v17 = vadd.f32 %v3104_v25, %v3068_v31  ;;  %v2938_v13 = vmul.f32 %v2810_v23, %v2426_v42  ;;  %v2425_v19 = vmul.f32 0.5, %v6312_v46  ;;  %v2809_v10 = vadd.f32 1.0, %v4379_v29 }
 0x347   : > { %v4381_v15 = vpop.eup %4380  ;;  %v2427_v36 = vmul.f32 0.5, %v6317_v8  ;;  %v2558_v44 = vmul.f32 0.70710677, %v2300_v0  ;;  %v2557_v58 = vmul.f32 0.70710677, %v2109_v22  ;;  %v2428_v5 = vmul.f32 0.5, %v6329_v45 }
 0x348   : > { %v3070_v47 = vmul.f32 %v2938_v13, %v2938_v13  ;;  %v2937_v30 = vmul.f32 %v2809_v10, %v2425_v19  ;;  %v2811_v7 = vadd.f32 1.0, %v4381_v15  ;;  %v2559_v12 = vmul.f32 0.70710677, %v2302_v32 }
 0x349   : > { %4384 = verf.f32 %v2558_v44  ;;  %v2430_v28 = vmul.f32 0.5, %v2300_v0  ;;  %v2429_v43 = vmul.f32 0.5, %v2109_v22  ;;  %v2431_v50 = vmul.f32 0.5, %v2302_v32  ;;  %v4391_v22 = vld [vmem:[#allocation2] sm:$0xff] }
 0x34a   : > { %v3179_v41 = vadd.f32 %v3178_v38, %v3070_v47  ;;  %v3069_v3 = vmul.f32 %v2937_v30, %v2937_v30  ;;  %v3992_v18 = vpack.c.bf16 %v2937_v30, %v2936_v59  ;;  %v2939_v4 = vmul.f32 %v2811_v7, %v2427_v36 }
 0x34b   : > { %4386 = verf.f32 %v2557_v58 }
 0x34c   : > { %v3142_v51 = vadd.f32 %v3141_v27, %v3069_v3  ;;  %3676 = vst [vmem:[%s5546_s2 + $0x1e0] sm:$0xff] %v3992_v18  ;;  %v3071_v46 = vmul.f32 %v2939_v4, %v2939_v4  ;;  %v3993_v14 = vpack.c.bf16 %v2939_v4, %v2938_v13  ;;  %4388 = verf.f32 %v2559_v12 }
 0x34e   : > { %v3216_v39 = vadd.f32 %v3215_v37, %v3071_v46  ;;  %3677 = vst [vmem:[%s5546_s2 + $0x1e8] sm:$0xff] %v3993_v14 }
 0x34f   : > { %v4383_v8 = vpop.eup %4382 }
 0x350   : > { %v2812_v63 = vadd.f32 1.0, %v4383_v8 }
 0x352   : > { %v2940_v11 = vmul.f32 %v2812_v63, %v2428_v5 }
 0x353   : > { %v4385_v49 = vpop.eup %4384 }
 0x354   : > { %v3072_v2 = vmul.f32 %v2940_v11, %v2940_v11  ;;  %v2814_v1 = vadd.f32 1.0, %v4385_v49 }
 0x355   : > { %v4387_v9 = vpop.eup %4386 }
 0x356   : > { %v4389_v62 = vpop.eup %4388  ;;  %v3106_v16 = vadd.f32 %v3105_v17, %v3072_v2  ;;  %v2942_v53 = vmul.f32 %v2814_v1, %v2430_v28  ;;  %v2813_v34 = vadd.f32 1.0, %v4387_v9 }
 0x357   : > { %v2815_v52 = vadd.f32 1.0, %v4389_v62 }
 0x358   : > { %v3107_v56 = vrot.slane %v3106_v16, 4  ;;  %v3074_v45 = vmul.f32 %v2942_v53, %v2942_v53  ;;  %v2941_v60 = vmul.f32 %v2813_v34, %v2429_v43 }
 0x359   : > { %v2943_v24 = vmul.f32 %v2815_v52, %v2431_v50 }
 0x35a   : > { %v3108_v54 = vadd.f32 %v3107_v56, %v3106_v16  ;;  %v3180_v57 = vadd.f32 %v3179_v41, %v3074_v45  ;;  %v3073_v35 = vmul.f32 %v2941_v60, %v2941_v60  ;;  %v3994_v61 = vpack.c.bf16 %v2941_v60, %v2940_v11 }
 0x35b   : > { %v3075_v55 = vmul.f32 %v2943_v24, %v2943_v24  ;;  %v3995_v26 = vpack.c.bf16 %v2943_v24, %v2942_v53 }
 0x35c   : > { %v3109_v42 = vrot.slane %v3108_v54, 2  ;;  %v3181_v25 = vrot.slane %v3180_v57, 4  ;;  %v3143_v33 = vadd.f32 %v3142_v51, %v3073_v35  ;;  %3678 = vst [vmem:[%s5546_s2 + $0x1f0] sm:$0xff] %v3994_v61 }
 0x35d   : > { %v3217_v20 = vadd.f32 %v3216_v39, %v3075_v55  ;;  %3679 = vst [vmem:[%s5546_s2 + $0x1f8] sm:$0xff] %v3995_v26 }
 0x35e   : > { %v3110_v59 = vadd.f32 %v3109_v42, %v3108_v54  ;;  %v3182_v6 = vadd.f32 %v3181_v25, %v3180_v57  ;;  %v3144_v38 = vrot.slane %v3143_v33, 4 }
 0x35f   : > { %v3218_v21 = vrot.slane %v3217_v20, 4 }
 0x360   : > { %v3111_v48 = vrot.slane %v3110_v59, 1  ;;  %v3183_v40 = vrot.slane %v3182_v6, 2  ;;  %v3145_v27 = vadd.f32 %v3144_v38, %v3143_v33 }
 0x361   : > { %v3219_v31 = vadd.f32 %v3218_v21, %v3217_v20 }
 0x362   : > { %v3112_v23 = vadd.f32 %v3111_v48, %v3110_v59  ;;  %v3184_v0 = vadd.f32 %v3183_v40, %v3182_v6  ;;  %v3146_v29 = vrot.slane %v3145_v27, 2 }
 0x363   : > { %v3220_v37 = vrot.slane %v3219_v31, 2 }
 0x364   : > { %v3224_v32 = vadd.f32 %v4391_v22, %v3112_v23  ;;  %v3185_v17 = vrot.slane %v3184_v0, 1  ;;  %v3147_v13 = vadd.f32 %v3146_v29, %v3145_v27 }
 0x365   : > { %v3221_v19 = vadd.f32 %v3220_v37, %v3219_v31 }
 0x366   : > { %3228 = vst [vmem:[%s505_s17] sm:$0xff] %v3224_v32  ;;  %v3186_v10 = vadd.f32 %v3185_v17, %v3184_v0  ;;  %v3148_v15 = vrot.slane %v3147_v13, 1 }
 0x367   : > { %v3222_v36 = vrot.slane %v3221_v19, 1 }
 0x368   : > { %v3226_v44 = vadd.f32 %v4391_v22, %v3186_v10  ;;  %v3149_v58 = vadd.f32 %v3148_v15, %v3147_v13 }
 0x369   : > { %v3223_v47 = vadd.f32 %v3222_v36, %v3221_v19 }
 0x36a   : > { %3230 = vst [vmem:[%s505_s17 + $0x10] sm:$0xff] %v3226_v44  ;;  %v3225_v30 = vadd.f32 %v4391_v22, %v3149_v58 }
 0x36b   : > { %v3227_v7 = vadd.f32 %v4391_v22, %v3223_v47 }
 0x36c   : > { %3229 = vst [vmem:[%s505_s17 + $0x8] sm:$0xff] %v3225_v30 }
 0x36d   : > { %3231 = vst [vmem:[%s505_s17 + $0x18] sm:$0xff] %v3227_v7 }
 0x36e PF: > { %s21_s13 = sadd.s32 1, %s4414_s13   ;;  %s6438_s11 = smov %s4410_s12 }
 0x36f   : > { %p18_p6 = scmp.ge.s32.totalorder %s21_s13, 4   ;;  %s6439_s12 = smov %s6441_s14 }
 0x371   :  { %20 = sbr.rel (!%p18_p6) target bundleno = 2 (0x2), region = 108 }

</bundles_post_ra>
